<compile_context>
chip_gen: v5e
topology: v5e:2x2
jax: 0.10.0
libtpu: 0.0.40
codegen_flags: <defaults>
</compile_context>

<pallas_src>
import jax
import jax.numpy as jnp
from jax.experimental import pallas as pl
from jax.experimental.pallas import tpu as pltpu


def _round_up(x, m):
    return ((x + m - 1) // m) * m


def fushion_fc_kernel(batch_ref, nodes_ref, seq_ref, icnt_ref,
                      w1_ref, b1_ref, w2_ref, b2_ref,
                      w3_ref, b3_ref, w4_ref, b4_ref,
                      w5row_ref, b5_ref,
                      out_ref, acc_ref):
    f32 = jnp.float32
    bf16 = jnp.bfloat16
    tb = acc_ref.shape[0]
    k = pl.program_id(1)

    # ---- global_mean_pool: accumulate pooled sums over this node tile -------
    @pl.when(k == 0)
    def _():
        acc_ref[...] = jnp.zeros_like(acc_ref)

    row0 = pl.program_id(0) * tb
    tn = batch_ref.shape[1]
    graph_ids = jax.lax.broadcasted_iota(jnp.int32, (tb, tn), 0) + row0
    assign = (batch_ref[...] == graph_ids).astype(bf16)            # [tb, tn] exact 0/1
    acc_ref[...] += jnp.dot(assign, nodes_ref[...],
                            preferred_element_type=f32)            # [tb, 512] f32

    # ---- projection / fusion / FC head only after the last node tile --------
    @pl.when(k == pl.num_programs(1) - 1)
    def _():
        # exact 1/count precomputed in the wrapper (no approx reciprocal)
        pooled = acc_ref[...] * icnt_ref[...]                      # [tb, 512]

        # projection_head: Linear(512,512) -> ReLU -> Linear(512,512)
        h = jnp.dot(pooled.astype(bf16), w1_ref[...],
                    preferred_element_type=f32) + b1_ref[...]
        h = jnp.maximum(h, 0.0)
        proj = jnp.dot(h.astype(bf16), w2_ref[...],
                       preferred_element_type=f32) + b2_ref[...]

        # fusion: output_seq + projected graph embedding
        z = seq_ref[...].astype(f32) + proj                        # [tb, 512]

        # FC_layer: Linear(512,256) -> ReLU -> Linear(256,24) -> ReLU -> Linear(24,1)
        f1 = jnp.dot(z.astype(bf16), w3_ref[...],
                     preferred_element_type=f32) + b3_ref[...]
        f1 = jnp.maximum(f1, 0.0)                                  # [tb, 256]
        f2 = jnp.dot(f1.astype(bf16), w4_ref[...],
                     preferred_element_type=f32) + b4_ref[...]
        f2 = jnp.maximum(f2, 0.0)                                  # [tb, 24]

        # 24 -> 1: VPU multiply + lane reduction, stored lane-dense as [1, tb]
        out_col = jnp.sum(f2 * w5row_ref[...], axis=-1, keepdims=True) + b5_ref[...]
        out_ref[...] = jnp.transpose(out_col).astype(out_ref.dtype)


def _block_spec(shape, index_map, *, buffer_count=None):
    """BlockSpec helper; falls back to default buffering if pipeline_mode is
    unavailable in this JAX version."""
    if buffer_count is not None:
        try:
            return pl.BlockSpec(shape, index_map,
                                pipeline_mode=pl.Buffered(buffer_count))
        except Exception:
            pass
    return pl.BlockSpec(shape, index_map)


def fushion_fc_forward(node_feats, batch_idx, output_seq, params,
                       *, tb_max=256, tn_max=2048):
    """Returns (output [B, 1], output_seq [B, 512]) matching FushionFC.forward.

    tb_max: row-tile size for large batches (use 128 on v5e, 256 on v6e/v7x).
    tn_max: node-tile size for the streamed global_mean_pool reduction.
    """
    B, D = output_seq.shape
    N, Dn = node_feats.shape
    assert D == 512 and Dn == 512
    assert tb_max % 128 == 0 and tn_max % 128 == 0

    (w1, b1), (w2, b2), (w3, b3), (w4, b4), (w5, b5) = params

    bf16 = jnp.bfloat16
    f32 = jnp.float32

    # Exact per-graph inverse counts, computed once here (removes a per-step
    # [tb, N] reduction and the approx reciprocal from the kernel).
    counts = jnp.bincount(batch_idx.astype(jnp.int32), length=B).astype(f32)
    inv_counts = (1.0 / jnp.maximum(counts, 1.0)).reshape(B, 1)

    # ---- row (batch) tiling: one big step for small B, tb_max-row tiles else.
    Bp = _round_up(B, 16)                       # bf16 sublane packing minimum
    if Bp <= tb_max:
        tb, nb = Bp, 1
    else:
        tb = tb_max
        nb = pl.cdiv(B, tb)
        Bp = nb * tb

    # ---- node tiling: single resident tile for small graphs, streamed else.
    if N <= tn_max:
        tn, nk = _round_up(N, 128), 1
    else:
        tn, nk = tn_max, pl.cdiv(N, tn_max)
    Np = nk * tn

    # bf16 weights/activations halve HBM traffic; kernel accumulates in f32.
    nodes_b = jnp.pad(node_feats.astype(bf16), ((0, Np - N), (0, 0)))
    batch_row = jnp.pad(batch_idx.astype(jnp.int32).reshape(1, N),
                        ((0, 0), (0, Np - N)), constant_values=-1)  # -1: no graph
    seq_b = jnp.pad(output_seq.astype(bf16), ((0, Bp - B), (0, 0)))
    icnt = jnp.pad(inv_counts, ((0, Bp - B), (0, 0)))

    w1b, w2b, w3b, w4b = (w.astype(bf16) for w in (w1, w2, w3, w4))
    w5row = w5.reshape(1, -1).astype(f32)       # [1, 24], VPU tail stays f32

    operands = (batch_row, nodes_b, seq_b, icnt,
                w1b, b1, w2b, b2, w3b, b3, w4b, b4, w5row, b5)

    def resident(x):
        # Full-extent block, constant index_map (fetched once, never re-DMA'd),
        # single-buffered to halve the resident VMEM footprint.
        nd = x.ndim
        return _block_spec(x.shape, lambda i, k, _nd=nd: (0,) * _nd,
                           buffer_count=1)

    in_specs = [
        _block_spec((1, tn), lambda i, k: (0, k)),      # batch ids, node-tiled
        _block_spec((tn, D), lambda i, k: (k, 0)),      # node feats, node-tiled
        _block_spec((tb, D), lambda i, k: (i, 0)),      # seq rows advance with i
        _block_spec((tb, 1), lambda i, k: (i, 0)),      # 1/count per graph
        resident(w1b), resident(b1),
        resident(w2b), resident(b2),
        resident(w3b), resident(b3),
        resident(w4b), resident(b4),
        resident(w5row), resident(b5),
    ]

    try:
        vmem_cap = pltpu.get_tpu_info().vmem_capacity_bytes
    except Exception:
        vmem_cap = 128 * 1024 * 1024
    vmem_limit = min(int(0.75 * vmem_cap), 96 * 1024 * 1024)

    out = pl.pallas_call(
        fushion_fc_kernel,
        out_shape=jax.ShapeDtypeStruct((1, Bp), jnp.float32),  # lane-dense output
        grid=(nb, nk),
        in_specs=in_specs,
        out_specs=pl.BlockSpec((1, tb), lambda i, k: (0, i)),
        scratch_shapes=[pltpu.VMEM((tb, D), jnp.float32)],      # pooled-sum acc
        compiler_params=pltpu.CompilerParams(
            dimension_semantics=("parallel", "arbitrary"),
            vmem_limit_bytes=vmem_limit),
    )(*operands)

    return out[0, :B].reshape(B, 1), output_seq


def init_linear(key, fan_in, fan_out):
    """Deterministic init; weight stored [in, out], bias [1, out]."""
    kw, kb = jax.random.split(key)
    bound = 1.0 / (fan_in ** 0.5)
    w = jax.random.uniform(kw, (fan_in, fan_out), jnp.float32, -bound, bound)
    b = jax.random.uniform(kb, (1, fan_out), jnp.float32, -bound, bound)
    return w, b


if __name__ == "__main__":
    key = jax.random.PRNGKey(0)
    keys = jax.random.split(key, 8)

    B = 12         # number of graphs (not a multiple of 16: exercises row padding)
    N = 64         # total number of graph nodes (exercises node padding to 128)
    D = 512        # encoder embedding dim (fixed by the module: Linear(512, ...))

    # Synthetic frozen-encoder outputs.
    node_feats = jax.random.normal(keys[0], (N, D), jnp.float32)
    batch_idx = jnp.sort(jax.random.randint(keys[1], (N,), 0, B, jnp.int32))
    output_seq = jax.random.normal(keys[2], (B, D), jnp.float32)

    # Parameters: projection_head (512->512->512), FC_layer (512->256->24->1).
    params = (
        init_linear(keys[3], 512, 512),
        init_linear(keys[4], 512, 512),
        init_linear(keys[5], 512, 256),
        init_linear(keys[6], 256, 24),
        init_linear(keys[7], 24, 1),
    )

    out, out_seq = fushion_fc_forward(node_feats, batch_idx, output_seq, params)
    jax.block_until_ready((out, out_seq))

    # Pure-JAX reference with the same bf16 rounding of weights/activations
    # (f32 math), so the remaining delta is only MXU accumulation order and
    # the inverse-count multiply-vs-divide rounding.
    # NOTE: bf16 weights/activations are an intentional deviation from the f32
    # PyTorch module; remove the casts for bit-parity at 2x the HBM traffic.
    f32 = jnp.float32
    bf = lambda x: x.astype(jnp.bfloat16).astype(f32)
    (w1, b1), (w2, b2), (w3, b3), (w4, b4), (w5, b5) = params
    assign = (batch_idx[None, :] == jnp.arange(B, dtype=batch_idx.dtype)[:, None]).astype(f32)
    counts = jnp.maximum(assign.sum(axis=1, keepdims=True), 1.0)
    pooled = (assign @ bf(node_feats)) / counts
    h = jnp.maximum(bf(pooled) @ bf(w1) + b1, 0.0)
    proj = bf(h) @ bf(w2) + b2
    z = bf(output_seq) + proj
    f1 = jnp.maximum(bf(z) @ bf(w3) + b3, 0.0)
    f2 = jnp.maximum(bf(f1) @ bf(w4) + b4, 0.0)
    ref = f2 @ w5 + b5

    assert out.shape == (B, 1) and out_seq.shape == (B, D)
    assert jnp.allclose(out, ref, atol=5e-2, rtol=5e-2), "mismatch vs reference"

    print("KERNEL_OK")
</pallas_src>

<mosaic_0001>
module attributes {stable_mosaic.version = 11 : i64} {
  func.func @fushion_fc_kernel(%arg0: i32, %arg1: i32, %arg2: memref<1x128xi32, #tpu.memory_space<vmem>>, %arg3: memref<128x512xbf16, #tpu.memory_space<vmem>>, %arg4: memref<16x512xbf16, #tpu.memory_space<vmem>>, %arg5: memref<16x1xf32, #tpu.memory_space<vmem>>, %arg6: memref<512x512xbf16, #tpu.memory_space<vmem>>, %arg7: memref<1x512xf32, #tpu.memory_space<vmem>>, %arg8: memref<512x512xbf16, #tpu.memory_space<vmem>>, %arg9: memref<1x512xf32, #tpu.memory_space<vmem>>, %arg10: memref<512x256xbf16, #tpu.memory_space<vmem>>, %arg11: memref<1x256xf32, #tpu.memory_space<vmem>>, %arg12: memref<256x24xbf16, #tpu.memory_space<vmem>>, %arg13: memref<1x24xf32, #tpu.memory_space<vmem>>, %arg14: memref<1x24xf32, #tpu.memory_space<vmem>>, %arg15: memref<1x1xf32, #tpu.memory_space<vmem>>, %arg16: memref<1x16xf32, #tpu.memory_space<vmem>>, %arg17: memref<16x512xf32, #tpu.memory_space<vmem>>) attributes {dimension_semantics = [#tpu.dimension_semantics<parallel>, #tpu.dimension_semantics<arbitrary>], iteration_bounds = array<i64: 1, 1>, scalar_prefetch = 0 : i64, scratch_operands = 1 : i64, tpu.core_type = #tpu.core_type<tc>, window_params = [{transform_indices = @transform_0, window_bounds = array<i64: 1, 128>}, {transform_indices = @transform_1, window_bounds = array<i64: 128, 512>}, {transform_indices = @transform_2, window_bounds = array<i64: 16, 512>}, {transform_indices = @transform_3, window_bounds = array<i64: 16, 1>}, {pipeline_mode = #tpu.pipeline_mode<synchronous>, transform_indices = @transform_4, window_bounds = array<i64: 512, 512>}, {pipeline_mode = #tpu.pipeline_mode<synchronous>, transform_indices = @transform_5, window_bounds = array<i64: 1, 512>}, {pipeline_mode = #tpu.pipeline_mode<synchronous>, transform_indices = @transform_6, window_bounds = array<i64: 512, 512>}, {pipeline_mode = #tpu.pipeline_mode<synchronous>, transform_indices = @transform_7, window_bounds = array<i64: 1, 512>}, {pipeline_mode = #tpu.pipeline_mode<synchronous>, transform_indices = @transform_8, window_bounds = array<i64: 512, 256>}, {pipeline_mode = #tpu.pipeline_mode<synchronous>, transform_indices = @transform_9, window_bounds = array<i64: 1, 256>}, {pipeline_mode = #tpu.pipeline_mode<synchronous>, transform_indices = @transform_10, window_bounds = array<i64: 256, 24>}, {pipeline_mode = #tpu.pipeline_mode<synchronous>, transform_indices = @transform_11, window_bounds = array<i64: 1, 24>}, {pipeline_mode = #tpu.pipeline_mode<synchronous>, transform_indices = @transform_12, window_bounds = array<i64: 1, 24>}, {pipeline_mode = #tpu.pipeline_mode<synchronous>, transform_indices = @transform_13, window_bounds = array<i64: 1, 1>}, {transform_indices = @transform_14, window_bounds = array<i64: 1, 16>}]} {
    %c0_i32 = arith.constant 0 : i32
    %0 = arith.cmpi eq, %arg1, %c0_i32 : i32
    %1 = arith.extui %0 : i1 to i32
    %c0_i32_0 = arith.constant 0 : i32
    %2 = arith.cmpi ne, %1, %c0_i32_0 : i32
    scf.if %2 {
      %cst_10 = arith.constant 0.000000e+00 : f32
      %21 = vector.broadcast %cst_10 : f32 to vector<16x512xf32>
      %c0_11 = arith.constant 0 : index
      %c0_12 = arith.constant 0 : index
      %22 = vector.load %arg17[%c0_11, %c0_12] : memref<16x512xf32, #tpu.memory_space<vmem>>, vector<16x512xf32>
      tpu.vector_store %arg17[%c0_11, %c0_12], %21 {strides = array<i32>} : memref<16x512xf32, #tpu.memory_space<vmem>>, vector<16x512xf32>,
    } else {
    }
    %c16_i32 = arith.constant 16 : i32
    %3 = arith.muli %arg0, %c16_i32 : i32
    %4 = tpu.iota {dimensions = array<i32: 0>} : vector<16x128xi32>
    %5 = vector.broadcast %3 : i32 to vector<16x128xi32>
    %6 = arith.addi %4, %5 : vector<16x128xi32>
    %c0 = arith.constant 0 : index
    %c0_1 = arith.constant 0 : index
    %7 = vector.load %arg2[%c0, %c0_1] : memref<1x128xi32, #tpu.memory_space<vmem>>, vector<1x128xi32>
    %8 = vector.broadcast %7 : vector<1x128xi32> to vector<16x128xi32>
    %9 = arith.cmpi eq, %8, %6 : vector<16x128xi32>
    %10 = arith.extui %9 : vector<16x128xi1> to vector<16x128xi32>
    %11 = arith.sitofp %10 : vector<16x128xi32> to vector<16x128xf32>
    %12 = arith.truncf %11 : vector<16x128xf32> to vector<16x128xbf16>
    %c0_2 = arith.constant 0 : index
    %c0_3 = arith.constant 0 : index
    %13 = vector.load %arg17[%c0_2, %c0_3] : memref<16x512xf32, #tpu.memory_space<vmem>>, vector<16x512xf32>
    %c0_4 = arith.constant 0 : index
    %c0_5 = arith.constant 0 : index
    %14 = vector.load %arg3[%c0_4, %c0_5] : memref<128x512xbf16, #tpu.memory_space<vmem>>, vector<128x512xbf16>
    %cst = arith.constant dense<0.000000e+00> : vector<16x512xf32>
    %15 = tpu.matmul %12, %14, %cst {dimension_numbers = #tpu.dot_dimension_numbers<[1], [0], [0], [1], [0, 0, 1, 1], [], []>} : vector<16x128xbf16>, vector<128x512xbf16>, vector<16x512xf32> -> vector<16x512xf32>
    %16 = arith.addf %13, %15 : vector<16x512xf32>
    %c0_6 = arith.constant 0 : index
    %c0_7 = arith.constant 0 : index
    %17 = vector.load %arg17[%c0_6, %c0_7] : memref<16x512xf32, #tpu.memory_space<vmem>>, vector<16x512xf32>
    tpu.vector_store %arg17[%c0_6, %c0_7], %16 {strides = array<i32>} : memref<16x512xf32, #tpu.memory_space<vmem>>, vector<16x512xf32>,
    %c0_i32_8 = arith.constant 0 : i32
    %18 = arith.cmpi eq, %arg1, %c0_i32_8 : i32
    %19 = arith.extui %18 : i1 to i32
    %c0_i32_9 = arith.constant 0 : i32
    %20 = arith.cmpi ne, %19, %c0_i32_9 : i32
    scf.if %20 {
      %c0_10 = arith.constant 0 : index
      %c0_11 = arith.constant 0 : index
      %21 = vector.load %arg17[%c0_10, %c0_11] : memref<16x512xf32, #tpu.memory_space<vmem>>, vector<16x512xf32>
      %c0_12 = arith.constant 0 : index
      %c0_13 = arith.constant 0 : index
      %22 = vector.load %arg5[%c0_12, %c0_13] : memref<16x1xf32, #tpu.memory_space<vmem>>, vector<16x1xf32>
      %23 = vector.broadcast %22 : vector<16x1xf32> to vector<16x512xf32>
      %24 = arith.mulf %21, %23 : vector<16x512xf32>
      %25 = arith.truncf %24 : vector<16x512xf32> to vector<16x512xbf16>
      %c0_14 = arith.constant 0 : index
      %c0_15 = arith.constant 0 : index
      %26 = vector.load %arg6[%c0_14, %c0_15] : memref<512x512xbf16, #tpu.memory_space<vmem>>, vector<512x512xbf16>
      %cst_16 = arith.constant dense<0.000000e+00> : vector<16x512xf32>
      %27 = tpu.matmul %25, %26, %cst_16 {dimension_numbers = #tpu.dot_dimension_numbers<[1], [0], [0], [1], [0, 0, 1, 1], [], []>} : vector<16x512xbf16>, vector<512x512xbf16>, vector<16x512xf32> -> vector<16x512xf32>
      %c0_17 = arith.constant 0 : index
      %c0_18 = arith.constant 0 : index
      %28 = vector.load %arg7[%c0_17, %c0_18] : memref<1x512xf32, #tpu.memory_space<vmem>>, vector<1x512xf32>
      %29 = vector.broadcast %28 : vector<1x512xf32> to vector<16x512xf32>
      %30 = arith.addf %27, %29 : vector<16x512xf32>
      %cst_19 = arith.constant 0.000000e+00 : f32
      %31 = vector.broadcast %cst_19 : f32 to vector<16x512xf32>
      %32 = arith.maximumf %30, %31 : vector<16x512xf32>
      %33 = arith.truncf %32 : vector<16x512xf32> to vector<16x512xbf16>
      %c0_20 = arith.constant 0 : index
      %c0_21 = arith.constant 0 : index
      %34 = vector.load %arg8[%c0_20, %c0_21] : memref<512x512xbf16, #tpu.memory_space<vmem>>, vector<512x512xbf16>
      %cst_22 = arith.constant dense<0.000000e+00> : vector<16x512xf32>
      %35 = tpu.matmul %33, %34, %cst_22 {dimension_numbers = #tpu.dot_dimension_numbers<[1], [0], [0], [1], [0, 0, 1, 1], [], []>} : vector<16x512xbf16>, vector<512x512xbf16>, vector<16x512xf32> -> vector<16x512xf32>
      %c0_23 = arith.constant 0 : index
      %c0_24 = arith.constant 0 : index
      %36 = vector.load %arg9[%c0_23, %c0_24] : memref<1x512xf32, #tpu.memory_space<vmem>>, vector<1x512xf32>
      %37 = vector.broadcast %36 : vector<1x512xf32> to vector<16x512xf32>
      %38 = arith.addf %35, %37 : vector<16x512xf32>
      %c0_25 = arith.constant 0 : index
      %c0_26 = arith.constant 0 : index
      %39 = vector.load %arg4[%c0_25, %c0_26] : memref<16x512xbf16, #tpu.memory_space<vmem>>, vector<16x512xbf16>
      %40 = arith.extf %39 : vector<16x512xbf16> to vector<16x512xf32>
      %41 = arith.addf %40, %38 : vector<16x512xf32>
      %42 = arith.truncf %41 : vector<16x512xf32> to vector<16x512xbf16>
      %c0_27 = arith.constant 0 : index
      %c0_28 = arith.constant 0 : index
      %43 = vector.load %arg10[%c0_27, %c0_28] : memref<512x256xbf16, #tpu.memory_space<vmem>>, vector<512x256xbf16>
      %cst_29 = arith.constant dense<0.000000e+00> : vector<16x256xf32>
      %44 = tpu.matmul %42, %43, %cst_29 {dimension_numbers = #tpu.dot_dimension_numbers<[1], [0], [0], [1], [0, 0, 1, 1], [], []>} : vector<16x512xbf16>, vector<512x256xbf16>, vector<16x256xf32> -> vector<16x256xf32>
      %c0_30 = arith.constant 0 : index
      %c0_31 = arith.constant 0 : index
      %45 = vector.load %arg11[%c0_30, %c0_31] : memref<1x256xf32, #tpu.memory_space<vmem>>, vector<1x256xf32>
      %46 = vector.broadcast %45 : vector<1x256xf32> to vector<16x256xf32>
      %47 = arith.addf %44, %46 : vector<16x256xf32>
      %cst_32 = arith.constant 0.000000e+00 : f32
      %48 = vector.broadcast %cst_32 : f32 to vector<16x256xf32>
      %49 = arith.maximumf %47, %48 : vector<16x256xf32>
      %50 = arith.truncf %49 : vector<16x256xf32> to vector<16x256xbf16>
      %c0_33 = arith.constant 0 : index
      %c0_34 = arith.constant 0 : index
      %51 = vector.load %arg12[%c0_33, %c0_34] : memref<256x24xbf16, #tpu.memory_space<vmem>>, vector<256x24xbf16>
      %cst_35 = arith.constant dense<0.000000e+00> : vector<16x24xf32>
      %52 = tpu.matmul %50, %51, %cst_35 {dimension_numbers = #tpu.dot_dimension_numbers<[1], [0], [0], [1], [0, 0, 1, 1], [], []>} : vector<16x256xbf16>, vector<256x24xbf16>, vector<16x24xf32> -> vector<16x24xf32>
      %c0_36 = arith.constant 0 : index
      %c0_37 = arith.constant 0 : index
      %53 = vector.load %arg13[%c0_36, %c0_37] : memref<1x24xf32, #tpu.memory_space<vmem>>, vector<1x24xf32>
      %54 = vector.broadcast %53 : vector<1x24xf32> to vector<16x24xf32>
      %55 = arith.addf %52, %54 : vector<16x24xf32>
      %cst_38 = arith.constant 0.000000e+00 : f32
      %56 = vector.broadcast %cst_38 : f32 to vector<16x24xf32>
      %57 = arith.maximumf %55, %56 : vector<16x24xf32>
      %c0_39 = arith.constant 0 : index
      %c0_40 = arith.constant 0 : index
      %58 = vector.load %arg14[%c0_39, %c0_40] : memref<1x24xf32, #tpu.memory_space<vmem>>, vector<1x24xf32>
      %59 = vector.broadcast %58 : vector<1x24xf32> to vector<16x24xf32>
      %60 = arith.mulf %57, %59 : vector<16x24xf32>
      %cst_41 = arith.constant dense<0.000000e+00> : vector<16xf32>
      %61 = vector.multi_reduction <add>, %60, %cst_41 [1] : vector<16x24xf32> to vector<16xf32>
      %62 = vector.shape_cast %61 : vector<16xf32> to vector<16x1xf32>
      %c0_42 = arith.constant 0 : index
      %c0_43 = arith.constant 0 : index
      %63 = vector.load %arg15[%c0_42, %c0_43] : memref<1x1xf32, #tpu.memory_space<vmem>>, vector<1x1xf32>
      %64 = vector.broadcast %63 : vector<1x1xf32> to vector<16x1xf32>
      %65 = arith.addf %62, %64 : vector<16x1xf32>
      %66 = tpu.transpose %65, [1, 0] : vector<16x1xf32> -> vector<1x16xf32>
      %c0_44 = arith.constant 0 : index
      %c0_45 = arith.constant 0 : index
      %67 = vector.load %arg16[%c0_44, %c0_45] : memref<1x16xf32, #tpu.memory_space<vmem>>, vector<1x16xf32>
      tpu.vector_store %arg16[%c0_44, %c0_45], %66 {strides = array<i32>} : memref<1x16xf32, #tpu.memory_space<vmem>>, vector<1x16xf32>,
    } else {
    }
    return
  }
  func.func @transform_0(%arg0: i32, %arg1: i32) -> (i32, i32) {
    %c0_i32 = arith.constant 0 : i32
    %c0_i32_0 = arith.constant 0 : i32
    return %c0_i32, %arg1 : i32, i32
  }
  func.func @transform_1(%arg0: i32, %arg1: i32) -> (i32, i32) {
    %c0_i32 = arith.constant 0 : i32
    %c0_i32_0 = arith.constant 0 : i32
    return %arg1, %c0_i32 : i32, i32
  }
  func.func @transform_2(%arg0: i32, %arg1: i32) -> (i32, i32) {
    %c0_i32 = arith.constant 0 : i32
    %c0_i32_0 = arith.constant 0 : i32
    return %arg0, %c0_i32 : i32, i32
  }
  func.func @transform_3(%arg0: i32, %arg1: i32) -> (i32, i32) {
    %c0_i32 = arith.constant 0 : i32
    %c0_i32_0 = arith.constant 0 : i32
    return %arg0, %c0_i32 : i32, i32
  }
  func.func @transform_4(%arg0: i32, %arg1: i32) -> (i32, i32) {
    %c0_i32 = arith.constant 0 : i32
    %c0_i32_0 = arith.constant 0 : i32
    %c0_i32_1 = arith.constant 0 : i32
    return %c0_i32, %c0_i32_0 : i32, i32
  }
  func.func @transform_5(%arg0: i32, %arg1: i32) -> (i32, i32) {
    %c0_i32 = arith.constant 0 : i32
    %c0_i32_0 = arith.constant 0 : i32
    %c0_i32_1 = arith.constant 0 : i32
    return %c0_i32, %c0_i32_0 : i32, i32
  }
  func.func @transform_6(%arg0: i32, %arg1: i32) -> (i32, i32) {
    %c0_i32 = arith.constant 0 : i32
    %c0_i32_0 = arith.constant 0 : i32
    %c0_i32_1 = arith.constant 0 : i32
    return %c0_i32, %c0_i32_0 : i32, i32
  }
  func.func @transform_7(%arg0: i32, %arg1: i32) -> (i32, i32) {
    %c0_i32 = arith.constant 0 : i32
    %c0_i32_0 = arith.constant 0 : i32
    %c0_i32_1 = arith.constant 0 : i32
    return %c0_i32, %c0_i32_0 : i32, i32
  }
  func.func @transform_8(%arg0: i32, %arg1: i32) -> (i32, i32) {
    %c0_i32 = arith.constant 0 : i32
    %c0_i32_0 = arith.constant 0 : i32
    %c0_i32_1 = arith.constant 0 : i32
    return %c0_i32, %c0_i32_0 : i32, i32
  }
  func.func @transform_9(%arg0: i32, %arg1: i32) -> (i32, i32) {
    %c0_i32 = arith.constant 0 : i32
    %c0_i32_0 = arith.constant 0 : i32
    %c0_i32_1 = arith.constant 0 : i32
    return %c0_i32, %c0_i32_0 : i32, i32
  }
  func.func @transform_10(%arg0: i32, %arg1: i32) -> (i32, i32) {
    %c0_i32 = arith.constant 0 : i32
    %c0_i32_0 = arith.constant 0 : i32
    %c0_i32_1 = arith.constant 0 : i32
    return %c0_i32, %c0_i32_0 : i32, i32
  }
  func.func @transform_11(%arg0: i32, %arg1: i32) -> (i32, i32) {
    %c0_i32 = arith.constant 0 : i32
    %c0_i32_0 = arith.constant 0 : i32
    %c0_i32_1 = arith.constant 0 : i32
    return %c0_i32, %c0_i32_0 : i32, i32
  }
  func.func @transform_12(%arg0: i32, %arg1: i32) -> (i32, i32) {
    %c0_i32 = arith.constant 0 : i32
    %c0_i32_0 = arith.constant 0 : i32
    %c0_i32_1 = arith.constant 0 : i32
    return %c0_i32, %c0_i32_0 : i32, i32
  }
  func.func @transform_13(%arg0: i32, %arg1: i32) -> (i32, i32) {
    %c0_i32 = arith.constant 0 : i32
    %c0_i32_0 = arith.constant 0 : i32
    %c0_i32_1 = arith.constant 0 : i32
    return %c0_i32, %c0_i32_0 : i32, i32
  }
  func.func @transform_14(%arg0: i32, %arg1: i32) -> (i32, i32) {
    %c0_i32 = arith.constant 0 : i32
    %c0_i32_0 = arith.constant 0 : i32
    return %c0_i32, %arg0 : i32, i32
  }
}

</mosaic_0001>

<bundles_post_ra>
// kernel: tpu_custom_call.1
= control target key start
LH: loop header
LB: loop body
LE: loop exit
PB: predicated region body
PF: predicated region fallthrough
CT: control target
= control target key end

     0   :  { %s5512_s0 = inlined_call_operand.vmem [shape: s32[1,128], index: 0, kind: input, shape index: {}]   ;;  %s5513_s1 = inlined_call_operand.hbm [shape: bf16[128,512], index: 1, kind: input, shape index: {}]   ;;  %s5514_s2 = inlined_call_operand.vmem [shape: bf16[16,512], index: 2, kind: input, shape index: {}]   ;;  %s5515_s3 = inlined_call_operand.vmem [shape: f32[16,1], index: 3, kind: input, shape index: {}]   ;;  %s5516_s4 = inlined_call_operand.hbm [shape: bf16[512,512], index: 4, kind: input, shape index: {}]   ;;  %s5517_s5 = inlined_call_operand.vmem [shape: f32[1,512], index: 5, kind: input, shape index: {}]   ;;  %s5518_s6 = inlined_call_operand.hbm [shape: bf16[512,512], index: 6, kind: input, shape index: {}]   ;;  %s5519_s7 = inlined_call_operand.vmem [shape: f32[1,512], index: 7, kind: input, shape index: {}]   ;;  %s5520_s8 = inlined_call_operand.hbm [shape: bf16[512,256], index: 8, kind: input, shape index: {}]   ;;  %s5521_s9 = inlined_call_operand.vmem [shape: f32[1,256], index: 9, kind: input, shape index: {}]   ;;  %s5522_s10 = inlined_call_operand.vmem [shape: bf16[256,24], index: 10, kind: input, shape index: {}]   ;;  %s5523_s11 = inlined_call_operand.vmem [shape: f32[1,24], index: 11, kind: input, shape index: {}]   ;;  %s5524_s12 = inlined_call_operand.vmem [shape: f32[1,24], index: 12, kind: input, shape index: {}]   ;;  %s5525_s13 = inlined_call_operand.<no memory space> [shape: f32[1,1], index: 13, kind: input, shape index: {}]   ;;  %s5526_s14 = inlined_call_operand.hbm [shape: f32[1,16], index: 14, kind: output, shape index: {}]  }
   0x1   :  { %v19_v0 = vstv %s5525_s13 }
   0x2   :  { %20 = vst [vmem:[#allocation3] sm:$0x1] %v19_v0 }
   0x3   :  { %21 = vsyncpa [#allocation5], 0 }
   0x4   :  { %22 = vsyncpa [#allocation8], 0 }
   0x5   :  { %23 = vsyncpa [#allocation11], 0 }
   0x6   :  { %24 = vsyncpa [#allocation6], 0  ;;  %s48_s17 = sshll.u32 %s5516_s4, 4  ;;  %s5225_s18 = smov [#allocation7]   ;;  %s49_s17 = int_to_ptr.hbm [resolvable:$true] %s48_s17 }
   0x7   :  { %s50_s19 = sshll.u32 %s5225_s18, 4  ;;  %s31_s22 = sshll.u32 %s5513_s1, 4  ;;  %s51_s19 = int_to_ptr.vmem [resolvable:$true] %s50_s19  ;;  %s32_s22 = int_to_ptr.hbm [resolvable:$true] %s31_s22 }
   0x8   :  { %s5226_s23 = smov 256   ;;  %s5227_s24 = smov 16  }
   0x9   :  { %56 = dma.hbm_to_vmem [thread:$0]  %s49_s17, 16384, %s51_s19, [#allocation8], %s5226_s23, %s5226_s23, %s5227_s24  }
   0xa   :  { %s5228_s13 = smov [#allocation4]   ;;  %s63_s28 = sshll.u32 %s5518_s6, 4  ;;  %s64_s28 = int_to_ptr.hbm [resolvable:$true] %s63_s28 }
   0xb   :  { %s33_s25 = sshll.u32 %s5228_s13, 4  ;;  %s78_s30 = sshll.u32 %s5520_s8, 4  ;;  %s34_s25 = int_to_ptr.vmem [resolvable:$true] %s33_s25  ;;  %s79_s30 = int_to_ptr.hbm [resolvable:$true] %s78_s30 }
   0xc   :  { %39 = dma.hbm_to_vmem [thread:$0]  %s32_s22, 4096, %s34_s25, [#allocation5], %s5226_s23, %s5226_s23, %s5227_s24  }
   0xd   :  { %s5229_s15 = smov [#allocation9]   ;;  %s5230_s1 = smov [#allocation10]  }
   0xe   :  { %s65_s16 = sshll.u32 %s5229_s15, 4  ;;  %s80_s17 = sshll.u32 %s5230_s1, 4  ;;  %s66_s16 = int_to_ptr.vmem [resolvable:$true] %s65_s16  ;;  %s81_s17 = int_to_ptr.vmem [resolvable:$true] %s80_s17 }
   0xf   :  { %71 = dma.hbm_to_vmem [thread:$0]  %s64_s28, 16384, %s66_s16, [#allocation8], %s5226_s23, %s5226_s23, %s5227_s24  }
  0x10   :  { %s5231_s18 = smov 128   ;;  %s5232_s19 = smov 8  }
  0x11   :  { %86 = dma.hbm_to_vmem [thread:$0]  %s79_s30, 8192, %s81_s17, [#allocation11], %s5231_s18, %s5231_s18, %s5232_s19  }
  0x12   :  { %5217 = dma.done.wait [#allocation5], 4096  }
  0x13   :  { %5218 = vsyncadd [#allocation5], 4294963200 }
  0x14   :  { %5219 = dma.done.wait [#allocation8], 32768  }
  0x15   :  { %5220 = vsyncadd [#allocation8], 4294934528 }
  0x16   :  { %5221 = dma.done.wait [#allocation11], 8192  }
  0x17   :  { %5222 = vsyncadd [#allocation11], 4294959104  ;;  %v3346_v1 = vld [vmem:[#allocation4 + $0xe0] sm:$0xf]  ;;  %v4742_v2 = vld [vmem:[#allocation4 + $0xec] sm:$0xf0]  ;;  %v126_v58 = vlaneseq }
  0x18   :  { %v4740_v3 = vld [vmem:[#allocation4 + $0xe4] sm:$0xf]  ;;  %v3347_v4 = vor.u32 %v4742_v2, %v3346_v1  ;;  %v3348_v5 = vld [vmem:[#allocation4 + $0xf0] sm:$0xf0]  ;;  %v3354_v6 = vld [vmem:[#allocation4 + $0xe8] sm:$0xf] }
  0x19   :  { %v4743_v7 = vld [vmem:[#allocation4 + $0xf4] sm:$0xf0]  ;;  %v3351_v8 = vor.u32 %v4740_v3, %v3348_v5  ;;  %v4741_v10 = vld [vmem:[#allocation4 + $0xec] sm:$0xf]  ;;  %v3356_v11 = vld [vmem:[#allocation4 + $0xf8] sm:$0xf0] }
  0x1a   :  { %v3355_v9 = vor.u32 %v4743_v7, %v3354_v6  ;;  %v3330_v12 = vld [vmem:[#allocation4 + $0xc0] sm:$0xf]  ;;  %341 = vmatpush.bf16.msra.mxu0 %v3347_v4  ;;  %v3359_v13 = vor.u32 %v4741_v10, %v3356_v11  ;;  %v4738_v14 = vld [vmem:[#allocation4 + $0xcc] sm:$0xf0]  ;;  %v4736_v15 = vld [vmem:[#allocation4 + $0xc4] sm:$0xf] }
  0x1b   :  { %v3332_v16 = vld [vmem:[#allocation4 + $0xd0] sm:$0xf0]  ;;  %355 = vmatpush.bf16.msra.mxu1 %v3351_v8  ;;  %v3331_v17 = vor.u32 %v4738_v14, %v3330_v12  ;;  %v3338_v19 = vld [vmem:[#allocation4 + $0xc8] sm:$0xf]  ;;  %v4739_v20 = vld [vmem:[#allocation4 + $0xd4] sm:$0xf0] }
  0x1c   :  { %369 = vmatpush.bf16.msra.mxu2 %v3355_v9  ;;  %v3335_v18 = vor.u32 %v4736_v15, %v3332_v16  ;;  %v4737_v21 = vld [vmem:[#allocation4 + $0xcc] sm:$0xf]  ;;  %383 = vmatpush.bf16.msra.mxu3 %v3359_v13  ;;  %v3339_v22 = vor.u32 %v4739_v20, %v3338_v19  ;;  %v3340_v23 = vld [vmem:[#allocation4 + $0xd8] sm:$0xf0]  ;;  %v3314_v24 = vld [vmem:[#allocation4 + $0xa0] sm:$0xf] }
  0x1d   :  { %v4734_v25 = vld [vmem:[#allocation4 + $0xac] sm:$0xf0]  ;;  %v3343_v26 = vor.u32 %v4737_v21, %v3340_v23  ;;  %v4732_v27 = vld [vmem:[#allocation4 + $0xa4] sm:$0xf]  ;;  %v3316_v28 = vld [vmem:[#allocation4 + $0xb0] sm:$0xf0] }
  0x1e   :  { %v3322_v29 = vld [vmem:[#allocation4 + $0xa8] sm:$0xf]  ;;  %342 = vmatpush.bf16.msra.mxu0 %v3331_v17  ;;  %v3315_v30 = vor.u32 %v4734_v25, %v3314_v24  ;;  %v4735_v31 = vld [vmem:[#allocation4 + $0xb4] sm:$0xf0]  ;;  %v4733_v32 = vld [vmem:[#allocation4 + $0xac] sm:$0xf]  ;;  %v3319_v34 = vor.u32 %v4732_v27, %v3316_v28 }
  0x1f   :  { %v3324_v33 = vld [vmem:[#allocation4 + $0xb8] sm:$0xf0]  ;;  %356 = vmatpush.bf16.msra.mxu1 %v3335_v18  ;;  %v3323_v35 = vor.u32 %v4735_v31, %v3322_v29  ;;  %v3298_v36 = vld [vmem:[#allocation4 + $0x80] sm:$0xf]  ;;  %v4730_v37 = vld [vmem:[#allocation4 + $0x8c] sm:$0xf0] }
  0x20   :  { %370 = vmatpush.bf16.msra.mxu2 %v3339_v22  ;;  %v4728_v38 = vld [vmem:[#allocation4 + $0x84] sm:$0xf]  ;;  %384 = vmatpush.bf16.msra.mxu3 %v3343_v26  ;;  %v3327_v39 = vor.u32 %v4733_v32, %v3324_v33  ;;  %v3300_v40 = vld [vmem:[#allocation4 + $0x90] sm:$0xf0]  ;;  %v3306_v41 = vld [vmem:[#allocation4 + $0x88] sm:$0xf]  ;;  %v3299_v45 = vor.u32 %v4730_v37, %v3298_v36 }
  0x21   :  { %v4731_v42 = vld [vmem:[#allocation4 + $0x94] sm:$0xf0]  ;;  %v4729_v43 = vld [vmem:[#allocation4 + $0x8c] sm:$0xf]  ;;  %v3308_v44 = vld [vmem:[#allocation4 + $0x98] sm:$0xf0]  ;;  %v3303_v46 = vor.u32 %v4728_v38, %v3300_v40 }
  0x22   :  { %343 = vmatpush.bf16.msra.mxu0 %v3315_v30  ;;  %v3307_v47 = vor.u32 %v4731_v42, %v3306_v41  ;;  %v3282_v48 = vld [vmem:[#allocation4 + $0x60] sm:$0xf]  ;;  %v4726_v49 = vld [vmem:[#allocation4 + $0x6c] sm:$0xf0]  ;;  %v4724_v50 = vld [vmem:[#allocation4 + $0x64] sm:$0xf]  ;;  %v3311_v51 = vor.u32 %v4729_v43, %v3308_v44 }
  0x23   :  { %357 = vmatpush.bf16.msra.mxu1 %v3319_v34  ;;  %v3284_v52 = vld [vmem:[#allocation4 + $0x70] sm:$0xf0]  ;;  %v3290_v53 = vld [vmem:[#allocation4 + $0x68] sm:$0xf]  ;;  %v4727_v54 = vld [vmem:[#allocation4 + $0x74] sm:$0xf0]  ;;  %v3283_v57 = vor.u32 %v4726_v49, %v3282_v48 }
  0x24   :  { %371 = vmatpush.bf16.msra.mxu2 %v3323_v35  ;;  %385 = vmatpush.bf16.msra.mxu3 %v3327_v39  ;;  %v4725_v55 = vld [vmem:[#allocation4 + $0x6c] sm:$0xf]  ;;  %v3292_v56 = vld [vmem:[#allocation4 + $0x78] sm:$0xf0]  ;;  %v3287_v59 = vor.u32 %v4724_v50, %v3284_v52  ;;  %v3291_v60 = vor.u32 %v4727_v54, %v3290_v53  ;;  %v3266_v61 = vld [vmem:[#allocation4 + $0x40] sm:$0xf] }
  0x25   :  { %v4722_v62 = vld [vmem:[#allocation4 + $0x4c] sm:$0xf0]  ;;  %v4720_v63 = vld [vmem:[#allocation4 + $0x44] sm:$0xf]  ;;  %v3295_v0 = vor.u32 %v4725_v55, %v3292_v56  ;;  %v3268_v1 = vld [vmem:[#allocation4 + $0x50] sm:$0xf0] }
  0x26   :  { %344 = vmatpush.bf16.msra.mxu0 %v3299_v45  ;;  %v3274_v2 = vld [vmem:[#allocation4 + $0x48] sm:$0xf]  ;;  %v4723_v3 = vld [vmem:[#allocation4 + $0x54] sm:$0xf0]  ;;  %v4721_v4 = vld [vmem:[#allocation4 + $0x4c] sm:$0xf]  ;;  %v3267_v6 = vor.u32 %v4722_v62, %v3266_v61  ;;  %v3271_v10 = vor.u32 %v4720_v63, %v3268_v1 }
  0x27   :  { %358 = vmatpush.bf16.msra.mxu1 %v3303_v46  ;;  %v3276_v5 = vld [vmem:[#allocation4 + $0x58] sm:$0xf0]  ;;  %v3250_v7 = vld [vmem:[#allocation4 + $0x20] sm:$0xf]  ;;  %v4718_v8 = vld [vmem:[#allocation4 + $0x2c] sm:$0xf0]  ;;  %v3275_v11 = vor.u32 %v4723_v3, %v3274_v2 }
  0x28   :  { %372 = vmatpush.bf16.msra.mxu2 %v3307_v47  ;;  %386 = vmatpush.bf16.msra.mxu3 %v3311_v51  ;;  %v127_v9 = vshrl.u32 %v126_v58, 7  ;;  %v4716_v12 = vld [vmem:[#allocation4 + $0x24] sm:$0xf]  ;;  %v3252_v13 = vld [vmem:[#allocation4 + $0x30] sm:$0xf0]  ;;  %v3279_v15 = vor.u32 %v4721_v4, %v3276_v5  ;;  %v5233_v19 = vmov 0   ;;  %v3251_v21 = vor.u32 %v4718_v8, %v3250_v7 }
  0x29   :  { %v3258_v14 = vld [vmem:[#allocation4 + $0x28] sm:$0xf]  ;;  %v4719_v16 = vld [vmem:[#allocation4 + $0x34] sm:$0xf0]  ;;  %v4717_v17 = vld [vmem:[#allocation4 + $0x2c] sm:$0xf]  ;;  %5092 = vset.pattern.permute.xlu0 %v5233_v19  ;;  %v3255_v25 = vor.u32 %v4716_v12, %v3252_v13 }
  0x2a   :  { %345 = vmatpush.bf16.msra.mxu0 %v3283_v57  ;;  %v3260_v18 = vld [vmem:[#allocation4 + $0x38] sm:$0xf0]  ;;  %v3234_v22 = vld [vmem:[#allocation4] sm:$0xf]  ;;  %v4714_v23 = vld [vmem:[#allocation4 + $0xc] sm:$0xf0]  ;;  %v3259_v26 = vor.u32 %v4719_v16, %v3258_v14 }
  0x2b   :  { %359 = vmatpush.bf16.msra.mxu1 %v3287_v59  ;;  %v424_v20 = vld [vmem:[%s5515_s3] sm:$0xff]  ;;  %v3236_v27 = vld [vmem:[#allocation4 + $0x10] sm:$0xf0]  ;;  %v128_v28 = vadd.s32 8, %v127_v9  ;;  %v3263_v30 = vor.u32 %v4717_v17, %v3260_v18  ;;  %v3242_v31 = vld [vmem:[#allocation4 + $0x8] sm:$0xf]  ;;  %v3235_v37 = vor.u32 %v4714_v23, %v3234_v22 }
  0x2c   :  { %373 = vmatpush.bf16.msra.mxu2 %v3291_v60  ;;  %387 = vmatpush.bf16.msra.mxu3 %v3295_v0  ;;  %v4712_v24 = vld [vmem:[#allocation4 + $0x4] sm:$0xf]  ;;  %v5093_v29 = vld [vmem:[%s5512_s0] ss:$0 sm:$0xff]  ;;  %v4715_v32 = vld [vmem:[#allocation4 + $0x14] sm:$0xf0] }
  0x2d   :  { %428 = vperm.xlu0 %5092, %v424_v20   ;;  %v4713_v33 = vld [vmem:[#allocation4 + $0xc] sm:$0xf]  ;;  %v3244_v34 = vld [vmem:[#allocation4 + $0x18] sm:$0xf0]  ;;  %v3482_v35 = vld [vmem:[#allocation7 + $0xe0] sm:$0xf]  ;;  %v3239_v38 = vor.u32 %v4712_v24, %v3236_v27  ;;  %v3243_v41 = vor.u32 %v4715_v32, %v3242_v31  ;;  %vm134_vm0 = vcmp.eq.s32.totalorder %v5093_v29, %v127_v9  ;;  %vm135_vm1 = vcmp.eq.s32.totalorder %v5093_v29, %v128_v28 }
  0x2e   :  { %346 = vmatpush.bf16.msra.mxu0 %v3267_v6  ;;  %v4774_v36 = vld [vmem:[#allocation7 + $0xec] sm:$0xf0]  ;;  %v3610_v39 = vld [vmem:[#allocation7 + $0x1e0] sm:$0xf]  ;;  %v425_v42 = vld [vmem:[%s5515_s3 + $0x8] sm:$0xff]  ;;  %v3247_v43 = vor.u32 %v4713_v33, %v3244_v34  ;;  %vm3164_vm3 = vcmask 195584  }
  0x2f   :  { %360 = vmatpush.bf16.msra.mxu1 %v3271_v10  ;;  %v4806_v40 = vld [vmem:[#allocation7 + $0x1ec] sm:$0xf0]  ;;  %v3483_v44 = vor.u32 %v4774_v36, %v3482_v35  ;;  %v3466_v45 = vld [vmem:[#allocation7 + $0xc0] sm:$0xf]  ;;  %vm5335_vm2 = vmpackc.low %vm135_vm1, %vm134_vm0  ;;  %v5234_v61 = vmov 1.0|1.0  }
  0x30   :  { %374 = vmatpush.bf16.msra.mxu2 %v3275_v11  ;;  %388 = vmatpush.bf16.msra.mxu3 %v3279_v15  ;;  %v3738_v46 = vld [vmem:[#allocation7 + $0x2e0] sm:$0xf]  ;;  %v4838_v47 = vld [vmem:[#allocation7 + $0x2ec] sm:$0xf0]  ;;  %v3611_v48 = vor.u32 %v4806_v40, %v3610_v39  ;;  %s3218_s22 = sshll.u32 %s5526_s14, 4  ;;  %vm3209_vm4 = vcmask 122880   ;;  %s3219_s22 = int_to_ptr.hbm [resolvable:$true] %s3218_s22 }
  0x31   :  { %v4770_v49 = vld [vmem:[#allocation7 + $0xcc] sm:$0xf0]  ;;  %v3866_v50 = vld [vmem:[#allocation7 + $0x3e0] sm:$0xf]  ;;  %v3739_v55 = vor.u32 %v4838_v47, %v3738_v46 }
  0x32   :  { %347 = vmatpush.bf16.msra.mxu0 %v3251_v21  ;;  %v4870_v51 = vld [vmem:[#allocation7 + $0x3ec] sm:$0xf0]  ;;  %v3594_v53 = vld [vmem:[#allocation7 + $0x1c0] sm:$0xf]  ;;  %v3467_v56 = vor.u32 %v4770_v49, %v3466_v45 }
  0x33   :  { %361 = vmatpush.bf16.msra.mxu1 %v3255_v25  ;;  %v4802_v54 = vld [vmem:[#allocation7 + $0x1cc] sm:$0xf0]  ;;  %v3867_v57 = vor.u32 %v4870_v51, %v3866_v50  ;;  %v3450_v58 = vld [vmem:[#allocation7 + $0xa0] sm:$0xf] }
  0x34   :  { %375 = vmatpush.bf16.msra.mxu2 %v3259_v26  ;;  %389 = vmatpush.bf16.msra.mxu3 %v3263_v30  ;;  %v3722_v59 = vld [vmem:[#allocation7 + $0x2c0] sm:$0xf]  ;;  %v4834_v60 = vld [vmem:[#allocation7 + $0x2cc] sm:$0xf0]  ;;  %v3595_v62 = vor.u32 %v4802_v54, %v3594_v53 }
  0x35   :  { %433 = vperm.xlu0 %5092, %v425_v42   ;;  %v4766_v63 = vld [vmem:[#allocation7 + $0xac] sm:$0xf0]  ;;  %v3850_v0 = vld [vmem:[#allocation7 + $0x3c0] sm:$0xf]  ;;  %v3723_v4 = vor.u32 %v4834_v60, %v3722_v59 }
  0x36   :  { %348 = vmatpush.bf16.msra.mxu0 %v3235_v37  ;;  %v4866_v1 = vld [vmem:[#allocation7 + $0x3cc] sm:$0xf0]  ;;  %v3578_v2 = vld [vmem:[#allocation7 + $0x1a0] sm:$0xf]  ;;  %v3451_v5 = vor.u32 %v4766_v63, %v3450_v58 }
  0x37   :  { %362 = vmatpush.bf16.msra.mxu1 %v3239_v38  ;;  %v4798_v3 = vld [vmem:[#allocation7 + $0x1ac] sm:$0xf0]  ;;  %v3851_v6 = vor.u32 %v4866_v1, %v3850_v0  ;;  %v3434_v7 = vld [vmem:[#allocation7 + $0x80] sm:$0xf]  ;;  %v4772_v0 = vld [vmem:[#allocation7 + $0xe4] sm:$0xf] }
  0x38   :  { %376 = vmatpush.bf16.msra.mxu2 %v3243_v41  ;;  %390 = vmatpush.bf16.msra.mxu3 %v3247_v43  ;;  %v3706_v8 = vld [vmem:[#allocation7 + $0x2a0] sm:$0xf]  ;;  %v4830_v9 = vld [vmem:[#allocation7 + $0x2ac] sm:$0xf0]  ;;  %v3579_v10 = vor.u32 %v4798_v3, %v3578_v2  ;;  %v3484_v1 = vld [vmem:[#allocation7 + $0xf0] sm:$0xf0] }
  0x39   :  { %3361 = vmatmul.msk.bf16.vlgmr.msra.gmra.mxu0 %vm5335_vm2, %v5234_v61  ;;  %v4762_v11 = vld [vmem:[#allocation7 + $0x8c] sm:$0xf0]  ;;  %v3834_v12 = vld [vmem:[#allocation7 + $0x3a0] sm:$0xf]  ;;  %v3707_v16 = vor.u32 %v4830_v9, %v3706_v8  ;;  %v4804_v2 = vld [vmem:[#allocation7 + $0x1e4] sm:$0xf] }
  0x3a   :  { %1226 = vmatpush.bf16.msrb.mxu0 %v3483_v44  ;;  %3363 = vmatmul.msk.bf16.vlgmr.msra.gmra.mxu1 %vm5335_vm2, %v5234_v61  ;;  %v4862_v13 = vld [vmem:[#allocation7 + $0x3ac] sm:$0xf0]  ;;  %v3562_v14 = vld [vmem:[#allocation7 + $0x180] sm:$0xf]  ;;  %v3435_v17 = vor.u32 %v4762_v11, %v3434_v7  ;;  %v3612_v3 = vld [vmem:[#allocation7 + $0x1f0] sm:$0xf0] }
  0x3b   :  { %1240 = vmatpush.bf16.msrb.mxu1 %v3611_v48  ;;  %3365 = vmatmul.msk.bf16.vlgmr.msra.gmra.mxu2 %vm5335_vm2, %v5234_v61  ;;  %v4794_v15 = vld [vmem:[#allocation7 + $0x18c] sm:$0xf0]  ;;  %v3835_v18 = vor.u32 %v4862_v13, %v3834_v12  ;;  %v3418_v19 = vld [vmem:[#allocation7 + $0x60] sm:$0xf]  ;;  %v4768_v7 = vld [vmem:[#allocation7 + $0xc4] sm:$0xf]  ;;  %v3487_v12 = vor.u32 %v4772_v0, %v3484_v1 }
  0x3c   :  { %3367 = vmatmul.msk.bf16.vlgmr.msra.gmra.mxu3 %vm5335_vm2, %v5234_v61  ;;  %1254 = vmatpush.bf16.msrb.mxu2 %v3739_v55  ;;  %v3690_v20 = vld [vmem:[#allocation7 + $0x280] sm:$0xf]  ;;  %v4826_v21 = vld [vmem:[#allocation7 + $0x28c] sm:$0xf0]  ;;  %v3563_v22 = vor.u32 %v4794_v15, %v3562_v14  ;;  %v4836_v14 = vld [vmem:[#allocation7 + $0x2e4] sm:$0xf] }
  0x3d   :  { %1268 = vmatpush.bf16.msrb.mxu3 %v3867_v57  ;;  %v4758_v23 = vld [vmem:[#allocation7 + $0x6c] sm:$0xf0]  ;;  %v3818_v24 = vld [vmem:[#allocation7 + $0x380] sm:$0xf]  ;;  %v3691_v28 = vor.u32 %v4826_v21, %v3690_v20  ;;  %v3740_v15 = vld [vmem:[#allocation7 + $0x2f0] sm:$0xf0] }
  0x3e   :  { %1227 = vmatpush.bf16.msrb.mxu0 %v3467_v56  ;;  %v4858_v25 = vld [vmem:[#allocation7 + $0x38c] sm:$0xf0]  ;;  %v3546_v26 = vld [vmem:[#allocation7 + $0x160] sm:$0xf]  ;;  %v3419_v29 = vor.u32 %v4758_v23, %v3418_v19  ;;  %v3868_v19 = vld [vmem:[#allocation7 + $0x3f0] sm:$0xf0] }
  0x3f   :  { %1241 = vmatpush.bf16.msrb.mxu1 %v3595_v62  ;;  %v4790_v27 = vld [vmem:[#allocation7 + $0x16c] sm:$0xf0]  ;;  %v3819_v30 = vor.u32 %v4858_v25, %v3818_v24  ;;  %v3402_v31 = vld [vmem:[#allocation7 + $0x40] sm:$0xf]  ;;  %v4800_v20 = vld [vmem:[#allocation7 + $0x1c4] sm:$0xf]  ;;  %v3743_v24 = vor.u32 %v4836_v14, %v3740_v15 }
  0x40   :  { %1255 = vmatpush.bf16.msrb.mxu2 %v3723_v4  ;;  %v3674_v32 = vld [vmem:[#allocation7 + $0x260] sm:$0xf]  ;;  %v4822_v33 = vld [vmem:[#allocation7 + $0x26c] sm:$0xf0]  ;;  %v3547_v34 = vor.u32 %v4790_v27, %v3546_v26  ;;  %v3596_v21 = vld [vmem:[#allocation7 + $0x1d0] sm:$0xf0] }
  0x41   :  { %1269 = vmatpush.bf16.msrb.mxu3 %v3851_v6  ;;  %v4754_v35 = vld [vmem:[#allocation7 + $0x4c] sm:$0xf0]  ;;  %v3802_v36 = vld [vmem:[#allocation7 + $0x360] sm:$0xf]  ;;  %v3675_v40 = vor.u32 %v4822_v33, %v3674_v32  ;;  %v4764_v27 = vld [vmem:[#allocation7 + $0xa4] sm:$0xf] }
  0x42   :  { %1228 = vmatpush.bf16.msrb.mxu0 %v3451_v5  ;;  %v4854_v37 = vld [vmem:[#allocation7 + $0x36c] sm:$0xf0]  ;;  %v3530_v38 = vld [vmem:[#allocation7 + $0x140] sm:$0xf]  ;;  %v3403_v41 = vor.u32 %v4754_v35, %v3402_v31  ;;  %v3452_v31 = vld [vmem:[#allocation7 + $0xb0] sm:$0xf0] }
  0x43   :  { %1242 = vmatpush.bf16.msrb.mxu1 %v3579_v10  ;;  %v4786_v39 = vld [vmem:[#allocation7 + $0x14c] sm:$0xf0]  ;;  %v3803_v42 = vor.u32 %v4854_v37, %v3802_v36  ;;  %v3386_v43 = vld [vmem:[#allocation7 + $0x20] sm:$0xf]  ;;  %v4864_v32 = vld [vmem:[#allocation7 + $0x3c4] sm:$0xf]  ;;  %v3455_v37 = vor.u32 %v4764_v27, %v3452_v31 }
  0x44   :  { %1256 = vmatpush.bf16.msrb.mxu2 %v3707_v16  ;;  %v3658_v44 = vld [vmem:[#allocation7 + $0x240] sm:$0xf]  ;;  %v4818_v45 = vld [vmem:[#allocation7 + $0x24c] sm:$0xf0]  ;;  %v3531_v46 = vor.u32 %v4786_v39, %v3530_v38  ;;  %v3615_v16 = vor.u32 %v4804_v2, %v3612_v3  ;;  %v3852_v33 = vld [vmem:[#allocation7 + $0x3d0] sm:$0xf0] }
  0x45   :  { %1270 = vmatpush.bf16.msrb.mxu3 %v3835_v18  ;;  %v4750_v47 = vld [vmem:[#allocation7 + $0x2c] sm:$0xf0]  ;;  %v3786_v48 = vld [vmem:[#allocation7 + $0x340] sm:$0xf]  ;;  %v3659_v52 = vor.u32 %v4818_v45, %v3658_v44  ;;  %v4868_v18 = vld [vmem:[#allocation7 + $0x3e4] sm:$0xf]  ;;  %v3855_v38 = vor.u32 %v4864_v32, %v3852_v33 }
  0x46   :  { %1229 = vmatpush.bf16.msrb.mxu0 %v3435_v17  ;;  %v4850_v49 = vld [vmem:[#allocation7 + $0x34c] sm:$0xf0]  ;;  %v3514_v50 = vld [vmem:[#allocation7 + $0x120] sm:$0xf]  ;;  %v3387_v56 = vor.u32 %v4750_v47, %v3386_v43  ;;  %v3468_v17 = vld [vmem:[#allocation7 + $0xd0] sm:$0xf0]  ;;  %v3871_v26 = vor.u32 %v4868_v18, %v3868_v19 }
  0x47   :  { %1243 = vmatpush.bf16.msrb.mxu1 %v3563_v22  ;;  %v4782_v51 = vld [vmem:[#allocation7 + $0x12c] sm:$0xf0]  ;;  %v3370_v53 = vld [vmem:[#allocation7] sm:$0xf]  ;;  %v3787_v57 = vor.u32 %v4850_v49, %v3786_v48  ;;  %v3471_v25 = vor.u32 %v4768_v7, %v3468_v17  ;;  %v3580_v35 = vld [vmem:[#allocation7 + $0x1b0] sm:$0xf0] }
  0x48   :  { %1257 = vmatpush.bf16.msrb.mxu2 %v3691_v28  ;;  %v4746_v54 = vld [vmem:[#allocation7 + $0xc] sm:$0xf0]  ;;  %v3642_v55 = vld [vmem:[#allocation7 + $0x220] sm:$0xf]  ;;  %v3515_v59 = vor.u32 %v4782_v51, %v3514_v50  ;;  %v4832_v28 = vld [vmem:[#allocation7 + $0x2c4] sm:$0xf] }
  0x49   :  { %1271 = vmatpush.bf16.msrb.mxu3 %v3819_v30  ;;  %v4814_v58 = vld [vmem:[#allocation7 + $0x22c] sm:$0xf0]  ;;  %v3498_v60 = vld [vmem:[#allocation7 + $0x100] sm:$0xf]  ;;  %v3371_v5 = vor.u32 %v4746_v54, %v3370_v53  ;;  %v3599_v30 = vor.u32 %v4800_v20, %v3596_v21  ;;  %v3564_v43 = vld [vmem:[#allocation7 + $0x190] sm:$0xf0] }
  0x4a   :  { %1230 = vmatpush.bf16.msrb.mxu0 %v3419_v29  ;;  %v3770_v61 = vld [vmem:[#allocation7 + $0x320] sm:$0xf]  ;;  %v4846_v62 = vld [vmem:[#allocation7 + $0x32c] sm:$0xf0]  ;;  %v3643_v4 = vor.u32 %v4814_v58, %v3642_v55  ;;  %v3724_v29 = vld [vmem:[#allocation7 + $0x2d0] sm:$0xf0] }
  0x4b   :  { %1244 = vmatpush.bf16.msrb.mxu1 %v3547_v34  ;;  %v4778_v63 = vld [vmem:[#allocation7 + $0x10c] sm:$0xf0]  ;;  %v3771_v6 = vor.u32 %v4846_v62, %v3770_v61  ;;  %v3626_v8 = vld [vmem:[#allocation7 + $0x200] sm:$0xf]  ;;  %v4796_v34 = vld [vmem:[#allocation7 + $0x1a4] sm:$0xf]  ;;  %v3727_v36 = vor.u32 %v4832_v28, %v3724_v29 }
  0x4c   :  { %1258 = vmatpush.bf16.msrb.mxu2 %v3675_v40  ;;  %v4810_v9 = vld [vmem:[#allocation7 + $0x20c] sm:$0xf0]  ;;  %v3754_v10 = vld [vmem:[#allocation7 + $0x300] sm:$0xf]  ;;  %v3499_v11 = vor.u32 %v4778_v63, %v3498_v60  ;;  %v3583_v39 = vor.u32 %v4796_v34, %v3580_v35  ;;  %v4760_v40 = vld [vmem:[#allocation7 + $0x84] sm:$0xf] }
  0x4d   :  { %1272 = vmatpush.bf16.msrb.mxu3 %v3803_v42  ;;  %v4842_v13 = vld [vmem:[#allocation7 + $0x30c] sm:$0xf0]  ;;  %v3627_v22 = vor.u32 %v4810_v9, %v3626_v8  ;;  %v4792_v42 = vld [vmem:[#allocation7 + $0x184] sm:$0xf]  ;;  %v3708_v47 = vld [vmem:[#allocation7 + $0x2b0] sm:$0xf0] }
  0x4e   :  { %1231 = vmatpush.bf16.msrb.mxu0 %v3403_v41  ;;  %v3755_v23 = vor.u32 %v4842_v13, %v3754_v10  ;;  %v3436_v41 = vld [vmem:[#allocation7 + $0x90] sm:$0xf0]  ;;  %v3567_v45 = vor.u32 %v4792_v42, %v3564_v43  ;;  %v4860_v48 = vld [vmem:[#allocation7 + $0x3a4] sm:$0xf] }
  0x4f   :  { %1245 = vmatpush.bf16.msrb.mxu1 %v3531_v46  ;;  %v3439_v44 = vor.u32 %v4760_v40, %v3436_v41  ;;  %v4828_v46 = vld [vmem:[#allocation7 + $0x2a4] sm:$0xf]  ;;  %v3836_v50 = vld [vmem:[#allocation7 + $0x3b0] sm:$0xf0] }
  0x50   :  { %1259 = vmatpush.bf16.msrb.mxu2 %v3659_v52  ;;  %v3711_v49 = vor.u32 %v4828_v46, %v3708_v47  ;;  %v3839_v51 = vor.u32 %v4860_v48, %v3836_v50  ;;  %v4756_v52 = vld [vmem:[#allocation7 + $0x64] sm:$0xf]  ;;  %v3420_v53 = vld [vmem:[#allocation7 + $0x70] sm:$0xf0]  ;;  %v3490_v47 = vld [vmem:[#allocation7 + $0xe8] sm:$0xf] }
  0x51   :  { %1273 = vmatpush.bf16.msrb.mxu3 %v3787_v57  ;;  %v4788_v54 = vld [vmem:[#allocation7 + $0x164] sm:$0xf]  ;;  %v3423_v55 = vor.u32 %v4756_v52, %v3420_v53  ;;  %v3820_v62 = vld [vmem:[#allocation7 + $0x390] sm:$0xf0]  ;;  %v4775_v48 = vld [vmem:[#allocation7 + $0xf4] sm:$0xf0] }
  0x52   :  { %1232 = vmatpush.bf16.msrb.mxu0 %v3387_v56  ;;  %v3548_v56 = vld [vmem:[#allocation7 + $0x170] sm:$0xf0]  ;;  %v4824_v58 = vld [vmem:[#allocation7 + $0x284] sm:$0xf]  ;;  %v4807_v52 = vld [vmem:[#allocation7 + $0x1f4] sm:$0xf0] }
  0x53   :  { %1246 = vmatpush.bf16.msrb.mxu1 %v3515_v59  ;;  %v3551_v57 = vor.u32 %v4788_v54, %v3548_v56  ;;  %v3692_v59 = vld [vmem:[#allocation7 + $0x290] sm:$0xf0]  ;;  %v4856_v60 = vld [vmem:[#allocation7 + $0x384] sm:$0xf] }
  0x54   :  { %1260 = vmatpush.bf16.msrb.mxu2 %v3643_v4  ;;  %v3695_v61 = vor.u32 %v4824_v58, %v3692_v59  ;;  %v4752_v63 = vld [vmem:[#allocation7 + $0x44] sm:$0xf]  ;;  %v3404_v0 = vld [vmem:[#allocation7 + $0x50] sm:$0xf0]  ;;  %v3823_v1 = vor.u32 %v4856_v60, %v3820_v62  ;;  %v3491_v58 = vor.u32 %v4775_v48, %v3490_v47  ;;  %v4771_v62 = vld [vmem:[#allocation7 + $0xd4] sm:$0xf0] }
  0x55   :  { %1274 = vmatpush.bf16.msrb.mxu3 %v3771_v6  ;;  %v3407_v2 = vor.u32 %v4752_v63, %v3404_v0  ;;  %v4784_v3 = vld [vmem:[#allocation7 + $0x144] sm:$0xf]  ;;  %v3532_v4 = vld [vmem:[#allocation7 + $0x150] sm:$0xf0]  ;;  %v3602_v0 = vld [vmem:[#allocation7 + $0x1c8] sm:$0xf] }
  0x56   :  { %1233 = vmatpush.bf16.msrb.mxu0 %v3371_v5  ;;  %v3535_v5 = vor.u32 %v4784_v3, %v3532_v4  ;;  %v4820_v6 = vld [vmem:[#allocation7 + $0x264] sm:$0xf]  ;;  %v3676_v7 = vld [vmem:[#allocation7 + $0x270] sm:$0xf0]  ;;  %v3746_v3 = vld [vmem:[#allocation7 + $0x2e8] sm:$0xf] }
  0x57   :  { %1247 = vmatpush.bf16.msrb.mxu1 %v3499_v11  ;;  %v4852_v8 = vld [vmem:[#allocation7 + $0x364] sm:$0xf]  ;;  %v3679_v9 = vor.u32 %v4820_v6, %v3676_v7  ;;  %v3804_v10 = vld [vmem:[#allocation7 + $0x370] sm:$0xf0]  ;;  %v4839_v4 = vld [vmem:[#allocation7 + $0x2f4] sm:$0xf0] }
  0x58   :  { %1261 = vmatpush.bf16.msrb.mxu2 %v3627_v22  ;;  %v3807_v11 = vor.u32 %v4852_v8, %v3804_v10  ;;  %v3388_v13 = vld [vmem:[#allocation7 + $0x30] sm:$0xf0]  ;;  %v4780_v14 = vld [vmem:[#allocation7 + $0x124] sm:$0xf]  ;;  %v4871_v8 = vld [vmem:[#allocation7 + $0x3f4] sm:$0xf0] }
  0x59   :  { %1275 = vmatpush.bf16.msrb.mxu3 %v3755_v23  ;;  %v4816_v18 = vld [vmem:[#allocation7 + $0x244] sm:$0xf]  ;;  %v3660_v19 = vld [vmem:[#allocation7 + $0x250] sm:$0xf0]  ;;  %v4767_v10 = vld [vmem:[#allocation7 + $0xb4] sm:$0xf0] }
  0x5a   :  { %1282 = vmatpush.bf16.msra.mxu0 %v3487_v12  ;;  %v4748_v12 = vld [vmem:[#allocation7 + $0x24] sm:$0xf]  ;;  %v3663_v21 = vor.u32 %v4816_v18, %v3660_v19  ;;  %v3788_v22 = vld [vmem:[#allocation7 + $0x350] sm:$0xf0]  ;;  %v3747_v18 = vor.u32 %v4839_v4, %v3746_v3  ;;  %v4827_v47 = vld [vmem:[#allocation7 + $0x294] sm:$0xf0] }
  0x5b   :  { %1296 = vmatpush.bf16.msra.mxu1 %v3615_v16  ;;  %v3391_v15 = vor.u32 %v4748_v12, %v3388_v13  ;;  %v3516_v16 = vld [vmem:[#allocation7 + $0x130] sm:$0xf0]  ;;  %v4848_v20 = vld [vmem:[#allocation7 + $0x344] sm:$0xf]  ;;  %v4751_v3 = vld [vmem:[#allocation7 + $0x34] sm:$0xf0] }
  0x5c   :  { %1310 = vmatpush.bf16.msra.mxu2 %v3743_v24  ;;  %v3519_v17 = vor.u32 %v4780_v14, %v3516_v16  ;;  %v3791_v23 = vor.u32 %v4848_v20, %v3788_v22  ;;  %v4744_v24 = vld [vmem:[#allocation7 + $0x4] sm:$0xf]  ;;  %v3500_v28 = vld [vmem:[#allocation7 + $0x110] sm:$0xf0]  ;;  %v3586_v14 = vld [vmem:[#allocation7 + $0x1a8] sm:$0xf] }
  0x5d   :  { %1324 = vmatpush.bf16.msra.mxu3 %v3871_v26  ;;  %v4776_v26 = vld [vmem:[#allocation7 + $0x104] sm:$0xf]  ;;  %v3644_v31 = vld [vmem:[#allocation7 + $0x230] sm:$0xf0]  ;;  %v3730_v22 = vld [vmem:[#allocation7 + $0x2c8] sm:$0xf] }
  0x5e   :  { %1283 = vmatpush.bf16.msra.mxu0 %v3471_v25  ;;  %v3372_v25 = vld [vmem:[#allocation7 + $0x10] sm:$0xf0]  ;;  %v3503_v29 = vor.u32 %v4776_v26, %v3500_v28  ;;  %v4844_v32 = vld [vmem:[#allocation7 + $0x324] sm:$0xf]  ;;  %v3442_v28 = vld [vmem:[#allocation7 + $0x88] sm:$0xf] }
  0x5f   :  { %1297 = vmatpush.bf16.msra.mxu1 %v3599_v30  ;;  %v3375_v27 = vor.u32 %v4744_v24, %v3372_v25  ;;  %v4812_v30 = vld [vmem:[#allocation7 + $0x224] sm:$0xf]  ;;  %v3772_v33 = vld [vmem:[#allocation7 + $0x330] sm:$0xf0]  ;;  %v3858_v24 = vld [vmem:[#allocation7 + $0x3c8] sm:$0xf] }
  0x60   :  { %1311 = vmatpush.bf16.msra.mxu2 %v3727_v36  ;;  %v3647_v34 = vor.u32 %v4812_v30, %v3644_v31  ;;  %v3775_v35 = vor.u32 %v4844_v32, %v3772_v33  ;;  %v4808_v36 = vld [vmem:[#allocation7 + $0x204] sm:$0xf]  ;;  %v3756_v40 = vld [vmem:[#allocation7 + $0x310] sm:$0xf0]  ;;  %v3570_v30 = vld [vmem:[#allocation7 + $0x188] sm:$0xf] }
  0x61   :  { %1325 = vmatpush.bf16.msra.mxu3 %v3855_v38  ;;  %v4795_v31 = vld [vmem:[#allocation7 + $0x194] sm:$0xf0]  ;;  %v3522_v4 = vld [vmem:[#allocation7 + $0x128] sm:$0xf] }
  0x62   :  { %1284 = vmatpush.bf16.msra.mxu0 %v3455_v37  ;;  %v3628_v37 = vld [vmem:[#allocation7 + $0x210] sm:$0xf0] }
  0x63   :  { %1298 = vmatpush.bf16.msra.mxu1 %v3583_v39  ;;  %v3631_v38 = vor.u32 %v4808_v36, %v3628_v37  ;;  %v4840_v39 = vld [vmem:[#allocation7 + $0x304] sm:$0xf]  ;;  %v4831_v36 = vld [vmem:[#allocation7 + $0x2b4] sm:$0xf0]  ;;  %v3571_v37 = vor.u32 %v4795_v31, %v3570_v30  ;;  %v3778_v30 = vld [vmem:[#allocation7 + $0x328] sm:$0xf] }
  0x64   :  { %1312 = vmatpush.bf16.msra.mxu2 %v3711_v49  ;;  %v3759_v41 = vor.u32 %v4840_v39, %v3756_v40  ;;  %v4863_v39 = vld [vmem:[#allocation7 + $0x3b4] sm:$0xf0]  ;;  %v3426_v40 = vld [vmem:[#allocation7 + $0x68] sm:$0xf] }
  0x65   :  { %1326 = vmatpush.bf16.msra.mxu3 %v3839_v51  ;;  %v3618_v51 = vld [vmem:[#allocation7 + $0x1e8] sm:$0xf]  ;;  %v4847_v31 = vld [vmem:[#allocation7 + $0x334] sm:$0xf0] }
  0x66   :  { %1285 = vmatpush.bf16.msra.mxu0 %v3439_v44  ;;  %v3619_v60 = vor.u32 %v4807_v52, %v3618_v51  ;;  %v4859_v51 = vld [vmem:[#allocation7 + $0x394] sm:$0xf0]  ;;  %v3410_v52 = vld [vmem:[#allocation7 + $0x48] sm:$0xf] }
  0x67   :  { %1299 = vmatpush.bf16.msra.mxu1 %v3567_v45 }
  0x68   :  { %1313 = vmatpush.bf16.msra.mxu2 %v3695_v61  ;;  %v3474_v61 = vld [vmem:[#allocation7 + $0xc8] sm:$0xf] }
  0x69   :  { %1327 = vmatpush.bf16.msra.mxu3 %v3823_v1  ;;  %v4803_v1 = vld [vmem:[#allocation7 + $0x1d4] sm:$0xf0] }
  0x6a   :  { %1286 = vmatpush.bf16.msra.mxu0 %v3423_v55  ;;  %v3603_v7 = vor.u32 %v4803_v1, %v3602_v0  ;;  %v3810_v0 = vld [vmem:[#allocation7 + $0x368] sm:$0xf]  ;;  %v4855_v1 = vld [vmem:[#allocation7 + $0x374] sm:$0xf0] }
  0x6b   :  { %1300 = vmatpush.bf16.msra.mxu1 %v3551_v57 }
  0x6c   :  { %1314 = vmatpush.bf16.msra.mxu2 %v3679_v9  ;;  %v3458_v9 = vld [vmem:[#allocation7 + $0xa8] sm:$0xf] }
  0x6d   :  { %1328 = vmatpush.bf16.msra.mxu3 %v3807_v11 }
  0x6e   :  { %1287 = vmatpush.bf16.msra.mxu0 %v3407_v2  ;;  %v3475_v2 = vor.u32 %v4771_v62, %v3474_v61 }
  0x6f   :  { %1301 = vmatpush.bf16.msra.mxu1 %v3535_v5  ;;  %v3874_v5 = vld [vmem:[#allocation7 + $0x3e8] sm:$0xf] }
  0x70   :  { %1315 = vmatpush.bf16.msra.mxu2 %v3663_v21  ;;  %v3875_v20 = vor.u32 %v4871_v8, %v3874_v5  ;;  %v3459_v21 = vor.u32 %v4767_v10, %v3458_v9  ;;  %v4783_v5 = vld [vmem:[#allocation7 + $0x134] sm:$0xf0]  ;;  %v3666_v8 = vld [vmem:[#allocation7 + $0x248] sm:$0xf] }
  0x71   :  { %1329 = vmatpush.bf16.msra.mxu3 %v3791_v23  ;;  %v4835_v23 = vld [vmem:[#allocation7 + $0x2d4] sm:$0xf0]  ;;  %v3794_v10 = vld [vmem:[#allocation7 + $0x348] sm:$0xf] }
  0x72   :  { %1288 = vmatpush.bf16.msra.mxu0 %v3391_v15  ;;  %v4799_v15 = vld [vmem:[#allocation7 + $0x1b4] sm:$0xf0]  ;;  %v3731_v32 = vor.u32 %v4835_v23, %v3730_v22  ;;  %v4805_v22 = vld [vmem:[#allocation7 + $0x1ec] sm:$0xf]  ;;  %v3620_v23 = vld [vmem:[#allocation7 + $0x1f8] sm:$0xf0] }
  0x73   :  { %1302 = vmatpush.bf16.msra.mxu1 %v3519_v17  ;;  %v3587_v26 = vor.u32 %v4799_v15, %v3586_v14  ;;  %v4819_v9 = vld [vmem:[#allocation7 + $0x254] sm:$0xf0]  ;;  %v3378_v14 = vld [vmem:[#allocation7 + $0x8] sm:$0xf] }
  0x74   :  { %1316 = vmatpush.bf16.msra.mxu2 %v3647_v34  ;;  %v4747_v15 = vld [vmem:[#allocation7 + $0x14] sm:$0xf0] }
  0x75   :  { %1330 = vmatpush.bf16.msra.mxu3 %v3775_v35  ;;  %v3714_v35 = vld [vmem:[#allocation7 + $0x2a8] sm:$0xf] }
  0x76   :  { %1289 = vmatpush.bf16.msra.mxu0 %v3375_v27  ;;  %v4867_v27 = vld [vmem:[#allocation7 + $0x3d4] sm:$0xf0] }
  0x77   :  { %1303 = vmatpush.bf16.msra.mxu1 %v3503_v29  ;;  %v4763_v29 = vld [vmem:[#allocation7 + $0x94] sm:$0xf0]  ;;  %v3859_v33 = vor.u32 %v4867_v27, %v3858_v24 }
  0x78   :  { %1317 = vmatpush.bf16.msra.mxu2 %v3631_v38  ;;  %v3443_v34 = vor.u32 %v4763_v29, %v3442_v28  ;;  %v3842_v38 = vld [vmem:[#allocation7 + $0x3a8] sm:$0xf]  ;;  %v4815_v27 = vld [vmem:[#allocation7 + $0x234] sm:$0xf0]  ;;  %v3379_v28 = vor.u32 %v4747_v15, %v3378_v14  ;;  %v4757_v14 = vld [vmem:[#allocation7 + $0x6c] sm:$0xf] }
  0x79   :  { %1331 = vmatpush.bf16.msra.mxu3 %v3759_v41  ;;  %v4759_v41 = vld [vmem:[#allocation7 + $0x74] sm:$0xf0]  ;;  %v3428_v15 = vld [vmem:[#allocation7 + $0x78] sm:$0xf0] }
  0x7a   :  { %v3427_v48 = vor.u32 %v4759_v41, %v3426_v40  ;;  %v3634_v40 = vld [vmem:[#allocation7 + $0x208] sm:$0xf]  ;;  %v4811_v41 = vld [vmem:[#allocation7 + $0x214] sm:$0xf0] }
  0x9f   :  { %v429_v42 = vpop.permute.xlu0 %428 }
  0xa7   :  { %v434_v45 = vpop.permute.xlu0 %433 }
  0xb6   :  { %v350_v43 = vpop.f32.mrf.mxu0 }
  0xb7   :  { %v364_v44 = vpop.f32.mrf.mxu1  ;;  %v436_v53 = vmul.f32 %v429_v42, %v350_v43  ;;  %v4791_v43 = vld [vmem:[#allocation7 + $0x174] sm:$0xf0] }
  0xb8   :  { %v437_v56 = vmul.f32 %v429_v42, %v364_v44  ;;  %v3715_v44 = vor.u32 %v4831_v36, %v3714_v35  ;;  %v3476_v36 = vld [vmem:[#allocation7 + $0xd8] sm:$0xf0] }
  0xbe   :  { %v378_v46 = vpop.f32.mrf.mxu2  ;;  %v352_v50 = vpop.f32.mrf.mxu0 }
  0xbf   :  { %v392_v49 = vpop.f32.mrf.mxu3  ;;  %v440_v54 = vmul.f32 %v434_v45, %v352_v50  ;;  %v366_v55 = vpop.f32.mrf.mxu1  ;;  %v438_v11 = vmul.f32 %v429_v42, %v378_v46  ;;  %v3698_v46 = vld [vmem:[#allocation7 + $0x288] sm:$0xf] }
  0xc0   :  { %v441_v57 = vmul.f32 %v434_v45, %v366_v55  ;;  %v439_v16 = vmul.f32 %v429_v42, %v392_v49  ;;  %v3554_v42 = vld [vmem:[#allocation7 + $0x168] sm:$0xf]  ;;  %v4787_v55 = vld [vmem:[#allocation7 + $0x154] sm:$0xf0] }
  0xc1   :  { %v5347_v59 = vpack.c.bf16 %v440_v54, %v436_v53  ;;  %v3555_v49 = vor.u32 %v4791_v43, %v3554_v42  ;;  %v3826_v50 = vld [vmem:[#allocation7 + $0x388] sm:$0xf]  ;;  %v4755_v53 = vld [vmem:[#allocation7 + $0x54] sm:$0xf0] }
  0xc2   :  { %v5349_v63 = vpack.c.bf16 %v441_v57, %v437_v56  ;;  %v3538_v54 = vld [vmem:[#allocation7 + $0x148] sm:$0xf]  ;;  %v3699_v56 = vor.u32 %v4827_v47, %v3698_v46  ;;  %v3827_v57 = vor.u32 %v4859_v51, %v3826_v50  ;;  %v3411_v61 = vor.u32 %v4755_v53, %v3410_v52  ;;  %v4843_v43 = vld [vmem:[#allocation7 + $0x314] sm:$0xf0]  ;;  %v4765_v50 = vld [vmem:[#allocation7 + $0xac] sm:$0xf] }
  0xc3   :  { %1234 = vmatmul.bf16.vlgmr.msrb.gmra.mxu0 %v5347_v59  ;;  %v3539_v62 = vor.u32 %v4787_v55, %v3538_v54  ;;  %v3762_v42 = vld [vmem:[#allocation7 + $0x308] sm:$0xf]  ;;  %v3635_v51 = vor.u32 %v4811_v41, %v3634_v40  ;;  %v3460_v52 = vld [vmem:[#allocation7 + $0xb8] sm:$0xf0]  ;;  %v4797_v53 = vld [vmem:[#allocation7 + $0x1ac] sm:$0xf] }
  0xc4   :  { %1248 = vmatmul.bf16.vlgmr.msrb.gmra.mxu1 %v5349_v63  ;;  %1338 = vmatpush.bf16.msrb.mxu0 %v3491_v58  ;;  %v3682_v58 = vld [vmem:[#allocation7 + $0x268] sm:$0xf]  ;;  %v3588_v54 = vld [vmem:[#allocation7 + $0x1b8] sm:$0xf0]  ;;  %v3763_v55 = vor.u32 %v4843_v43, %v3762_v42  ;;  %v4749_v40 = vld [vmem:[#allocation7 + $0x2c] sm:$0xf] }
  0xc5   :  { %1352 = vmatpush.bf16.msrb.mxu1 %v3619_v60  ;;  %v4823_v60 = vld [vmem:[#allocation7 + $0x274] sm:$0xf0]  ;;  %v3396_v41 = vld [vmem:[#allocation7 + $0x38] sm:$0xf0]  ;;  %v4781_v42 = vld [vmem:[#allocation7 + $0x12c] sm:$0xf] }
  0xc6   :  { %v380_v6 = vpop.f32.mrf.mxu2  ;;  %v3524_v43 = vld [vmem:[#allocation7 + $0x138] sm:$0xf0] }
  0xc7   :  { %v442_v12 = vmul.f32 %v434_v45, %v380_v6  ;;  %v394_v13 = vpop.f32.mrf.mxu3  ;;  %v3683_v6 = vor.u32 %v4823_v60, %v3682_v58  ;;  %v4833_v58 = vld [vmem:[#allocation7 + $0x2cc] sm:$0xf]  ;;  %v3732_v60 = vld [vmem:[#allocation7 + $0x2d8] sm:$0xf0] }
  0xc8   :  { %v443_v17 = vmul.f32 %v434_v45, %v394_v13  ;;  %1339 = vmatpush.bf16.msrb.mxu0 %v3475_v2  ;;  %v3843_v45 = vor.u32 %v4863_v39, %v3842_v38  ;;  %v3394_v2 = vld [vmem:[#allocation7 + $0x28] sm:$0xf]  ;;  %v4851_v13 = vld [vmem:[#allocation7 + $0x354] sm:$0xf0]  ;;  %v3604_v38 = vld [vmem:[#allocation7 + $0x1d8] sm:$0xf0]  ;;  %v3779_v39 = vor.u32 %v4847_v31, %v3778_v30 }
  0xc9   :  { %v5353_v19 = vpack.c.bf16 %v442_v12, %v438_v11  ;;  %1353 = vmatpush.bf16.msrb.mxu1 %v3603_v7  ;;  %v3811_v7 = vor.u32 %v4855_v1, %v3810_v0  ;;  %v3395_v11 = vor.u32 %v4751_v3, %v3394_v2  ;;  %v3523_v12 = vor.u32 %v4783_v5, %v3522_v4  ;;  %v4865_v0 = vld [vmem:[#allocation7 + $0x3cc] sm:$0xf]  ;;  %v3860_v1 = vld [vmem:[#allocation7 + $0x3d8] sm:$0xf0] }
  0xca   :  { %v5355_v25 = vpack.c.bf16 %v443_v17, %v439_v16  ;;  %v3506_v16 = vld [vmem:[#allocation7 + $0x108] sm:$0xf]  ;;  %v4779_v17 = vld [vmem:[#allocation7 + $0x114] sm:$0xf0]  ;;  %v3795_v24 = vor.u32 %v4851_v13, %v3794_v10  ;;  %v4761_v2 = vld [vmem:[#allocation7 + $0x8c] sm:$0xf] }
  0xcb   :  { %1262 = vmatmul.bf16.vlgmr.msrb.gmra.mxu2 %v5353_v19  ;;  %v3507_v29 = vor.u32 %v4779_v17, %v3506_v16  ;;  %v3444_v3 = vld [vmem:[#allocation7 + $0x98] sm:$0xf0]  ;;  %v4793_v4 = vld [vmem:[#allocation7 + $0x18c] sm:$0xf] }
  0xcc   :  { %1276 = vmatmul.bf16.vlgmr.msrb.gmra.mxu3 %v5355_v25  ;;  %1366 = vmatpush.bf16.msrb.mxu2 %v3747_v18  ;;  %v4773_v18 = vld [vmem:[#allocation7 + $0xec] sm:$0xf]  ;;  %v3572_v5 = vld [vmem:[#allocation7 + $0x198] sm:$0xf0]  ;;  %v3447_v10 = vor.u32 %v4761_v2, %v3444_v3 }
  0xcd   :  { %1380 = vmatpush.bf16.msrb.mxu3 %v3875_v20  ;;  %1340 = vmatpush.bf16.msrb.mxu0 %v3459_v21  ;;  %v3667_v20 = vor.u32 %v4819_v9, %v3666_v8  ;;  %v3492_v21 = vld [vmem:[#allocation7 + $0xf8] sm:$0xf0]  ;;  %v4829_v8 = vld [vmem:[#allocation7 + $0x2ac] sm:$0xf] }
  0xce   :  { %1354 = vmatpush.bf16.msrb.mxu1 %v3587_v26  ;;  %v3650_v26 = vld [vmem:[#allocation7 + $0x228] sm:$0xf]  ;;  %v3716_v9 = vld [vmem:[#allocation7 + $0x2b8] sm:$0xf0]  ;;  %v4789_v16 = vld [vmem:[#allocation7 + $0x16c] sm:$0xf] }
  0xcf   :  { %v3651_v35 = vor.u32 %v4815_v27, %v3650_v26  ;;  %v3844_v13 = vld [vmem:[#allocation7 + $0x3b8] sm:$0xf0]  ;;  %v4857_v26 = vld [vmem:[#allocation7 + $0x38c] sm:$0xf] }
  0xd0   :  { %1367 = vmatpush.bf16.msrb.mxu2 %v3731_v32  ;;  %v3495_v32 = vor.u32 %v4773_v18, %v3492_v21  ;;  %v3556_v17 = vld [vmem:[#allocation7 + $0x178] sm:$0xf0]  ;;  %v3719_v18 = vor.u32 %v4829_v8, %v3716_v9  ;;  %v4825_v21 = vld [vmem:[#allocation7 + $0x28c] sm:$0xf] }
  0xd1   :  { %1381 = vmatpush.bf16.msrb.mxu3 %v3859_v33  ;;  %1341 = vmatpush.bf16.msrb.mxu0 %v3443_v34  ;;  %v3623_v33 = vor.u32 %v4805_v22, %v3620_v23  ;;  %v4769_v34 = vld [vmem:[#allocation7 + $0xcc] sm:$0xf]  ;;  %v3700_v22 = vld [vmem:[#allocation7 + $0x298] sm:$0xf0]  ;;  %v3431_v23 = vor.u32 %v4757_v14, %v3428_v15 }
  0xd2   :  { %1355 = vmatpush.bf16.msrb.mxu1 %v3571_v37  ;;  %v4801_v37 = vld [vmem:[#allocation7 + $0x1cc] sm:$0xf]  ;;  %v3479_v46 = vor.u32 %v4769_v34, %v3476_v36  ;;  %v3828_v27 = vld [vmem:[#allocation7 + $0x398] sm:$0xf0] }
  0xd3   :  { %1290 = vmatmul.bf16.vlgmr.msra.gmra.mxu0 %v5347_v59  ;;  %v3607_v47 = vor.u32 %v4801_v37, %v3604_v38  ;;  %v4785_v30 = vld [vmem:[#allocation7 + $0x14c] sm:$0xf]  ;;  %v3540_v31 = vld [vmem:[#allocation7 + $0x158] sm:$0xf0] }
  0xd4   :  { %1368 = vmatpush.bf16.msrb.mxu2 %v3715_v44  ;;  %1304 = vmatmul.bf16.vlgmr.msra.gmra.mxu1 %v5349_v63  ;;  %v4837_v44 = vld [vmem:[#allocation7 + $0x2ec] sm:$0xf]  ;;  %v3543_v37 = vor.u32 %v4785_v30, %v3540_v31  ;;  %v3636_v15 = vld [vmem:[#allocation7 + $0x218] sm:$0xf0]  ;;  %v4890_v30 = vld [vmem:[#allocation9 + $0x8c] sm:$0xf0] }
  0xd5   :  { %1382 = vmatpush.bf16.msrb.mxu3 %v3843_v45  ;;  %1342 = vmatpush.bf16.msrb.mxu0 %v3427_v48  ;;  %v3748_v45 = vld [vmem:[#allocation7 + $0x2f8] sm:$0xf0]  ;;  %v4869_v48 = vld [vmem:[#allocation7 + $0x3ec] sm:$0xf] }
  0xd6   :  { %1356 = vmatpush.bf16.msrb.mxu1 %v3555_v49  ;;  %v3876_v49 = vld [vmem:[#allocation7 + $0x3f8] sm:$0xf0]  ;;  %v4821_v34 = vld [vmem:[#allocation7 + $0x26c] sm:$0xf] }
  0xd7   :  { %v4853_v38 = vld [vmem:[#allocation7 + $0x36c] sm:$0xf] }
  0xd8   :  { %1369 = vmatpush.bf16.msrb.mxu2 %v3699_v56  ;;  %v3751_v56 = vor.u32 %v4837_v44, %v3748_v45  ;;  %v4809_v14 = vld [vmem:[#allocation7 + $0x20c] sm:$0xf] }
  0xd9   :  { %1383 = vmatpush.bf16.msrb.mxu3 %v3827_v57  ;;  %1343 = vmatpush.bf16.msrb.mxu0 %v3411_v61  ;;  %v3879_v57 = vor.u32 %v4869_v48, %v3876_v49  ;;  %v3463_v61 = vor.u32 %v4765_v50, %v3460_v52  ;;  %v4849_v48 = vld [vmem:[#allocation7 + $0x34c] sm:$0xf]  ;;  %v3399_v49 = vor.u32 %v4749_v40, %v3396_v41  ;;  %v3898_v40 = vld [vmem:[#allocation9 + $0x20] sm:$0xf]  ;;  %v4878_v41 = vld [vmem:[#allocation9 + $0x2c] sm:$0xf0] }
  0xda   :  { %1357 = vmatpush.bf16.msrb.mxu1 %v3539_v62  ;;  %v3591_v62 = vor.u32 %v4797_v53, %v3588_v54  ;;  %v3527_v50 = vor.u32 %v4781_v42, %v3524_v43  ;;  %v4745_v52 = vld [vmem:[#allocation7 + $0xc] sm:$0xf]  ;;  %v3380_v53 = vld [vmem:[#allocation7 + $0x18] sm:$0xf0]  ;;  %v3899_v42 = vor.u32 %v4878_v41, %v3898_v40  ;;  %v4874_v43 = vld [vmem:[#allocation9 + $0xc] sm:$0xf0] }
  0xdb   :  { %1318 = vmatmul.bf16.vlgmr.msra.gmra.mxu2 %v5353_v19  ;;  %v4777_v54 = vld [vmem:[#allocation7 + $0x10c] sm:$0xf]  ;;  %v3383_v2 = vor.u32 %v4745_v52, %v3380_v53  ;;  %v4896_v52 = vld [vmem:[#allocation9 + $0xc4] sm:$0xf]  ;;  %v3980_v53 = vld [vmem:[#allocation9 + $0xd0] sm:$0xf0] }
  0xdc   :  { %1332 = vmatmul.bf16.vlgmr.msra.gmra.mxu3 %v5355_v25  ;;  %1370 = vmatpush.bf16.msrb.mxu2 %v3683_v6  ;;  %v3735_v6 = vor.u32 %v4833_v58, %v3732_v60  ;;  %v4902_v58 = vld [vmem:[#allocation9 + $0xec] sm:$0xf0]  ;;  %v4122_v60 = vld [vmem:[#allocation9 + $0x1e0] sm:$0xf]  ;;  %v4092_v40 = vld [vmem:[#allocation9 + $0x1b0] sm:$0xf0] }
  0xdd   :  { %1384 = vmatpush.bf16.msrb.mxu3 %v3811_v7  ;;  %1344 = vmatpush.bf16.msrb.mxu0 %v3395_v11  ;;  %v3863_v7 = vor.u32 %v4865_v0, %v3860_v1  ;;  %v3575_v11 = vor.u32 %v4793_v4, %v3572_v5  ;;  %v4813_v0 = vld [vmem:[#allocation7 + $0x22c] sm:$0xf]  ;;  %v3652_v1 = vld [vmem:[#allocation7 + $0x238] sm:$0xf0] }
  0xde   :  { %1358 = vmatpush.bf16.msrb.mxu1 %v3523_v12  ;;  %v4861_v12 = vld [vmem:[#allocation7 + $0x3ac] sm:$0xf]  ;;  %v3780_v5 = vld [vmem:[#allocation7 + $0x338] sm:$0xf0]  ;;  %v3655_v9 = vor.u32 %v4813_v0, %v3652_v1  ;;  %v4892_v0 = vld [vmem:[#allocation9 + $0xa4] sm:$0xf] }
  0xdf   :  { %v4845_v4 = vld [vmem:[#allocation7 + $0x32c] sm:$0xf]  ;;  %v3964_v1 = vld [vmem:[#allocation9 + $0xb0] sm:$0xf0] }
  0xe0   :  { %1371 = vmatpush.bf16.msrb.mxu2 %v3667_v20  ;;  %v3847_v20 = vor.u32 %v4861_v12, %v3844_v13  ;;  %v4930_v12 = vld [vmem:[#allocation9 + $0x1cc] sm:$0xf0]  ;;  %v3783_v13 = vor.u32 %v4845_v4, %v3780_v5  ;;  %v4218_v5 = vld [vmem:[#allocation9 + $0x2a0] sm:$0xf] }
  0xe1   :  { %1385 = vmatpush.bf16.msrb.mxu3 %v3795_v24  ;;  %1345 = vmatpush.bf16.msrb.mxu0 %v3379_v28  ;;  %v3559_v24 = vor.u32 %v4789_v16, %v3556_v17  ;;  %v4753_v28 = vld [vmem:[#allocation7 + $0x4c] sm:$0xf]  ;;  %v3764_v17 = vld [vmem:[#allocation7 + $0x318] sm:$0xf0]  ;;  %v4910_v4 = vld [vmem:[#allocation9 + $0x12c] sm:$0xf0] }
  0xe2   :  { %1359 = vmatpush.bf16.msrb.mxu1 %v3507_v29  ;;  %v3412_v29 = vld [vmem:[#allocation7 + $0x58] sm:$0xf0]  ;;  %v4841_v16 = vld [vmem:[#allocation7 + $0x30c] sm:$0xf] }
  0xe3   :  { %v3415_v36 = vor.u32 %v4753_v28, %v3412_v29  ;;  %v3946_v29 = vld [vmem:[#allocation9 + $0x80] sm:$0xf] }
  0xe4   :  { %1372 = vmatpush.bf16.msrb.mxu2 %v3651_v35  ;;  %1346 = vmatmul.bf16.vlgmr.msrb.gmra.mxu0 %v5347_v59  ;;  %v3684_v35 = vld [vmem:[#allocation7 + $0x278] sm:$0xf0] }
  0xe5   :  { %1394 = vmatpush.bf16.msra.mxu0 %v3495_v32  ;;  %1386 = vmatpush.bf16.msrb.mxu3 %v3779_v39  ;;  %v3703_v32 = vor.u32 %v4825_v21, %v3700_v22  ;;  %v3812_v39 = vld [vmem:[#allocation7 + $0x378] sm:$0xf0]  ;;  %v3687_v44 = vor.u32 %v4821_v34, %v3684_v35  ;;  %v3639_v21 = vor.u32 %v4809_v14, %v3636_v15  ;;  %v3962_v22 = vld [vmem:[#allocation9 + $0xa0] sm:$0xf]  ;;  %v4886_v35 = vld [vmem:[#allocation9 + $0x6c] sm:$0xf0] }
  0xe6   :  { %1408 = vmatpush.bf16.msra.mxu1 %v3623_v33  ;;  %v3831_v33 = vor.u32 %v4857_v26, %v3828_v27  ;;  %v3815_v45 = vor.u32 %v4853_v38, %v3812_v39  ;;  %v4090_v26 = vld [vmem:[#allocation9 + $0x1a0] sm:$0xf]  ;;  %v4926_v27 = vld [vmem:[#allocation9 + $0x1ac] sm:$0xf0]  ;;  %v3947_v34 = vor.u32 %v4890_v30, %v3946_v29  ;;  %v4880_v29 = vld [vmem:[#allocation9 + $0x44] sm:$0xf] }
  0xe7   :  { %1360 = vmatmul.bf16.vlgmr.msrb.gmra.mxu1 %v5349_v63  ;;  %v4091_v31 = vor.u32 %v4926_v27, %v4090_v26  ;;  %v4882_v38 = vld [vmem:[#allocation9 + $0x4c] sm:$0xf0]  ;;  %v4202_v14 = vld [vmem:[#allocation9 + $0x280] sm:$0xf]  ;;  %v3916_v30 = vld [vmem:[#allocation9 + $0x50] sm:$0xf0] }
  0xe8   :  { %1373 = vmatpush.bf16.msrb.mxu2 %v3635_v51  ;;  %v3796_v51 = vld [vmem:[#allocation7 + $0x358] sm:$0xf0]  ;;  %v4186_v26 = vld [vmem:[#allocation9 + $0x260] sm:$0xf]  ;;  %v4950_v27 = vld [vmem:[#allocation9 + $0x26c] sm:$0xf0] }
  0xe9   :  { %1395 = vmatpush.bf16.msra.mxu0 %v3479_v46  ;;  %1387 = vmatpush.bf16.msrb.mxu3 %v3763_v55  ;;  %v4817_v46 = vld [vmem:[#allocation7 + $0x24c] sm:$0xf]  ;;  %v3508_v55 = vld [vmem:[#allocation7 + $0x118] sm:$0xf0] }
  0xea   :  { %1409 = vmatpush.bf16.msra.mxu1 %v3607_v47  ;;  %v3668_v47 = vld [vmem:[#allocation7 + $0x258] sm:$0xf0]  ;;  %v3511_v3 = vor.u32 %v4777_v54, %v3508_v55  ;;  %v3983_v55 = vor.u32 %v4896_v52, %v3980_v53 }
  0xeb   :  { %1374 = vmatmul.bf16.vlgmr.msrb.gmra.mxu2 %v5353_v19 }
  0xec   :  { %1422 = vmatpush.bf16.msra.mxu2 %v3751_v56  ;;  %1388 = vmatmul.bf16.vlgmr.msrb.gmra.mxu3 %v5355_v25  ;;  %v3994_v56 = vld [vmem:[#allocation9 + $0xe0] sm:$0xf] }
  0xed   :  { %1436 = vmatpush.bf16.msra.mxu3 %v3879_v57  ;;  %1396 = vmatpush.bf16.msra.mxu0 %v3463_v61  ;;  %v3671_v57 = vor.u32 %v4817_v46, %v3668_v47  ;;  %v4934_v61 = vld [vmem:[#allocation9 + $0x1ec] sm:$0xf0]  ;;  %v4058_v47 = vld [vmem:[#allocation9 + $0x160] sm:$0xf] }
  0xee   :  { %1410 = vmatpush.bf16.msra.mxu1 %v3591_v62  ;;  %v3799_v62 = vor.u32 %v4849_v48, %v3796_v51  ;;  %v4123_v8 = vor.u32 %v4934_v61, %v4122_v60  ;;  %v4918_v48 = vld [vmem:[#allocation9 + $0x16c] sm:$0xf0] }
  0xef   :  { %v4966_v51 = vld [vmem:[#allocation9 + $0x2ec] sm:$0xf0] }
  0xf0   :  { %1423 = vmatpush.bf16.msra.mxu2 %v3735_v6  ;;  %v3995_v6 = vor.u32 %v4902_v58, %v3994_v56  ;;  %v4042_v56 = vld [vmem:[#allocation9 + $0x140] sm:$0xf]  ;;  %v4962_v61 = vld [vmem:[#allocation9 + $0x2cc] sm:$0xf0] }
  0xf1   :  { %1437 = vmatpush.bf16.msra.mxu3 %v3863_v7  ;;  %1397 = vmatpush.bf16.msra.mxu0 %v3447_v10  ;;  %v3978_v7 = vld [vmem:[#allocation9 + $0xc0] sm:$0xf]  ;;  %v4898_v10 = vld [vmem:[#allocation9 + $0xcc] sm:$0xf0] }
  0xf2   :  { %1411 = vmatpush.bf16.msra.mxu1 %v3575_v11  ;;  %v4106_v11 = vld [vmem:[#allocation9 + $0x1c0] sm:$0xf] }
  0xf3   :  { %v4234_v58 = vld [vmem:[#allocation9 + $0x2c0] sm:$0xf] }
  0xf4   :  { %1424 = vmatpush.bf16.msra.mxu2 %v3719_v18  ;;  %v3979_v18 = vor.u32 %v4898_v10, %v3978_v7  ;;  %v4958_v7 = vld [vmem:[#allocation9 + $0x2ac] sm:$0xf0] }
  0xf5   :  { %1438 = vmatpush.bf16.msra.mxu3 %v3847_v20  ;;  %1398 = vmatpush.bf16.msra.mxu0 %v3431_v23  ;;  %v4107_v20 = vor.u32 %v4930_v12, %v4106_v11  ;;  %v4894_v23 = vld [vmem:[#allocation9 + $0xac] sm:$0xf0]  ;;  %v4219_v10 = vor.u32 %v4958_v7, %v4218_v5  ;;  %v4010_v12 = vld [vmem:[#allocation9 + $0x100] sm:$0xf]  ;;  %v4912_v5 = vld [vmem:[#allocation9 + $0x144] sm:$0xf] }
  0xf6   :  { %1412 = vmatpush.bf16.msra.mxu1 %v3559_v24  ;;  %v3767_v24 = vor.u32 %v4841_v16, %v3764_v17  ;;  %v3963_v28 = vor.u32 %v4894_v23, %v3962_v22  ;;  %v4954_v16 = vld [vmem:[#allocation9 + $0x28c] sm:$0xf0]  ;;  %v4884_v17 = vld [vmem:[#allocation9 + $0x64] sm:$0xf]  ;;  %v4124_v23 = vld [vmem:[#allocation9 + $0x1f0] sm:$0xf0] }
  0xf7   :  { %v4932_v22 = vld [vmem:[#allocation9 + $0x1e4] sm:$0xf] }
  0xf8   :  { %1425 = vmatpush.bf16.msra.mxu2 %v3703_v32  ;;  %v4074_v32 = vld [vmem:[#allocation9 + $0x180] sm:$0xf]  ;;  %v4960_v7 = vld [vmem:[#allocation9 + $0x2c4] sm:$0xf] }
  0xf9   :  { %1439 = vmatpush.bf16.msra.mxu3 %v3831_v33  ;;  %1399 = vmatpush.bf16.msra.mxu0 %v3415_v36  ;;  %v4922_v33 = vld [vmem:[#allocation9 + $0x18c] sm:$0xf0] }
  0xfa   :  { %1413 = vmatpush.bf16.msra.mxu1 %v3543_v37  ;;  %v3914_v37 = vld [vmem:[#allocation9 + $0x40] sm:$0xf] }
  0xfb   :  { %v3915_v39 = vor.u32 %v4882_v38, %v3914_v37  ;;  %v3900_v37 = vld [vmem:[#allocation9 + $0x30] sm:$0xf0]  ;;  %v4924_v38 = vld [vmem:[#allocation9 + $0x1a4] sm:$0xf] }
  0xfc   :  { %1426 = vmatpush.bf16.msra.mxu2 %v3687_v44  ;;  %v4095_v41 = vor.u32 %v4924_v38, %v4092_v40 }
  0xfd   :  { %1440 = vmatpush.bf16.msra.mxu3 %v3815_v45  ;;  %1400 = vmatpush.bf16.msra.mxu0 %v3399_v49  ;;  %v3996_v45 = vld [vmem:[#allocation9 + $0xf0] sm:$0xf0]  ;;  %v4250_v49 = vld [vmem:[#allocation9 + $0x2e0] sm:$0xf] }
  0xfe   :  { %1414 = vmatpush.bf16.msra.mxu1 %v3527_v50  ;;  %v4059_v50 = vor.u32 %v4918_v48, %v4058_v47  ;;  %v4251_v54 = vor.u32 %v4966_v51, %v4250_v49  ;;  %v4076_v47 = vld [vmem:[#allocation9 + $0x190] sm:$0xf0]  ;;  %v4138_v49 = vld [vmem:[#allocation9 + $0x200] sm:$0xf] }
  0xff   :  { %v4378_v51 = vld [vmem:[#allocation9 + $0x3e0] sm:$0xf] }
 0x100   :  { %1427 = vmatpush.bf16.msra.mxu2 %v3671_v57  ;;  %v4914_v57 = vld [vmem:[#allocation9 + $0x14c] sm:$0xf0] }
 0x101   :  { %1441 = vmatpush.bf16.msra.mxu3 %v3799_v62  ;;  %1401 = vmatpush.bf16.msra.mxu0 %v3383_v2  ;;  %v4043_v60 = vor.u32 %v4914_v57, %v4042_v56  ;;  %v4235_v62 = vor.u32 %v4962_v61, %v4234_v58  ;;  %v3967_v2 = vor.u32 %v4892_v0, %v3964_v1  ;;  %v4060_v56 = vld [vmem:[#allocation9 + $0x170] sm:$0xf0]  ;;  %v5374_v1 = vld [vmem:[%s5517_s5] sm:$0xf] }
 0x102   :  { %1415 = vmatpush.bf16.msra.mxu1 %v3511_v3  ;;  %v4026_v3 = vld [vmem:[#allocation9 + $0x120] sm:$0xf]  ;;  %v4252_v61 = vld [vmem:[#allocation9 + $0x2f0] sm:$0xf0] }
 0x104   :  { %1428 = vmatpush.bf16.msra.mxu2 %v3655_v9  ;;  %1402 = vmatmul.bf16.vlgmr.msra.gmra.mxu0 %v5347_v59  ;;  %v3930_v59 = vld [vmem:[#allocation9 + $0x60] sm:$0xf]  ;;  %v3948_v9 = vld [vmem:[#allocation9 + $0x90] sm:$0xf0] }
 0x105   :  { %2240 = vmatpush.bf16.msrb.mxu0 %v3995_v6  ;;  %1442 = vmatpush.bf16.msra.mxu3 %v3783_v13  ;;  %v3931_v36 = vor.u32 %v4886_v35, %v3930_v59  ;;  %v4027_v6 = vor.u32 %v4910_v4, %v4026_v3  ;;  %v4906_v13 = vld [vmem:[#allocation9 + $0x10c] sm:$0xf0]  ;;  %v4170_v59 = vld [vmem:[#allocation9 + $0x240] sm:$0xf] }
 0x106   :  { %2254 = vmatpush.bf16.msrb.mxu1 %v4123_v8  ;;  %v4888_v8 = vld [vmem:[#allocation9 + $0x84] sm:$0xf]  ;;  %v4011_v15 = vor.u32 %v4906_v13, %v4010_v12  ;;  %v4946_v35 = vld [vmem:[#allocation9 + $0x24c] sm:$0xf0]  ;;  %v4346_v12 = vld [vmem:[#allocation9 + $0x3a0] sm:$0xf] }
 0x107   :  { %1416 = vmatmul.bf16.vlgmr.msra.gmra.mxu1 %v5349_v63  ;;  %v4075_v63 = vor.u32 %v4922_v33, %v4074_v32  ;;  %v3951_v11 = vor.u32 %v4888_v8, %v3948_v9  ;;  %v3919_v32 = vor.u32 %v4880_v29, %v3916_v30  ;;  %v4108_v33 = vld [vmem:[#allocation9 + $0x1d0] sm:$0xf0]  ;;  %v4994_v3 = vld [vmem:[#allocation9 + $0x3cc] sm:$0xf0]  ;;  %v4904_v29 = vld [vmem:[#allocation9 + $0x104] sm:$0xf] }
 0x108   :  { %1429 = vmatpush.bf16.msra.mxu2 %v3639_v21  ;;  %v4236_v9 = vld [vmem:[#allocation9 + $0x2d0] sm:$0xf0]  ;;  %v4990_v13 = vld [vmem:[#allocation9 + $0x3ac] sm:$0xf0] }
 0x109   :  { %2241 = vmatpush.bf16.msrb.mxu0 %v3979_v18  ;;  %1443 = vmatpush.bf16.msra.mxu3 %v3767_v24  ;;  %v3932_v18 = vld [vmem:[#allocation9 + $0x70] sm:$0xf0]  ;;  %v4127_v24 = vor.u32 %v4932_v22, %v4124_v23  ;;  %v4330_v23 = vld [vmem:[#allocation9 + $0x380] sm:$0xf] }
 0x10a   :  { %2255 = vmatpush.bf16.msrb.mxu1 %v4107_v20  ;;  %v4203_v20 = vor.u32 %v4954_v16, %v4202_v14  ;;  %v3935_v21 = vor.u32 %v4884_v17, %v3932_v18  ;;  %v4908_v16 = vld [vmem:[#allocation9 + $0x124] sm:$0xf]  ;;  %v4028_v17 = vld [vmem:[#allocation9 + $0x130] sm:$0xf0] }
 0x10b   :  { %1430 = vmatmul.bf16.vlgmr.msra.gmra.mxu2 %v5353_v19  ;;  %v3882_v19 = vld [vmem:[#allocation9] sm:$0xf]  ;;  %v4956_v18 = vld [vmem:[#allocation9 + $0x2a4] sm:$0xf]  ;;  %v4012_v30 = vld [vmem:[#allocation9 + $0x110] sm:$0xf0] }
 0x10c   :  { %1444 = vmatmul.bf16.vlgmr.msra.gmra.mxu3 %v5355_v25  ;;  %v3883_v44 = vor.u32 %v4874_v43, %v3882_v19  ;;  %v4900_v25 = vld [vmem:[#allocation9 + $0xe4] sm:$0xf]  ;;  %2268 = vmatpush.bf16.msrb.mxu2 %v4251_v54  ;;  %v4942_v19 = vld [vmem:[#allocation9 + $0x22c] sm:$0xf0] }
 0x10d   :  { %2242 = vmatpush.bf16.msrb.mxu0 %v3963_v28  ;;  %v3999_v46 = vor.u32 %v4900_v25, %v3996_v45  ;;  %v4187_v28 = vor.u32 %v4950_v27, %v4186_v26  ;;  %v3884_v25 = vld [vmem:[#allocation9 + $0x10] sm:$0xf0]  ;;  %v4920_v45 = vld [vmem:[#allocation9 + $0x184] sm:$0xf]  ;;  %v4998_v54 = vld [vmem:[#allocation9 + $0x3ec] sm:$0xf0] }
 0x10e   :  { %2256 = vmatpush.bf16.msrb.mxu1 %v4091_v31  ;;  %v4928_v31 = vld [vmem:[#allocation9 + $0x1c4] sm:$0xf]  ;;  %v4079_v48 = vor.u32 %v4920_v45, %v4076_v47  ;;  %v4379_v57 = vor.u32 %v4998_v54, %v4378_v51 }
 0x10f   :  { %v4944_v47 = vld [vmem:[#allocation9 + $0x244] sm:$0xf] }
 0x110   :  { %2269 = vmatpush.bf16.msrb.mxu2 %v4235_v62  ;;  %2282 = vmatpush.bf16.msrb.mxu3 %v4379_v57  ;;  %v4282_v57 = vld [vmem:[#allocation9 + $0x320] sm:$0xf] }
 0x111   :  { %2243 = vmatpush.bf16.msrb.mxu0 %v3947_v34  ;;  %v4111_v34 = vor.u32 %v4928_v31, %v4108_v33  ;;  %v4952_v31 = vld [vmem:[#allocation9 + $0x284] sm:$0xf]  ;;  %v4015_v33 = vor.u32 %v4904_v29, %v4012_v30  ;;  %v4895_v30 = vld [vmem:[#allocation9 + $0xb4] sm:$0xf0] }
 0x112   :  { %2257 = vmatpush.bf16.msrb.mxu1 %v4075_v63  ;;  %v4171_v63 = vor.u32 %v4946_v35, %v4170_v59 }
 0x114   :  { %2270 = vmatpush.bf16.msrb.mxu2 %v4219_v10  ;;  %v4239_v10 = vor.u32 %v4960_v7, %v4236_v9  ;;  %v3986_v7 = vld [vmem:[#allocation9 + $0xc8] sm:$0xf]  ;;  %v4899_v9 = vld [vmem:[#allocation9 + $0xd4] sm:$0xf0] }
 0x115   :  { %2244 = vmatpush.bf16.msrb.mxu0 %v3931_v36  ;;  %v4876_v36 = vld [vmem:[#allocation9 + $0x24] sm:$0xf] }
 0x116   :  { %2258 = vmatpush.bf16.msrb.mxu1 %v4059_v50  ;;  %v4938_v50 = vld [vmem:[#allocation9 + $0x20c] sm:$0xf0] }
 0x117   :  { %v4139_v53 = vor.u32 %v4938_v50, %v4138_v49 }
 0x118   :  { %2271 = vmatpush.bf16.msrb.mxu2 %v4203_v20  ;;  %v4031_v20 = vor.u32 %v4908_v16, %v4028_v17  ;;  %v4140_v16 = vld [vmem:[#allocation9 + $0x210] sm:$0xf0]  ;;  %v4996_v17 = vld [vmem:[#allocation9 + $0x3e4] sm:$0xf] }
 0x119   :  { %2245 = vmatpush.bf16.msrb.mxu0 %v3915_v39  ;;  %v3903_v39 = vor.u32 %v4876_v36, %v3900_v37  ;;  %v4982_v36 = vld [vmem:[#allocation9 + $0x36c] sm:$0xf0] }
 0x11a   :  { %2259 = vmatpush.bf16.msrb.mxu1 %v4043_v60  ;;  %v4964_v60 = vld [vmem:[#allocation9 + $0x2e4] sm:$0xf] }
 0x11b   :  { %v4255_v0 = vor.u32 %v4964_v60, %v4252_v61  ;;  %v4903_v61 = vld [vmem:[#allocation9 + $0xf4] sm:$0xf0] }
 0x11c   :  { %2272 = vmatpush.bf16.msrb.mxu2 %v4187_v28 }
 0x11d   :  { %2246 = vmatpush.bf16.msrb.mxu0 %v3899_v42  ;;  %v4154_v42 = vld [vmem:[#allocation9 + $0x220] sm:$0xf] }
 0x11e   :  { %2260 = vmatpush.bf16.msrb.mxu1 %v4027_v6  ;;  %v4155_v43 = vor.u32 %v4942_v19, %v4154_v42  ;;  %v4044_v6 = vld [vmem:[#allocation9 + $0x150] sm:$0xf0] }
 0x11f   :  { %v4047_v8 = vor.u32 %v4912_v5, %v4044_v6  ;;  %v4188_v42 = vld [vmem:[#allocation9 + $0x270] sm:$0xf0] }
 0x120   :  { %2273 = vmatpush.bf16.msrb.mxu2 %v4171_v63  ;;  %v4314_v63 = vld [vmem:[#allocation9 + $0x360] sm:$0xf] }
 0x121   :  { %2247 = vmatpush.bf16.msrb.mxu0 %v3883_v44  ;;  %v4872_v44 = vld [vmem:[#allocation9 + $0x4] sm:$0xf]  ;;  %v4315_v40 = vor.u32 %v4982_v36, %v4314_v63  ;;  %v3954_v63 = vld [vmem:[#allocation9 + $0x88] sm:$0xf] }
 0x122   :  { %2261 = vmatpush.bf16.msrb.mxu1 %v4011_v15  ;;  %v4347_v15 = vor.u32 %v4990_v13, %v4346_v12 }
 0x124   :  { %2274 = vmatpush.bf16.msrb.mxu2 %v4155_v43 }
 0x125   :  { %2296 = vmatpush.bf16.msra.mxu0 %v3999_v46  ;;  %v3887_v46 = vor.u32 %v4872_v44, %v3884_v25  ;;  %v4298_v44 = vld [vmem:[#allocation9 + $0x340] sm:$0xf]  ;;  %v4978_v25 = vld [vmem:[#allocation9 + $0x34c] sm:$0xf0] }
 0x126   :  { %2310 = vmatpush.bf16.msra.mxu1 %v4127_v24  ;;  %v4986_v24 = vld [vmem:[#allocation9 + $0x38c] sm:$0xf0] }
 0x127   :  { %v4331_v28 = vor.u32 %v4986_v24, %v4330_v23  ;;  %v3987_v24 = vor.u32 %v4899_v9, %v3986_v7 }
 0x128   :  { %2275 = vmatpush.bf16.msrb.mxu2 %v4139_v53 }
 0x129   :  { %2297 = vmatpush.bf16.msra.mxu0 %v3983_v55  ;;  %v4916_v55 = vld [vmem:[#allocation9 + $0x164] sm:$0xf] }
 0x12a   :  { %2311 = vmatpush.bf16.msra.mxu1 %v4111_v34  ;;  %v4063_v58 = vor.u32 %v4916_v55, %v4060_v56  ;;  %v4204_v34 = vld [vmem:[#allocation9 + $0x290] sm:$0xf0]  ;;  %v4002_v56 = vld [vmem:[#allocation9 + $0xe8] sm:$0xf] }
 0x12b   :  { %v4207_v35 = vor.u32 %v4952_v31, %v4204_v34  ;;  %v4992_v31 = vld [vmem:[#allocation9 + $0x3c4] sm:$0xf] }
 0x12c   :  { %2324 = vmatpush.bf16.msra.mxu2 %v4255_v0  ;;  %v4940_v0 = vld [vmem:[#allocation9 + $0x224] sm:$0xf] }
 0x12d   :  { %2298 = vmatpush.bf16.msra.mxu0 %v3967_v2  ;;  %v4362_v2 = vld [vmem:[#allocation9 + $0x3c0] sm:$0xf] }
 0x12e   :  { %2312 = vmatpush.bf16.msra.mxu1 %v4095_v41  ;;  %v4363_v4 = vor.u32 %v4994_v3, %v4362_v2  ;;  %v4948_v41 = vld [vmem:[#allocation9 + $0x264] sm:$0xf]  ;;  %v4156_v2 = vld [vmem:[#allocation9 + $0x230] sm:$0xf0] }
 0x12f   :  { %v4191_v19 = vor.u32 %v4948_v41, %v4188_v42 }
 0x130   :  { %2283 = vmatpush.bf16.msrb.mxu3 %v4363_v4  ;;  %2325 = vmatpush.bf16.msra.mxu2 %v4239_v10  ;;  %v4159_v4 = vor.u32 %v4940_v0, %v4156_v2  ;;  %v4266_v10 = vld [vmem:[#allocation9 + $0x300] sm:$0xf]  ;;  %v4931_v0 = vld [vmem:[#allocation9 + $0x1d4] sm:$0xf0]  ;;  %v4980_v2 = vld [vmem:[#allocation9 + $0x364] sm:$0xf] }
 0x131   :  { %2299 = vmatpush.bf16.msra.mxu0 %v3951_v11  ;;  %v578_v11 = vperm.slane %v5374_v1, 0 }
 0x132   :  { %2313 = vmatpush.bf16.msra.mxu1 %v4079_v48  ;;  %v4172_v48 = vld [vmem:[#allocation9 + $0x250] sm:$0xf0] }
 0x133   :  { %v4175_v50 = vor.u32 %v4944_v47, %v4172_v48  ;;  %v4935_v48 = vld [vmem:[#allocation9 + $0x1f4] sm:$0xf0] }
 0x134   :  { %2284 = vmatpush.bf16.msrb.mxu3 %v4347_v15  ;;  %v4936_v15 = vld [vmem:[#allocation9 + $0x204] sm:$0xf] }
 0x135   :  { %2300 = vmatpush.bf16.msra.mxu0 %v3935_v21  ;;  %v4220_v21 = vld [vmem:[#allocation9 + $0x2b0] sm:$0xf0] }
 0x136   :  { %2314 = vmatpush.bf16.msra.mxu1 %v4063_v58  ;;  %v4223_v22 = vor.u32 %v4956_v18, %v4220_v21  ;;  %v4974_v58 = vld [vmem:[#allocation9 + $0x32c] sm:$0xf0]  ;;  %v4380_v21 = vld [vmem:[#allocation9 + $0x3f0] sm:$0xf0] }
 0x137   :  { %v4383_v23 = vor.u32 %v4996_v17, %v4380_v21  ;;  %v4300_v17 = vld [vmem:[#allocation9 + $0x350] sm:$0xf0] }
 0x138   :  { %2326 = vmatpush.bf16.msra.mxu2 %v4223_v22  ;;  %2285 = vmatpush.bf16.msrb.mxu3 %v4331_v28 }
 0x139   :  { %2301 = vmatpush.bf16.msra.mxu0 %v3919_v32 }
 0x13a   :  { %2315 = vmatpush.bf16.msra.mxu1 %v4047_v8  ;;  %v4003_v8 = vor.u32 %v4903_v61, %v4002_v56  ;;  %v4114_v61 = vld [vmem:[#allocation9 + $0x1c8] sm:$0xf] }
 0x13c   :  { %2327 = vmatpush.bf16.msra.mxu2 %v4207_v35  ;;  %2286 = vmatpush.bf16.msrb.mxu3 %v4315_v40 }
 0x13d   :  { %2302 = vmatpush.bf16.msra.mxu0 %v3903_v39 }
 0x13e   :  { %2316 = vmatpush.bf16.msra.mxu1 %v4031_v20  ;;  %v4143_v20 = vor.u32 %v4936_v15, %v4140_v16  ;;  %v4927_v15 = vld [vmem:[#allocation9 + $0x1b4] sm:$0xf0]  ;;  %v4976_v16 = vld [vmem:[#allocation9 + $0x344] sm:$0xf] }
 0x13f   :  { %v4303_v21 = vor.u32 %v4976_v16, %v4300_v17  ;;  %v4018_v17 = vld [vmem:[#allocation9 + $0x108] sm:$0xf] }
 0x140   :  { %v1235_v52 = vpop.f32.mrf.mxu0  ;;  %2328 = vmatpush.bf16.msra.mxu2 %v4191_v19 }
 0x141   :  { %2303 = vmatpush.bf16.msra.mxu0 %v3887_v46  ;;  %v1249_v62 = vpop.f32.mrf.mxu1  ;;  %v1236_v26 = vadd.f32 %v1235_v52, %v578_v11  ;;  %v4299_v46 = vor.u32 %v4978_v25, %v4298_v44  ;;  %v579_v52 = vperm.slane %v5374_v1, 1  ;;  %v3938_v25 = vld [vmem:[#allocation9 + $0x68] sm:$0xf] }
 0x142   :  { %2317 = vmatpush.bf16.msra.mxu1 %v4015_v33 }
 0x143   :  { %v1250_v37 = vadd.f32 %v1249_v62, %v1236_v26  ;;  %2287 = vmatpush.bf16.msrb.mxu3 %v4299_v46  ;;  %v4283_v62 = vor.u32 %v4974_v58, %v4282_v57  ;;  %v3970_v26 = vld [vmem:[#allocation9 + $0xa8] sm:$0xf] }
 0x144   :  { %2329 = vmatpush.bf16.msra.mxu2 %v4175_v50  ;;  %v3971_v35 = vor.u32 %v4895_v30, %v3970_v26  ;;  %v4130_v46 = vld [vmem:[#allocation9 + $0x1e8] sm:$0xf]  ;;  %v4332_v50 = vld [vmem:[#allocation9 + $0x390] sm:$0xf0]  ;;  %v4923_v30 = vld [vmem:[#allocation9 + $0x194] sm:$0xf0] }
 0x145   :  { %v4131_v57 = vor.u32 %v4935_v48, %v4130_v46  ;;  %v3922_v58 = vld [vmem:[#allocation9 + $0x48] sm:$0xf]  ;;  %v4967_v46 = vld [vmem:[#allocation9 + $0x2f4] sm:$0xf0]  ;;  %v3988_v48 = vld [vmem:[#allocation9 + $0xd8] sm:$0xf0] }
 0x146   :  { %v3890_v26 = vld [vmem:[#allocation9 + $0x8] sm:$0xf] }
 0x147   :  { %2288 = vmatpush.bf16.msrb.mxu3 %v4283_v62 }
 0x148   :  { %v1237_v14 = vpop.f32.mrf.mxu0  ;;  %2330 = vmatpush.bf16.msra.mxu2 %v4159_v4 }
 0x149   :  { %v1251_v27 = vpop.f32.mrf.mxu1  ;;  %v1238_v38 = vadd.f32 %v1237_v14, %v578_v11  ;;  %v4970_v11 = vld [vmem:[#allocation9 + $0x30c] sm:$0xf0] }
 0x14a   :  { %v4267_v14 = vor.u32 %v4970_v11, %v4266_v10  ;;  %v4115_v10 = vor.u32 %v4931_v0, %v4114_v61  ;;  %v3906_v11 = vld [vmem:[#allocation9 + $0x28] sm:$0xf]  ;;  %v4893_v61 = vld [vmem:[#allocation9 + $0xac] sm:$0xf]  ;;  %v3972_v0 = vld [vmem:[#allocation9 + $0xb8] sm:$0xf0] }
 0x14b   :  { %v1252_v45 = vadd.f32 %v1251_v27, %v1238_v38  ;;  %v4988_v38 = vld [vmem:[#allocation9 + $0x3a4] sm:$0xf] }
 0x14c   :  { %2289 = vmatpush.bf16.msrb.mxu3 %v4267_v14  ;;  %2331 = vmatpush.bf16.msra.mxu2 %v4143_v20  ;;  %v4098_v14 = vld [vmem:[#allocation9 + $0x1a8] sm:$0xf] }
 0x14e   :  { %v1263_v32 = vpop.f32.mrf.mxu2 }
 0x14f   :  { %v1277_v59 = vpop.f32.mrf.mxu3  ;;  %v1264_v43 = vadd.f32 %v1263_v32, %v1250_v37  ;;  %v4364_v32 = vld [vmem:[#allocation9 + $0x3d0] sm:$0xf0]  ;;  %v4891_v37 = vld [vmem:[#allocation9 + $0x94] sm:$0xf0] }
 0x150   :  { %v1291_v39 = vpop.f32.mrf.mxu0  ;;  %2338 = vmatpush.bf16.msra.mxu3 %v4383_v23  ;;  %v4367_v33 = vor.u32 %v4992_v31, %v4364_v32  ;;  %v3955_v44 = vor.u32 %v4891_v37, %v3954_v63  ;;  %v4972_v31 = vld [vmem:[#allocation9 + $0x324] sm:$0xf]  ;;  %v4284_v32 = vld [vmem:[#allocation9 + $0x330] sm:$0xf0] }
 0x151   :  { %v1278_v51 = vadd.f32 %v1277_v59, %v1264_v43  ;;  %v1305_v53 = vpop.f32.mrf.mxu1  ;;  %v1292_v12 = vadd.f32 %v1291_v39, %v579_v52  ;;  %v4348_v39 = vld [vmem:[#allocation9 + $0x3b0] sm:$0xf0] }
 0x152   :  { %v4351_v41 = vor.u32 %v4988_v38, %v4348_v39 }
 0x153   :  { %v1450_v5 = vmax.f32 %v1278_v51, 0.0  ;;  %v1306_v27 = vadd.f32 %v1305_v53, %v1292_v12  ;;  %v580_v51 = vperm.slane %v5374_v1, 2  ;;  %v4879_v12 = vld [vmem:[#allocation9 + $0x34] sm:$0xf0] }
 0x154   :  { %2339 = vmatpush.bf16.msra.mxu3 %v4367_v33  ;;  %v3907_v23 = vor.u32 %v4879_v12, %v3906_v11  ;;  %v3956_v11 = vld [vmem:[#allocation9 + $0x98] sm:$0xf0]  ;;  %v581_v12 = vperm.slane %v5374_v1, 3 }
 0x156   :  { %v1265_v49 = vpop.f32.mrf.mxu2 }
 0x157   :  { %v1266_v54 = vadd.f32 %v1265_v49, %v1252_v45  ;;  %v1279_v55 = vpop.f32.mrf.mxu3  ;;  %v4887_v45 = vld [vmem:[#allocation9 + $0x74] sm:$0xf0]  ;;  %v4984_v49 = vld [vmem:[#allocation9 + $0x384] sm:$0xf] }
 0x158   :  { %v1293_v3 = vpop.f32.mrf.mxu0  ;;  %2340 = vmatpush.bf16.msra.mxu3 %v4351_v41  ;;  %v3939_v56 = vor.u32 %v4887_v45, %v3938_v25  ;;  %v4919_v41 = vld [vmem:[#allocation9 + $0x174] sm:$0xf0]  ;;  %v4268_v25 = vld [vmem:[#allocation9 + $0x310] sm:$0xf0] }
 0x159   :  { %v1280_v60 = vadd.f32 %v1279_v55, %v1266_v54  ;;  %v1294_v28 = vadd.f32 %v1293_v3, %v579_v52  ;;  %v1307_v29 = vpop.f32.mrf.mxu1  ;;  %v4335_v52 = vor.u32 %v4984_v49, %v4332_v50  ;;  %v4316_v3 = vld [vmem:[#allocation9 + $0x370] sm:$0xf0] }
 0x15b   :  { %v1454_v6 = vmax.f32 %v1280_v60, 0.0  ;;  %v1308_v36 = vadd.f32 %v1307_v29, %v1294_v28  ;;  %v4883_v60 = vld [vmem:[#allocation9 + $0x54] sm:$0xf0]  ;;  %v4082_v28 = vld [vmem:[#allocation9 + $0x188] sm:$0xf] }
 0x15c   :  { %2341 = vmatpush.bf16.msra.mxu3 %v4335_v52  ;;  %v3923_v9 = vor.u32 %v4883_v60, %v3922_v58  ;;  %v4083_v39 = vor.u32 %v4923_v30, %v4082_v28  ;;  %v4963_v60 = vld [vmem:[#allocation9 + $0x2d4] sm:$0xf0]  ;;  %v4194_v30 = vld [vmem:[#allocation9 + $0x268] sm:$0xf] }
 0x15d   :  { %v5378_v13 = vpack.c.bf16 %v1454_v6, %v1450_v5  ;;  %v4319_v6 = vor.u32 %v4980_v2, %v4316_v3 }
 0x15e   :  { %v1319_v18 = vpop.f32.mrf.mxu2 }
 0x15f   :  { %v1333_v22 = vpop.f32.mrf.mxu3  ;;  %2248 = vmatmul.bf16.vlgmr.msrb.gmra.mxu0 %v5378_v13  ;;  %v1320_v34 = vadd.f32 %v1319_v18, %v1306_v27  ;;  %v4875_v27 = vld [vmem:[#allocation9 + $0x14] sm:$0xf0] }
 0x160   :  { %2352 = vmatpush.bf16.msrb.mxu0 %v4003_v8  ;;  %2342 = vmatpush.bf16.msra.mxu3 %v4319_v6  ;;  %v4034_v6 = vld [vmem:[#allocation9 + $0x128] sm:$0xf] }
 0x161   :  { %v1347_v59 = vpop.f32.mrf.mxu0  ;;  %v1334_v42 = vadd.f32 %v1333_v22, %v1320_v34  ;;  %v4901_v34 = vld [vmem:[#allocation9 + $0xec] sm:$0xf] }
 0x162   :  { %v1348_v4 = vadd.f32 %v1347_v59, %v580_v51  ;;  %v4004_v59 = vld [vmem:[#allocation9 + $0xf8] sm:$0xf0] }
 0x163   :  { %v1451_v53 = vmax.f32 %v1334_v42, 0.0 }
 0x164   :  { %2353 = vmatpush.bf16.msrb.mxu0 %v3987_v24  ;;  %v1361_v54 = vpop.f32.mrf.mxu1  ;;  %v4099_v24 = vor.u32 %v4927_v15, %v4098_v14  ;;  %2343 = vmatpush.bf16.msra.mxu3 %v4303_v21  ;;  %v4955_v21 = vld [vmem:[#allocation9 + $0x294] sm:$0xf0] }
 0x165   :  { %v1362_v18 = vadd.f32 %v1361_v54, %v1348_v4 }
 0x166   :  { %v1321_v40 = vpop.f32.mrf.mxu2 }
 0x167   :  { %v1322_v19 = vadd.f32 %v1321_v40, %v1308_v36  ;;  %v1335_v43 = vpop.f32.mrf.mxu3  ;;  %v3891_v36 = vor.u32 %v4875_v27, %v3890_v26  ;;  %v4066_v40 = vld [vmem:[#allocation9 + $0x168] sm:$0xf]  ;;  %v4933_v26 = vld [vmem:[#allocation9 + $0x1ec] sm:$0xf]  ;;  %v4132_v27 = vld [vmem:[#allocation9 + $0x1f8] sm:$0xf0] }
 0x168   :  { %2354 = vmatpush.bf16.msrb.mxu0 %v3971_v35  ;;  %v4287_v35 = vor.u32 %v4972_v31, %v4284_v32  ;;  %v4067_v52 = vor.u32 %v4919_v41, %v4066_v40  ;;  %v4135_v32 = vor.u32 %v4933_v26, %v4132_v27  ;;  %v4178_v41 = vld [vmem:[#allocation9 + $0x248] sm:$0xf] }
 0x169   :  { %v1336_v47 = vadd.f32 %v1335_v43, %v1322_v19  ;;  %v1349_v5 = vpop.f32.mrf.mxu0  ;;  %v4007_v19 = vor.u32 %v4901_v34, %v4004_v59  ;;  %v4258_v43 = vld [vmem:[#allocation9 + $0x2e8] sm:$0xf]  ;;  %v4881_v34 = vld [vmem:[#allocation9 + $0x4c] sm:$0xf]  ;;  %v3924_v59 = vld [vmem:[#allocation9 + $0x58] sm:$0xf0] }
 0x16a   :  { %v1350_v20 = vadd.f32 %v1349_v5, %v580_v51  ;;  %2344 = vmatpush.bf16.msra.mxu3 %v4287_v35  ;;  %v3975_v5 = vor.u32 %v4893_v61, %v3972_v0  ;;  %v3927_v40 = vor.u32 %v4881_v34, %v3924_v59  ;;  %v4921_v61 = vld [vmem:[#allocation9 + $0x18c] sm:$0xf]  ;;  %v4084_v0 = vld [vmem:[#allocation9 + $0x198] sm:$0xf0]  ;;  %v4370_v27 = vld [vmem:[#allocation9 + $0x3c8] sm:$0xf] }
 0x16b   :  { %v1455_v55 = vmax.f32 %v1336_v47, 0.0  ;;  %v4897_v47 = vld [vmem:[#allocation9 + $0xcc] sm:$0xf]  ;;  %v4354_v59 = vld [vmem:[#allocation9 + $0x3a8] sm:$0xf] }
 0x16c   :  { %2355 = vmatpush.bf16.msrb.mxu0 %v3955_v44  ;;  %v1363_v29 = vpop.f32.mrf.mxu1  ;;  %v4968_v44 = vld [vmem:[#allocation9 + $0x304] sm:$0xf]  ;;  %v3991_v54 = vor.u32 %v4897_v47, %v3988_v48  ;;  %v4100_v47 = vld [vmem:[#allocation9 + $0x1b8] sm:$0xf0] }
 0x16d   :  { %v5382_v62 = vpack.c.bf16 %v1455_v55, %v1451_v53  ;;  %v1364_v33 = vadd.f32 %v1363_v29, %v1350_v20  ;;  %v4271_v49 = vor.u32 %v4968_v44, %v4268_v25  ;;  %v4259_v53 = vor.u32 %v4967_v46, %v4258_v43  ;;  %v4050_v55 = vld [vmem:[#allocation9 + $0x148] sm:$0xf]  ;;  %v4947_v44 = vld [vmem:[#allocation9 + $0x254] sm:$0xf0]  ;;  %v4877_v25 = vld [vmem:[#allocation9 + $0x2c] sm:$0xf] }
 0x16e   :  { %v1375_v7 = vpop.f32.mrf.mxu2  ;;  %v4210_v20 = vld [vmem:[#allocation9 + $0x288] sm:$0xf]  ;;  %v4925_v46 = vld [vmem:[#allocation9 + $0x1ac] sm:$0xf] }
 0x16f   :  { %v1389_v8 = vpop.f32.mrf.mxu3  ;;  %2262 = vmatmul.bf16.vlgmr.msrb.gmra.mxu1 %v5382_v62  ;;  %2304 = vmatmul.bf16.vlgmr.msra.gmra.mxu0 %v5378_v13  ;;  %v1376_v22 = vadd.f32 %v1375_v7, %v1362_v18  ;;  %v4911_v7 = vld [vmem:[#allocation9 + $0x134] sm:$0xf0]  ;;  %v4211_v1 = vor.u32 %v4955_v21, %v4210_v20 }
 0x170   :  { %2356 = vmatpush.bf16.msrb.mxu0 %v3939_v56  ;;  %2366 = vmatpush.bf16.msrb.mxu1 %v4131_v57  ;;  %v4915_v56 = vld [vmem:[#allocation9 + $0x154] sm:$0xf0]  ;;  %v4242_v57 = vld [vmem:[#allocation9 + $0x2c8] sm:$0xf]  ;;  %v4035_v14 = vor.u32 %v4911_v7, %v4034_v6 }
 0x171   :  { %v1390_v37 = vadd.f32 %v1389_v8, %v1376_v22  ;;  %2345 = vmatpush.bf16.msra.mxu3 %v4271_v49  ;;  %v4051_v2 = vor.u32 %v4915_v56, %v4050_v55  ;;  %v4243_v4 = vor.u32 %v4963_v60, %v4242_v57  ;;  %v4226_v8 = vld [vmem:[#allocation9 + $0x2a8] sm:$0xf]  ;;  %v4907_v18 = vld [vmem:[#allocation9 + $0x114] sm:$0xf0]  ;;  %v4885_v22 = vld [vmem:[#allocation9 + $0x6c] sm:$0xf] }
 0x172   :  { %v4019_v28 = vor.u32 %v4907_v18, %v4018_v17  ;;  %v4943_v55 = vld [vmem:[#allocation9 + $0x234] sm:$0xf0]  ;;  %v4873_v56 = vld [vmem:[#allocation9 + $0xc] sm:$0xf]  ;;  %v3892_v57 = vld [vmem:[#allocation9 + $0x18] sm:$0xf0] }
 0x173   :  { %v1452_v50 = vmax.f32 %v1390_v37, 0.0  ;;  %v4116_v37 = vld [vmem:[#allocation9 + $0x1d8] sm:$0xf0]  ;;  %v3895_v6 = vor.u32 %v4873_v56, %v3892_v57  ;;  %v4146_v7 = vld [vmem:[#allocation9 + $0x208] sm:$0xf] }
 0x174   :  { %2357 = vmatpush.bf16.msrb.mxu0 %v3923_v9  ;;  %2367 = vmatpush.bf16.msrb.mxu1 %v4115_v10  ;;  %v4959_v9 = vld [vmem:[#allocation9 + $0x2b4] sm:$0xf0]  ;;  %v4889_v10 = vld [vmem:[#allocation9 + $0x8c] sm:$0xf]  ;;  %v4260_v17 = vld [vmem:[#allocation9 + $0x2f8] sm:$0xf0] }
 0x175   :  { %v4227_v15 = vor.u32 %v4959_v9, %v4226_v8  ;;  %v3959_v16 = vor.u32 %v4889_v10, %v3956_v11  ;;  %v4939_v8 = vld [vmem:[#allocation9 + $0x214] sm:$0xf0]  ;;  %v4087_v10 = vor.u32 %v4921_v61, %v4084_v0  ;;  %v4386_v11 = vld [vmem:[#allocation9 + $0x3e8] sm:$0xf]  ;;  %v4945_v56 = vld [vmem:[#allocation9 + $0x24c] sm:$0xf] }
 0x176   :  { %v1377_v63 = vpop.f32.mrf.mxu2  ;;  %v4147_v21 = vor.u32 %v4939_v8, %v4146_v7  ;;  %v4180_v57 = vld [vmem:[#allocation9 + $0x258] sm:$0xf0]  ;;  %v4290_v0 = vld [vmem:[#allocation9 + $0x328] sm:$0xf]  ;;  %v4971_v8 = vld [vmem:[#allocation9 + $0x314] sm:$0xf0] }
 0x177   :  { %v1378_v38 = vadd.f32 %v1377_v63, %v1364_v33  ;;  %v1391_v42 = vpop.f32.mrf.mxu3  ;;  %v4951_v33 = vld [vmem:[#allocation9 + $0x274] sm:$0xf0]  ;;  %v4183_v61 = vor.u32 %v4945_v56, %v4180_v57  ;;  %v4274_v7 = vld [vmem:[#allocation9 + $0x308] sm:$0xf]  ;;  %v4402_v56 = vld [vmem:[#allocation10 + $0x10] sm:$0xf] }
 0x178   :  { %2358 = vmatpush.bf16.msrb.mxu0 %v3907_v23  ;;  %2368 = vmatpush.bf16.msrb.mxu1 %v4099_v24  ;;  %v3940_v23 = vld [vmem:[#allocation9 + $0x78] sm:$0xf0]  ;;  %v5003_v57 = vld [vmem:[#allocation10 + $0x14] sm:$0xf0] }
 0x179   :  { %v1392_v45 = vadd.f32 %v1391_v42, %v1378_v38  ;;  %v3943_v29 = vor.u32 %v4885_v22, %v3940_v23 }
 0x17b   :  { %v1456_v51 = vmax.f32 %v1392_v45, 0.0  ;;  %v3908_v45 = vld [vmem:[#allocation9 + $0x38] sm:$0xf0] }
 0x17c   :  { %2359 = vmatpush.bf16.msrb.mxu0 %v3891_v36  ;;  %2369 = vmatpush.bf16.msrb.mxu1 %v4083_v39  ;;  %v4929_v36 = vld [vmem:[#allocation9 + $0x1cc] sm:$0xf]  ;;  %v4195_v39 = vor.u32 %v4951_v33, %v4194_v30 }
 0x17d   :  { %v5386_v58 = vpack.c.bf16 %v1456_v51, %v1452_v50  ;;  %v4119_v43 = vor.u32 %v4929_v36, %v4116_v37  ;;  %v4179_v50 = vor.u32 %v4947_v44, %v4178_v41  ;;  %v3911_v51 = vor.u32 %v4877_v25, %v3908_v45  ;;  %v4961_v30 = vld [vmem:[#allocation9 + $0x2cc] sm:$0xf]  ;;  %v4036_v36 = vld [vmem:[#allocation9 + $0x138] sm:$0xf0]  ;;  %v4338_v41 = vld [vmem:[#allocation9 + $0x388] sm:$0xf] }
 0x17e   :  { %v4957_v37 = vld [vmem:[#allocation9 + $0x2ac] sm:$0xf]  ;;  %v4212_v25 = vld [vmem:[#allocation9 + $0x298] sm:$0xf0] }
 0x17f   :  { %2318 = vmatmul.bf16.vlgmr.msra.gmra.mxu1 %v5382_v62  ;;  %2360 = vmatmul.bf16.vlgmr.msrb.gmra.mxu0 %v5378_v13  ;;  %v4953_v44 = vld [vmem:[#allocation9 + $0x28c] sm:$0xf] }
 0x180   :  { %2408 = vmatpush.bf16.msra.mxu0 %v4007_v19  ;;  %2276 = vmatmul.bf16.vlgmr.msrb.gmra.mxu2 %v5386_v58 }
 0x181   :  { %2370 = vmatpush.bf16.msrb.mxu1 %v4067_v52  ;;  %v1403_v3 = vpop.f32.mrf.mxu0  ;;  %2380 = vmatpush.bf16.msrb.mxu2 %v4259_v53  ;;  %v4162_v52 = vld [vmem:[#allocation9 + $0x228] sm:$0xf] }
 0x182   :  { %v1404_v31 = vadd.f32 %v1403_v3, %v581_v12 }
 0x184   :  { %2409 = vmatpush.bf16.msra.mxu0 %v3991_v54  ;;  %v1417_v24 = vpop.f32.mrf.mxu1  ;;  %v4103_v54 = vor.u32 %v4925_v46, %v4100_v47  ;;  %v4215_v47 = vor.u32 %v4953_v44, %v4212_v25  ;;  %v5009_v44 = vld [vmem:[#allocation10 + $0x44] sm:$0xf0] }
 0x185   :  { %2371 = vmatpush.bf16.msrb.mxu1 %v4051_v2  ;;  %2381 = vmatpush.bf16.msrb.mxu2 %v4243_v4  ;;  %v1418_v42 = vadd.f32 %v1417_v24, %v1404_v31  ;;  %v4244_v31 = vld [vmem:[#allocation9 + $0x2d8] sm:$0xf0] }
 0x186   :  { %v4247_v34 = vor.u32 %v4961_v30, %v4244_v31  ;;  %v4977_v30 = vld [vmem:[#allocation9 + $0x34c] sm:$0xf]  ;;  %v4308_v31 = vld [vmem:[#allocation9 + $0x358] sm:$0xf0] }
 0x188   :  { %2410 = vmatpush.bf16.msra.mxu0 %v3975_v5  ;;  %v4163_v5 = vor.u32 %v4943_v55, %v4162_v52  ;;  %v4979_v55 = vld [vmem:[#allocation9 + $0x354] sm:$0xf0] }
 0x189   :  { %2372 = vmatpush.bf16.msrb.mxu1 %v4035_v14  ;;  %2382 = vmatpush.bf16.msrb.mxu2 %v4227_v15  ;;  %v1405_v35 = vpop.f32.mrf.mxu0  ;;  %v4917_v14 = vld [vmem:[#allocation9 + $0x16c] sm:$0xf]  ;;  %v4068_v15 = vld [vmem:[#allocation9 + $0x178] sm:$0xf0] }
 0x18a   :  { %v1406_v19 = vadd.f32 %v1405_v35, %v581_v12  ;;  %v4999_v12 = vld [vmem:[#allocation9 + $0x3f4] sm:$0xf0]  ;;  %v4071_v24 = vor.u32 %v4917_v14, %v4068_v15  ;;  %v4275_v14 = vor.u32 %v4971_v8, %v4274_v7  ;;  %v5025_v7 = vld [vmem:[#allocation10 + $0xc4] sm:$0xf0]  ;;  %v5014_v8 = vld [vmem:[#allocation10 + $0x74] sm:$0xf] }
 0x18b   :  { %v4387_v22 = vor.u32 %v4999_v12, %v4386_v11  ;;  %v4991_v35 = vld [vmem:[#allocation9 + $0x3b4] sm:$0xf0]  ;;  %v4997_v11 = vld [vmem:[#allocation9 + $0x3ec] sm:$0xf]  ;;  %v4388_v12 = vld [vmem:[#allocation9 + $0x3f8] sm:$0xf0] }
 0x18c   :  { %2411 = vmatpush.bf16.msra.mxu0 %v3959_v16  ;;  %v1419_v49 = vpop.f32.mrf.mxu1  ;;  %v4965_v16 = vld [vmem:[#allocation9 + $0x2ec] sm:$0xf]  ;;  %v4391_v15 = vor.u32 %v4997_v11, %v4388_v12  ;;  %v4482_v12 = vld [vmem:[#allocation10 + $0xb0] sm:$0xf] }
 0x18d   :  { %2373 = vmatpush.bf16.msrb.mxu1 %v4019_v28  ;;  %2383 = vmatpush.bf16.msrb.mxu2 %v4211_v1  ;;  %v1420_v53 = vadd.f32 %v1419_v49, %v1406_v19  ;;  %v4263_v26 = vor.u32 %v4965_v16, %v4260_v17  ;;  %v4995_v28 = vld [vmem:[#allocation9 + $0x3d4] sm:$0xf0]  ;;  %v4913_v1 = vld [vmem:[#allocation9 + $0x14c] sm:$0xf]  ;;  %v4372_v17 = vld [vmem:[#allocation9 + $0x3d8] sm:$0xf0] }
 0x18e   :  { %v1431_v63 = vpop.f32.mrf.mxu2  ;;  %v4905_v19 = vld [vmem:[#allocation9 + $0x10c] sm:$0xf]  ;;  %v4983_v49 = vld [vmem:[#allocation9 + $0x374] sm:$0xf0] }
 0x18f   :  { %v1445_v38 = vpop.f32.mrf.mxu3  ;;  %v1432_v48 = vadd.f32 %v1431_v63, %v1418_v42  ;;  %v4909_v63 = vld [vmem:[#allocation9 + $0x12c] sm:$0xf]  ;;  %v4987_v42 = vld [vmem:[#allocation9 + $0x394] sm:$0xf0] }
 0x190   :  { %2412 = vmatpush.bf16.msra.mxu0 %v3943_v29  ;;  %2374 = vmatmul.bf16.vlgmr.msrb.gmra.mxu1 %v5382_v62  ;;  %v4052_v29 = vld [vmem:[#allocation9 + $0x158] sm:$0xf0]  ;;  %v4339_v45 = vor.u32 %v4987_v42, %v4338_v41  ;;  %v4993_v16 = vld [vmem:[#allocation9 + $0x3cc] sm:$0xf]  ;;  %v4434_v41 = vld [vmem:[#allocation10 + $0x50] sm:$0xf] }
 0x191   :  { %2422 = vmatpush.bf16.msra.mxu1 %v4135_v32  ;;  %2332 = vmatmul.bf16.vlgmr.msra.gmra.mxu2 %v5386_v58  ;;  %v1446_v2 = vadd.f32 %v1445_v38, %v1432_v48  ;;  %v4371_v32 = vor.u32 %v4995_v28, %v4370_v27  ;;  %v4055_v33 = vor.u32 %v4913_v1, %v4052_v29  ;;  %v4228_v38 = vld [vmem:[#allocation9 + $0x2b8] sm:$0xf0]  ;;  %v4322_v48 = vld [vmem:[#allocation9 + $0x368] sm:$0xf]  ;;  %v4981_v28 = vld [vmem:[#allocation9 + $0x36c] sm:$0xf] }
 0x192   :  { %2384 = vmatpush.bf16.msrb.mxu2 %v4195_v39  ;;  %v4355_v39 = vor.u32 %v4991_v35, %v4354_v59  ;;  %v4323_v52 = vor.u32 %v4983_v49, %v4322_v48  ;;  %v4324_v1 = vld [vmem:[#allocation9 + $0x378] sm:$0xf0]  ;;  %v4969_v35 = vld [vmem:[#allocation9 + $0x30c] sm:$0xf]  ;;  %v5011_v42 = vld [vmem:[#allocation10 + $0x54] sm:$0xf0] }
 0x193   :  { %v1453_v18 = vmax.f32 %v1446_v2, 0.0  ;;  %v4975_v2 = vld [vmem:[#allocation9 + $0x334] sm:$0xf0]  ;;  %v4327_v29 = vor.u32 %v4981_v28, %v4324_v1  ;;  %v5045_v28 = vld [vmem:[#allocation10 + $0x164] sm:$0xf0] }
 0x194   :  { %2413 = vmatpush.bf16.msra.mxu0 %v3927_v40  ;;  %v4231_v40 = vor.u32 %v4957_v37, %v4228_v38  ;;  %v5015_v37 = vld [vmem:[#allocation10 + $0x74] sm:$0xf0]  ;;  %v5010_v1 = vld [vmem:[#allocation10 + $0x54] sm:$0xf] }
 0x195   :  { %2423 = vmatpush.bf16.msra.mxu1 %v4119_v43  ;;  %v4020_v43 = vld [vmem:[#allocation9 + $0x118] sm:$0xf0]  ;;  %v5031_v48 = vld [vmem:[#allocation10 + $0xf4] sm:$0xf0] }
 0x196   :  { %v1433_v60 = vpop.f32.mrf.mxu2  ;;  %2385 = vmatpush.bf16.msrb.mxu2 %v4179_v50  ;;  %v4023_v46 = vor.u32 %v4905_v19, %v4020_v43  ;;  %v4949_v50 = vld [vmem:[#allocation9 + $0x26c] sm:$0xf]  ;;  %v4435_v19 = vor.u32 %v5011_v42, %v4434_v41  ;;  %v4426_v43 = vld [vmem:[#allocation10 + $0x40] sm:$0xf]  ;;  %v5041_v42 = vld [vmem:[#allocation10 + $0x144] sm:$0xf0] }
 0x197   :  { %v1434_v3 = vadd.f32 %v1433_v60, %v1420_v53  ;;  %v1447_v4 = vpop.f32.mrf.mxu3  ;;  %v4427_v25 = vor.u32 %v5009_v44, %v4426_v43  ;;  %v4420_v43 = vld [vmem:[#allocation10 + $0x38] sm:$0xf0] }
 0x198   :  { %2414 = vmatpush.bf16.msra.mxu0 %v3911_v51  ;;  %v4196_v51 = vld [vmem:[#allocation9 + $0x278] sm:$0xf0] }
 0x199   :  { %v1448_v9 = vadd.f32 %v1447_v4, %v1434_v3  ;;  %2424 = vmatpush.bf16.msra.mxu1 %v4103_v54  ;;  %v4199_v53 = vor.u32 %v4949_v50, %v4196_v51  ;;  %v4306_v54 = vld [vmem:[#allocation9 + $0x348] sm:$0xf]  ;;  %v4941_v3 = vld [vmem:[#allocation9 + $0x22c] sm:$0xf]  ;;  %v4164_v4 = vld [vmem:[#allocation9 + $0x238] sm:$0xf0] }
 0x19a   :  { %2386 = vmatpush.bf16.msrb.mxu2 %v4163_v5  ;;  %v4307_v60 = vor.u32 %v4979_v55, %v4306_v54  ;;  %v4291_v5 = vor.u32 %v4975_v2, %v4290_v0  ;;  %v4410_v50 = vld [vmem:[#allocation10 + $0x20] sm:$0xf]  ;;  %v5005_v51 = vld [vmem:[#allocation10 + $0x24] sm:$0xf0]  ;;  %v5027_v0 = vld [vmem:[#allocation10 + $0xd4] sm:$0xf0] }
 0x19b   :  { %v1457_v20 = vmax.f32 %v1448_v9, 0.0  ;;  %v4937_v9 = vld [vmem:[#allocation9 + $0x20c] sm:$0xf]  ;;  %v5029_v54 = vld [vmem:[#allocation10 + $0xe4] sm:$0xf0] }
 0x19c   :  { %2415 = vmatpush.bf16.msra.mxu0 %v3895_v6  ;;  %v4167_v6 = vor.u32 %v4941_v3, %v4164_v4  ;;  %v4394_v3 = vld [vmem:[#allocation10] sm:$0xf]  ;;  %v5001_v4 = vld [vmem:[#allocation10 + $0x4] sm:$0xf0] }
 0x19d   :  { %v5394_v23 = vpack.c.bf16 %v1457_v20, %v1453_v18  ;;  %2425 = vmatpush.bf16.msra.mxu1 %v4087_v10  ;;  %v4148_v10 = vld [vmem:[#allocation9 + $0x218] sm:$0xf0]  ;;  %v4375_v18 = vor.u32 %v4993_v16, %v4372_v17  ;;  %v4989_v20 = vld [vmem:[#allocation9 + $0x3ac] sm:$0xf]  ;;  %v5047_v16 = vld [vmem:[#allocation10 + $0x174] sm:$0xf0] }
 0x19e   :  { %2387 = vmatpush.bf16.msrb.mxu2 %v4147_v21  ;;  %v4356_v21 = vld [vmem:[#allocation9 + $0x3b8] sm:$0xf0]  ;;  %v5012_v17 = vld [vmem:[#allocation10 + $0x64] sm:$0xf] }
 0x19f   :  { %2290 = vmatmul.bf16.vlgmr.msrb.gmra.mxu3 %v5394_v23  ;;  %2416 = vmatmul.bf16.vlgmr.msra.gmra.mxu0 %v5378_v13  ;;  %v4039_v13 = vor.u32 %v4909_v63, %v4036_v36  ;;  %v4450_v36 = vld [vmem:[#allocation10 + $0x70] sm:$0xf] }
 0x1a0   :  { %2394 = vmatpush.bf16.msrb.mxu3 %v4387_v22  ;;  %v4359_v22 = vor.u32 %v4989_v20, %v4356_v21  ;;  %v4451_v38 = vor.u32 %v5015_v37, %v4450_v36  ;;  %v4444_v20 = vld [vmem:[#allocation10 + $0x68] sm:$0xf0] }
 0x1a1   :  { %2426 = vmatpush.bf16.msra.mxu1 %v4071_v24  ;;  %2388 = vmatmul.bf16.vlgmr.msrb.gmra.mxu2 %v5386_v58  ;;  %v4985_v24 = vld [vmem:[#allocation9 + $0x38c] sm:$0xf]  ;;  %v4447_v21 = vor.u32 %v5012_v17, %v4444_v20 }
 0x1a2   :  { %2436 = vmatpush.bf16.msra.mxu2 %v4263_v26  ;;  %v4340_v26 = vld [vmem:[#allocation9 + $0x398] sm:$0xf0]  ;;  %2878 = vmatpush.bf16.msrb.mxu0 %v4451_v38  ;;  %v4428_v36 = vld [vmem:[#allocation10 + $0x48] sm:$0xf0]  ;;  %v4458_v38 = vld [vmem:[#allocation10 + $0x80] sm:$0xf] }
 0x1a3   :  { %v4343_v27 = vor.u32 %v4985_v24, %v4340_v26  ;;  %v5021_v24 = vld [vmem:[#allocation10 + $0xa4] sm:$0xf0]  ;;  %v4570_v26 = vld [vmem:[#allocation10 + $0x160] sm:$0xf] }
 0x1a4   :  { %2395 = vmatpush.bf16.msrb.mxu3 %v4371_v32  ;;  %v4311_v32 = vor.u32 %v4977_v30, %v4308_v31  ;;  %v4571_v30 = vor.u32 %v5045_v28, %v4570_v26  ;;  %v5033_v26 = vld [vmem:[#allocation10 + $0x104] sm:$0xf0] }
 0x1a5   :  { %2427 = vmatpush.bf16.msra.mxu1 %v4055_v33  ;;  %v4973_v33 = vld [vmem:[#allocation9 + $0x32c] sm:$0xf] }
 0x1a6   :  { %2437 = vmatpush.bf16.msra.mxu2 %v4247_v34  ;;  %v4292_v34 = vld [vmem:[#allocation9 + $0x338] sm:$0xf0] }
 0x1a7   :  { %v4295_v59 = vor.u32 %v4973_v33, %v4292_v34  ;;  %v5019_v33 = vld [vmem:[#allocation10 + $0x94] sm:$0xf0] }
 0x1a8   :  { %2396 = vmatpush.bf16.msrb.mxu3 %v4355_v39  ;;  %v4442_v39 = vld [vmem:[#allocation10 + $0x60] sm:$0xf] }
 0x1a9   :  { %2428 = vmatpush.bf16.msra.mxu1 %v4039_v13  ;;  %v5013_v13 = vld [vmem:[#allocation10 + $0x64] sm:$0xf0] }
 0x1aa   :  { %2438 = vmatpush.bf16.msra.mxu2 %v4231_v40  ;;  %v4443_v40 = vor.u32 %v5013_v13, %v4442_v39  ;;  %v5017_v39 = vld [vmem:[#allocation10 + $0x84] sm:$0xf0]  ;;  %v4554_v13 = vld [vmem:[#allocation10 + $0x140] sm:$0xf] }
 0x1ab   :  { %v4459_v41 = vor.u32 %v5017_v39, %v4458_v38  ;;  %v4555_v44 = vor.u32 %v5041_v42, %v4554_v13  ;;  %v5020_v13 = vld [vmem:[#allocation10 + $0xa4] sm:$0xf] }
 0x1ac   :  { %2397 = vmatpush.bf16.msrb.mxu3 %v4339_v45  ;;  %2879 = vmatpush.bf16.msrb.mxu0 %v4443_v40  ;;  %v4418_v45 = vld [vmem:[#allocation10 + $0x30] sm:$0xf]  ;;  %v5044_v42 = vld [vmem:[#allocation10 + $0x164] sm:$0xf] }
 0x1ad   :  { %2429 = vmatpush.bf16.msra.mxu1 %v4023_v46  ;;  %v5007_v46 = vld [vmem:[#allocation10 + $0x34] sm:$0xf0] }
 0x1ae   :  { %2439 = vmatpush.bf16.msra.mxu2 %v4215_v47  ;;  %v4514_v47 = vld [vmem:[#allocation10 + $0xf0] sm:$0xf] }
 0x1af   :  { %2346 = vmatmul.bf16.vlgmr.msra.gmra.mxu3 %v5394_v23  ;;  %v4515_v49 = vor.u32 %v5031_v48, %v4514_v47 }
 0x1b0   :  { %2398 = vmatpush.bf16.msrb.mxu3 %v4323_v52  ;;  %2430 = vmatmul.bf16.vlgmr.msra.gmra.mxu1 %v5382_v62  ;;  %v4151_v62 = vor.u32 %v4937_v9, %v4148_v10  ;;  %v4506_v52 = vld [vmem:[#allocation10 + $0xe0] sm:$0xf]  ;;  %v4452_v9 = vld [vmem:[#allocation10 + $0x78] sm:$0xf0] }
 0x1b1   :  { %2880 = vmatpush.bf16.msrb.mxu0 %v4435_v19  ;;  %2892 = vmatpush.bf16.msrb.mxu1 %v4515_v49  ;;  %v4507_v55 = vor.u32 %v5029_v54, %v4506_v52  ;;  %v4455_v11 = vor.u32 %v5014_v8, %v4452_v9  ;;  %v5006_v19 = vld [vmem:[#allocation10 + $0x34] sm:$0xf]  ;;  %v5039_v49 = vld [vmem:[#allocation10 + $0x134] sm:$0xf0]  ;;  %v5004_v52 = vld [vmem:[#allocation10 + $0x24] sm:$0xf] }
 0x1b2   :  { %2440 = vmatpush.bf16.msra.mxu2 %v4199_v53  ;;  %v4411_v53 = vor.u32 %v5005_v51, %v4410_v50  ;;  %v5028_v54 = vld [vmem:[#allocation10 + $0xe4] sm:$0xf]  ;;  %v5413_v9 = vld [vmem:[%s5519_s7] sm:$0xf] }
 0x1b3   :  { %v1592_v20 = vperm.slane %v5413_v9, 0 }
 0x1b4   :  { %2399 = vmatpush.bf16.msrb.mxu3 %v4307_v60  ;;  %v4498_v60 = vld [vmem:[#allocation10 + $0xd0] sm:$0xf] }
 0x1b5   :  { %2881 = vmatpush.bf16.msrb.mxu0 %v4427_v25  ;;  %2893 = vmatpush.bf16.msrb.mxu1 %v4507_v55  ;;  %v4499_v2 = vor.u32 %v5027_v0, %v4498_v60  ;;  %v4423_v25 = vor.u32 %v5006_v19, %v4420_v43  ;;  %v4538_v60 = vld [vmem:[#allocation10 + $0x120] sm:$0xf] }
 0x1b6   :  { %2441 = vmatpush.bf16.msra.mxu2 %v4183_v61  ;;  %v4403_v61 = vor.u32 %v5003_v57, %v4402_v56  ;;  %v4508_v56 = vld [vmem:[#allocation10 + $0xe8] sm:$0xf0] }
 0x1b7   :  { %v4511_v57 = vor.u32 %v5028_v54, %v4508_v56  ;;  %v5018_v54 = vld [vmem:[#allocation10 + $0x94] sm:$0xf] }
 0x1b8   :  { %2400 = vmatpush.bf16.msrb.mxu3 %v4291_v5  ;;  %v4490_v5 = vld [vmem:[#allocation10 + $0xc0] sm:$0xf]  ;;  %v5042_v56 = vld [vmem:[#allocation10 + $0x154] sm:$0xf] }
 0x1b9   :  { %2894 = vmatpush.bf16.msrb.mxu1 %v4499_v2  ;;  %v4491_v10 = vor.u32 %v5025_v7, %v4490_v5  ;;  %v5002_v2 = vld [vmem:[#allocation10 + $0x14] sm:$0xf] }
 0x1ba   :  { %2442 = vmatpush.bf16.msra.mxu2 %v4167_v6  ;;  %v4395_v6 = vor.u32 %v5001_v4, %v4394_v3  ;;  %v4404_v3 = vld [vmem:[#allocation10 + $0x18] sm:$0xf0]  ;;  %v5026_v4 = vld [vmem:[#allocation10 + $0xd4] sm:$0xf] }
 0x1bb   :  { %v4407_v5 = vor.u32 %v5002_v2, %v4404_v3  ;;  %v4564_v2 = vld [vmem:[#allocation10 + $0x158] sm:$0xf0] }
 0x1bc   :  { %2401 = vmatpush.bf16.msrb.mxu3 %v4275_v14  ;;  %v5023_v14 = vld [vmem:[#allocation10 + $0xb4] sm:$0xf0] }
 0x1bd   :  { %2895 = vmatpush.bf16.msrb.mxu1 %v4491_v10  ;;  %v4530_v10 = vld [vmem:[#allocation10 + $0x110] sm:$0xf] }
 0x1be   :  { %2443 = vmatpush.bf16.msra.mxu2 %v4151_v62  ;;  %v4483_v62 = vor.u32 %v5023_v14, %v4482_v12 }
 0x1bf   :  { %2402 = vmatmul.bf16.vlgmr.msrb.gmra.mxu3 %v5394_v23 }
 0x1c0   :  { %2450 = vmatpush.bf16.msra.mxu3 %v4391_v15  ;;  %v4578_v15 = vld [vmem:[#allocation10 + $0x170] sm:$0xf] }
 0x1c1   :  { %2444 = vmatmul.bf16.vlgmr.msra.gmra.mxu2 %v5386_v58  ;;  %v4276_v58 = vld [vmem:[#allocation9 + $0x318] sm:$0xf0]  ;;  %2896 = vmatpush.bf16.msrb.mxu1 %v4483_v62  ;;  %v5000_v62 = vld [vmem:[#allocation10 + $0x4] sm:$0xf] }
 0x1c2   :  { %v4279_v63 = vor.u32 %v4969_v35, %v4276_v58  ;;  %v5043_v35 = vld [vmem:[#allocation10 + $0x154] sm:$0xf0]  ;;  %v5008_v58 = vld [vmem:[#allocation10 + $0x44] sm:$0xf] }
 0x1c3   :  { %v4431_v37 = vor.u32 %v5008_v58, %v4428_v36  ;;  %v4634_v36 = vld [vmem:[#allocation10 + $0x1e0] sm:$0xf] }
 0x1c4   :  { %2451 = vmatpush.bf16.msra.mxu3 %v4375_v18  ;;  %v4579_v18 = vor.u32 %v5047_v16, %v4578_v15  ;;  %v4396_v15 = vld [vmem:[#allocation10 + $0x8] sm:$0xf0]  ;;  %v5024_v16 = vld [vmem:[#allocation10 + $0xc4] sm:$0xf] }
 0x1c5   :  { %v4399_v17 = vor.u32 %v5000_v62, %v4396_v15  ;;  %v4556_v15 = vld [vmem:[#allocation10 + $0x148] sm:$0xf0] }
 0x1c6   :  { %2906 = vmatpush.bf16.msrb.mxu2 %v4579_v18  ;;  %v4492_v18 = vld [vmem:[#allocation10 + $0xc8] sm:$0xf0] }
 0x1c8   :  { %2452 = vmatpush.bf16.msra.mxu3 %v4359_v22  ;;  %v4474_v22 = vld [vmem:[#allocation10 + $0xa0] sm:$0xf] }
 0x1ca   :  { %2907 = vmatpush.bf16.msrb.mxu2 %v4571_v30  ;;  %v4484_v30 = vld [vmem:[#allocation10 + $0xb8] sm:$0xf0] }
 0x1cc   :  { %2453 = vmatpush.bf16.msra.mxu3 %v4343_v27  ;;  %v4475_v27 = vor.u32 %v5021_v24, %v4474_v22  ;;  %v4495_v22 = vor.u32 %v5024_v16, %v4492_v18  ;;  %v4522_v24 = vld [vmem:[#allocation10 + $0x100] sm:$0xf]  ;;  %v1593_v18 = vperm.slane %v5413_v9, 1 }
 0x1cd   :  { %v4523_v28 = vor.u32 %v5033_v26, %v4522_v24 }
 0x1ce   :  { %2897 = vmatpush.bf16.msrb.mxu1 %v4475_v27  ;;  %v4642_v27 = vld [vmem:[#allocation10 + $0x1f0] sm:$0xf] }
 0x1d0   :  { %2454 = vmatpush.bf16.msra.mxu3 %v4327_v29  ;;  %v4436_v29 = vld [vmem:[#allocation10 + $0x58] sm:$0xf0] }
 0x1d1   :  { %v4439_v31 = vor.u32 %v5010_v1, %v4436_v29  ;;  %v5063_v1 = vld [vmem:[#allocation10 + $0x1f4] sm:$0xf0]  ;;  %v5022_v29 = vld [vmem:[#allocation10 + $0xb4] sm:$0xf] }
 0x1d4   :  { %2455 = vmatpush.bf16.msra.mxu3 %v4311_v32  ;;  %v4466_v32 = vld [vmem:[#allocation10 + $0x90] sm:$0xf] }
 0x1d5   :  { %v4467_v34 = vor.u32 %v5019_v33, %v4466_v32  ;;  %v4487_v32 = vor.u32 %v5022_v29, %v4484_v30  ;;  %v5046_v33 = vld [vmem:[#allocation10 + $0x174] sm:$0xf]  ;;  %v4602_v29 = vld [vmem:[#allocation10 + $0x1a0] sm:$0xf]  ;;  %v5053_v30 = vld [vmem:[#allocation10 + $0x1a4] sm:$0xf0] }
 0x1d7   :  { %2898 = vmatpush.bf16.msrb.mxu1 %v4467_v34  ;;  %v4580_v34 = vld [vmem:[#allocation10 + $0x178] sm:$0xf0] }
 0x1d8   :  { %2456 = vmatpush.bf16.msra.mxu3 %v4295_v59  ;;  %v4562_v59 = vld [vmem:[#allocation10 + $0x150] sm:$0xf] }
 0x1db   :  { %2899 = vmatpush.bf16.msrb.mxu1 %v4459_v41  ;;  %v4476_v41 = vld [vmem:[#allocation10 + $0xa8] sm:$0xf0] }
 0x1dc   :  { %2457 = vmatpush.bf16.msra.mxu3 %v4279_v63  ;;  %v4563_v63 = vor.u32 %v5043_v35, %v4562_v59  ;;  %v5404_v40 = vpop.f32.mrf.mxu0  ;;  %v4583_v35 = vor.u32 %v5046_v33, %v4580_v34  ;;  %v4479_v43 = vor.u32 %v5020_v13, %v4476_v41  ;;  %v4540_v34 = vld [vmem:[#allocation10 + $0x128] sm:$0xf0]  ;;  %v5034_v41 = vld [vmem:[#allocation10 + $0x114] sm:$0xf] }
 0x1dd   :  { %v2250_v58 = vadd.f32 %v5404_v40, %v1592_v20 }
 0x1de   :  { %2908 = vmatpush.bf16.msrb.mxu2 %v4563_v63  ;;  %v5420_v63 = vld [vmem:[%s5514_s2] sm:$0xff] }
 0x1df   :  { %2458 = vmatmul.bf16.vlgmr.msra.gmra.mxu3 %v5394_v23  ;;  %v4419_v23 = vor.u32 %v5007_v46, %v4418_v45  ;;  %v5030_v45 = vld [vmem:[#allocation10 + $0xf4] sm:$0xf]  ;;  %v4516_v46 = vld [vmem:[#allocation10 + $0xf8] sm:$0xf0] }
 0x1e0   :  { %v4519_v48 = vor.u32 %v5030_v45, %v4516_v46  ;;  %v5059_v45 = vld [vmem:[#allocation10 + $0x1d4] sm:$0xf0] }
 0x1e1   :  { %2882 = vmatpush.bf16.msrb.mxu0 %v4419_v23  ;;  %v4546_v23 = vld [vmem:[#allocation10 + $0x130] sm:$0xf] }
 0x1e2   :  { %2909 = vmatpush.bf16.msrb.mxu2 %v4555_v44  ;;  %2948 = vmatpush.bf16.msra.mxu1 %v4519_v48  ;;  %v4547_v51 = vor.u32 %v5039_v49, %v4546_v23  ;;  %v4572_v44 = vld [vmem:[#allocation10 + $0x168] sm:$0xf0] }
 0x1e3   :  { %v5430_v48 = vld [vmem:[%s5514_s2 + $0x10] sm:$0xff]  ;;  %v4575_v23 = vor.u32 %v5044_v42, %v4572_v44  ;;  %v4532_v42 = vld [vmem:[#allocation10 + $0x118] sm:$0xf0] }
 0x1e4   :  { %v2251_v7 = vpop.f32.mrf.mxu0 }
 0x1e5   :  { %2883 = vmatpush.bf16.msrb.mxu0 %v4411_v53  ;;  %v4412_v53 = vld [vmem:[#allocation10 + $0x28] sm:$0xf0]  ;;  %v2252_v19 = vadd.f32 %v2251_v7, %v1592_v20 }
 0x1e6   :  { %v4415_v55 = vor.u32 %v5004_v52, %v4412_v53  ;;  %2910 = vmatpush.bf16.msrb.mxu2 %v4547_v51  ;;  %2949 = vmatpush.bf16.msra.mxu1 %v4511_v57 }
 0x1e9   :  { %2884 = vmatpush.bf16.msrb.mxu0 %v4403_v61  ;;  %v5037_v61 = vld [vmem:[#allocation10 + $0x124] sm:$0xf0] }
 0x1ea   :  { %v4539_v0 = vor.u32 %v5037_v61, %v4538_v60  ;;  %v2472_v61 = vunpack.c.l.bf16 %v5430_v48 }
 0x1ec   :  { %v5406_v47 = vpop.f32.mrf.mxu1  ;;  %2911 = vmatpush.bf16.msrb.mxu2 %v4539_v0  ;;  %v5422_v38 = vpop.f32.mrf.mxu0 }
 0x1ed   :  { %2885 = vmatpush.bf16.msrb.mxu0 %v4395_v6  ;;  %v4500_v6 = vld [vmem:[#allocation10 + $0xd8] sm:$0xf0]  ;;  %v2264_v40 = vadd.f32 %v5406_v47, %v2250_v58  ;;  %v2468_v47 = vunpack.c.l.bf16 %v5420_v63 }
 0x1ee   :  { %v4503_v8 = vor.u32 %v5026_v4, %v4500_v6  ;;  %v4567_v4 = vor.u32 %v5042_v56, %v4564_v2  ;;  %v5057_v6 = vld [vmem:[#allocation10 + $0x1c4] sm:$0xf0] }
 0x1f0   :  { %2950 = vmatpush.bf16.msra.mxu1 %v4503_v8  ;;  %v5016_v8 = vld [vmem:[#allocation10 + $0x84] sm:$0xf] }
 0x1f1   :  { %2934 = vmatpush.bf16.msra.mxu0 %v4455_v11  ;;  %v5035_v11 = vld [vmem:[#allocation10 + $0x114] sm:$0xf0] }
 0x1f2   :  { %v4531_v14 = vor.u32 %v5035_v11, %v4530_v10  ;;  %v4460_v10 = vld [vmem:[#allocation10 + $0x88] sm:$0xf0]  ;;  %v5040_v11 = vld [vmem:[#allocation10 + $0x144] sm:$0xf] }
 0x1f3   :  { %v4463_v62 = vor.u32 %v5016_v8, %v4460_v10 }
 0x1f4   :  { %v2265_v12 = vpop.f32.mrf.mxu1  ;;  %2912 = vmatpush.bf16.msrb.mxu2 %v4531_v14  ;;  %2951 = vmatpush.bf16.msra.mxu1 %v4495_v22  ;;  %v2307_v16 = vpop.f32.mrf.mxu0  ;;  %v5055_v22 = vld [vmem:[#allocation10 + $0x1b4] sm:$0xf0] }
 0x1f5   :  { %2935 = vmatpush.bf16.msra.mxu0 %v4447_v21  ;;  %v2266_v49 = vadd.f32 %v2265_v12, %v2252_v19 }
 0x1f8   :  { %2913 = vmatpush.bf16.msrb.mxu2 %v4523_v28  ;;  %2952 = vmatpush.bf16.msra.mxu1 %v4487_v32  ;;  %v4548_v28 = vld [vmem:[#allocation10 + $0x138] sm:$0xf0] }
 0x1f9   :  { %2936 = vmatpush.bf16.msra.mxu0 %v4439_v31  ;;  %v4643_v31 = vor.u32 %v5063_v1, %v4642_v27  ;;  %v5038_v27 = vld [vmem:[#allocation10 + $0x134] sm:$0xf] }
 0x1fa   :  { %v4551_v1 = vor.u32 %v5038_v27, %v4548_v28  ;;  %v4620_v27 = vld [vmem:[#allocation10 + $0x1c8] sm:$0xf0] }
 0x1fb   :  { %2920 = vmatpush.bf16.msrb.mxu3 %v4643_v31  ;;  %v5036_v31 = vld [vmem:[#allocation10 + $0x124] sm:$0xf] }
 0x1fc   :  { %2962 = vmatpush.bf16.msra.mxu2 %v4583_v35  ;;  %v5425_v46 = vpop.f32.mrf.mxu1  ;;  %2953 = vmatpush.bf16.msra.mxu1 %v4479_v43  ;;  %v4603_v35 = vor.u32 %v5053_v30, %v4602_v29  ;;  %v4543_v58 = vor.u32 %v5036_v31, %v4540_v34  ;;  %v2361_v44 = vpop.f32.mrf.mxu0  ;;  %v4612_v34 = vld [vmem:[#allocation10 + $0x1b8] sm:$0xf0] }
 0x1fd   :  { %2937 = vmatpush.bf16.msra.mxu0 %v4431_v37  ;;  %v5061_v37 = vld [vmem:[#allocation10 + $0x1e4] sm:$0xf0] }
 0x1fe   :  { %v4635_v39 = vor.u32 %v5061_v37, %v4634_v36  ;;  %v4594_v36 = vld [vmem:[#allocation10 + $0x190] sm:$0xf]  ;;  %v5051_v37 = vld [vmem:[#allocation10 + $0x194] sm:$0xf0] }
 0x1ff   :  { %v4595_v43 = vor.u32 %v5051_v37, %v4594_v36  ;;  %v5052_v36 = vld [vmem:[#allocation10 + $0x1a4] sm:$0xf]  ;;  %v4604_v37 = vld [vmem:[#allocation10 + $0x1a8] sm:$0xf0] }
 0x200   :  { %2921 = vmatpush.bf16.msrb.mxu3 %v4635_v39  ;;  %2963 = vmatpush.bf16.msra.mxu2 %v4575_v23  ;;  %v2308_v39 = vadd.f32 %v2307_v16, %v1593_v18  ;;  %v2465_v16 = vld [vmem:[%s5514_s2 + $0x8] sm:$0xff] }
 0x201   :  { %2938 = vmatpush.bf16.msra.mxu0 %v4423_v25  ;;  %v4626_v25 = vld [vmem:[#allocation10 + $0x1d0] sm:$0xf] }
 0x202   :  { %v4627_v52 = vor.u32 %v5059_v45, %v4626_v25  ;;  %v4535_v25 = vor.u32 %v5034_v41, %v4532_v42  ;;  %v4586_v45 = vld [vmem:[#allocation10 + $0x180] sm:$0xf]  ;;  %v5050_v41 = vld [vmem:[#allocation10 + $0x194] sm:$0xf]  ;;  %v4596_v42 = vld [vmem:[#allocation10 + $0x198] sm:$0xf0] }
 0x203   :  { %v5408_v50 = vpop.f32.mrf.mxu2 }
 0x204   :  { %v2278_v51 = vadd.f32 %v5408_v50, %v2264_v40  ;;  %2922 = vmatpush.bf16.msrb.mxu3 %v4627_v52  ;;  %v4618_v50 = vld [vmem:[#allocation10 + $0x1c0] sm:$0xf]  ;;  %2964 = vmatpush.bf16.msra.mxu2 %v4567_v4  ;;  %v2321_v24 = vpop.f32.mrf.mxu1  ;;  %v2473_v52 = vunpack.c.h.bf16 %v5430_v48  ;;  %v5060_v48 = vld [vmem:[#allocation10 + $0x1e4] sm:$0xf] }
 0x205   :  { %2939 = vmatpush.bf16.msra.mxu0 %v4415_v55  ;;  %v4468_v55 = vld [vmem:[#allocation10 + $0x98] sm:$0xf0]  ;;  %v4619_v7 = vor.u32 %v5057_v6, %v4618_v50  ;;  %v2322_v19 = vadd.f32 %v2321_v24, %v2308_v39  ;;  %v4636_v50 = vld [vmem:[#allocation10 + $0x1e8] sm:$0xf0]  ;;  %v2470_v24 = vunpack.c.l.bf16 %v2465_v16 }
 0x206   :  { %v4471_v0 = vor.u32 %v5018_v54, %v4468_v55  ;;  %v4639_v6 = vor.u32 %v5060_v48, %v4636_v50  ;;  %v5070_v48 = vld [vmem:[%s5522_s10 + $0x30] sm:$0xff]  ;;  %v5069_v50 = vld [vmem:[%s5522_s10 + $0x28] sm:$0xff] }
 0x208   :  { %2954 = vmatpush.bf16.msra.mxu1 %v4471_v0  ;;  %2923 = vmatpush.bf16.msrb.mxu3 %v4619_v7  ;;  %v2363_v7 = vpop.f32.mrf.mxu0 }
 0x209   :  { %2940 = vmatpush.bf16.msra.mxu0 %v4407_v5 }
 0x20b   :  { %v2279_v21 = vpop.f32.mrf.mxu2 }
 0x20c   :  { %v2280_v57 = vadd.f32 %v2279_v21, %v2266_v49  ;;  %v4610_v21 = vld [vmem:[#allocation10 + $0x1b0] sm:$0xf]  ;;  %2955 = vmatpush.bf16.msra.mxu1 %v4463_v62 }
 0x20d   :  { %2941 = vmatpush.bf16.msra.mxu0 %v4399_v17  ;;  %v4559_v17 = vor.u32 %v5040_v11, %v4556_v15  ;;  %v4611_v26 = vor.u32 %v5055_v22, %v4610_v21 }
 0x20f   :  { %2965 = vmatpush.bf16.msra.mxu2 %v4559_v17  ;;  %2924 = vmatpush.bf16.msrb.mxu3 %v4611_v26  ;;  %v5056_v26 = vld [vmem:[#allocation10 + $0x1c4] sm:$0xf] }
 0x210   :  { %v4623_v30 = vor.u32 %v5056_v26, %v4620_v27  ;;  %v5072_v26 = vld [vmem:[%s5522_s10 + $0x40] sm:$0xff] }
 0x213   :  { %2966 = vmatpush.bf16.msra.mxu2 %v4551_v1  ;;  %2925 = vmatpush.bf16.msrb.mxu3 %v4603_v35 }
 0x214   :  { %v2333_v53 = vpop.f32.mrf.mxu2 }
 0x217   :  { %2967 = vmatpush.bf16.msra.mxu2 %v4543_v58  ;;  %2926 = vmatpush.bf16.msrb.mxu3 %v4595_v43  ;;  %v5048_v43 = vld [vmem:[#allocation10 + $0x184] sm:$0xf] }
 0x21b   :  { %2968 = vmatpush.bf16.msra.mxu2 %v4535_v25 }
 0x21c   :  { %v2335_v32 = vpop.f32.mrf.mxu2 }
 0x21d   :  { %v2336_v23 = vadd.f32 %v2335_v32, %v2322_v19  ;;  %v4599_v19 = vor.u32 %v5050_v41, %v4596_v42 }
 0x222   :  { %v2291_v59 = vpop.f32.mrf.mxu3 }
 0x223   :  { %v2292_v60 = vadd.f32 %v2291_v59, %v2278_v51  ;;  %v2306_v59 = vadd.f32 %v5422_v38, %v1593_v18  ;;  %v5049_v38 = vld [vmem:[#allocation10 + $0x184] sm:$0xf0]  ;;  %v2469_v51 = vunpack.c.h.bf16 %v5420_v63 }
 0x224   :  { %v4587_v55 = vor.u32 %v5049_v38, %v4586_v45  ;;  %v2389_v56 = vpop.f32.mrf.mxu2 }
 0x225   :  { %v2476_v12 = vadd.f32 %v2468_v47, %v2292_v60  ;;  %v2320_v13 = vadd.f32 %v5425_v46, %v2306_v59  ;;  %v2375_v47 = vpop.f32.mrf.mxu1  ;;  %v5062_v60 = vld [vmem:[#allocation10 + $0x1f4] sm:$0xf] }
 0x226   :  { %2927 = vmatpush.bf16.msrb.mxu3 %v4587_v55 }
 0x227   :  { %v2334_v40 = vadd.f32 %v2333_v53, %v2320_v13  ;;  %v5032_v53 = vld [vmem:[#allocation10 + $0x104] sm:$0xf]  ;;  %v4607_v13 = vor.u32 %v5052_v36, %v4604_v37 }
 0x22a   :  { %v2293_v3 = vpop.f32.mrf.mxu3 }
 0x22b   :  { %v2294_v5 = vadd.f32 %v2293_v3, %v2280_v57  ;;  %v4524_v57 = vld [vmem:[#allocation10 + $0x108] sm:$0xf0]  ;;  %v4644_v3 = vld [vmem:[#allocation10 + $0x1f8] sm:$0xf0] }
 0x22c   :  { %v4527_v2 = vor.u32 %v5032_v53, %v4524_v57  ;;  %v4647_v4 = vor.u32 %v5062_v60, %v4644_v3  ;;  %v2391_v18 = vpop.f32.mrf.mxu2 }
 0x22d   :  { %v2480_v14 = vadd.f32 %v2472_v61, %v2294_v5  ;;  %v1594_v5 = vperm.slane %v5413_v9, 2  ;;  %v2377_v11 = vpop.f32.mrf.mxu1 }
 0x22e   :  { %2969 = vmatpush.bf16.msra.mxu2 %v4527_v2  ;;  %2976 = vmatpush.bf16.msra.mxu3 %v4647_v4 }
 0x22f   :  { %v5436_v20 = vpack.c.bf16 %v2480_v14, %v2476_v12  ;;  %v2362_v10 = vadd.f32 %v2361_v44, %v1594_v5  ;;  %v5058_v12 = vld [vmem:[#allocation10 + $0x1d4] sm:$0xf]  ;;  %v4628_v14 = vld [vmem:[#allocation10 + $0x1d8] sm:$0xf0]  ;;  %v2364_v62 = vadd.f32 %v2363_v7, %v1594_v5  ;;  %v4588_v44 = vld [vmem:[#allocation10 + $0x188] sm:$0xf0] }
 0x230   :  { %v4631_v17 = vor.u32 %v5058_v12, %v4628_v14  ;;  %v4591_v45 = vor.u32 %v5048_v43, %v4588_v44  ;;  %v5067_v7 = vld [vmem:[%s5522_s10 + $0x18] sm:$0xff]  ;;  %v5065_v12 = vld [vmem:[%s5522_s10 + $0x8] sm:$0xff] }
 0x231   :  { %2886 = vmatmul.bf16.vlgmr.msrb.gmra.mxu0 %v5436_v20  ;;  %v2376_v15 = vadd.f32 %v2375_v47, %v2362_v10  ;;  %v2378_v21 = vadd.f32 %v2377_v11, %v2364_v62  ;;  %v5066_v10 = vld [vmem:[%s5522_s10 + $0x10] sm:$0xff]  ;;  %v5077_v14 = vld [vmem:[%s5522_s10 + $0x68] sm:$0xff]  ;;  %v5064_v62 = vld [vmem:[%s5522_s10] sm:$0xff] }
 0x232   :  { %v2347_v33 = vpop.f32.mrf.mxu3  ;;  %2977 = vmatpush.bf16.msra.mxu3 %v4639_v6  ;;  %v5068_v6 = vld [vmem:[%s5522_s10 + $0x20] sm:$0xff]  ;;  %v5078_v11 = vld [vmem:[%s5522_s10 + $0x70] sm:$0xff] }
 0x233   :  { %v2348_v49 = vadd.f32 %v2347_v33, %v2334_v40  ;;  %v2390_v22 = vadd.f32 %v2389_v56, %v2376_v15  ;;  %v2392_v28 = vadd.f32 %v2391_v18, %v2378_v21  ;;  %v5054_v33 = vld [vmem:[#allocation10 + $0x1b4] sm:$0xf]  ;;  %v2417_v40 = vpop.f32.mrf.mxu0  ;;  %v5076_v15 = vld [vmem:[%s5522_s10 + $0x60] sm:$0xff] }
 0x234   :  { %v4615_v58 = vor.u32 %v5054_v33, %v4612_v34  ;;  %v5074_v18 = vld [vmem:[%s5522_s10 + $0x50] sm:$0xff] }
 0x235   :  { %v2477_v61 = vadd.f32 %v2469_v51, %v2348_v49  ;;  %v2431_v25 = vpop.f32.mrf.mxu1 }
 0x236   :  { %2978 = vmatpush.bf16.msra.mxu3 %v4631_v17 }
 0x23a   :  { %v2349_v54 = vpop.f32.mrf.mxu3  ;;  %2979 = vmatpush.bf16.msra.mxu3 %v4623_v30 }
 0x23b   :  { %v2350_v46 = vadd.f32 %v2349_v54, %v2336_v23  ;;  %v1595_v23 = vperm.slane %v5413_v9, 3  ;;  %v2419_v49 = vpop.f32.mrf.mxu0 }
 0x23d   :  { %v2481_v0 = vadd.f32 %v2473_v52, %v2350_v46  ;;  %v2418_v52 = vadd.f32 %v2417_v40, %v1595_v23  ;;  %v2433_v47 = vpop.f32.mrf.mxu1  ;;  %v2420_v54 = vadd.f32 %v2419_v49, %v1595_v23 }
 0x23e   :  { %2980 = vmatpush.bf16.msra.mxu3 %v4615_v58 }
 0x23f   :  { %v2485_v63 = vpack.c.bf16 %v2481_v0, %v2477_v61  ;;  %v2432_v46 = vadd.f32 %v2431_v25, %v2418_v52  ;;  %v2434_v56 = vadd.f32 %v2433_v47, %v2420_v54  ;;  %v2471_v61 = vunpack.c.h.bf16 %v2465_v16  ;;  %v5075_v16 = vld [vmem:[%s5522_s10 + $0x58] sm:$0xff] }
 0x241   :  { %2900 = vmatmul.bf16.vlgmr.msrb.gmra.mxu1 %v2485_v63  ;;  %2942 = vmatmul.bf16.vlgmr.msra.gmra.mxu0 %v5436_v20  ;;  %v2467_v20 = vld [vmem:[%s5514_s2 + $0x18] sm:$0xff] }
 0x242   :  { %v2403_v8 = vpop.f32.mrf.mxu3  ;;  %v2474_v29 = vunpack.c.l.bf16 %v2467_v20  ;;  %2981 = vmatpush.bf16.msra.mxu3 %v4607_v13  ;;  %v2475_v0 = vunpack.c.h.bf16 %v2467_v20 }
 0x243   :  { %v2404_v1 = vadd.f32 %v2403_v8, %v2390_v22  ;;  %v5079_v8 = vld [vmem:[%s5522_s10 + $0x78] sm:$0xff]  ;;  %v5073_v22 = vld [vmem:[%s5522_s10 + $0x48] sm:$0xff] }
 0x244   :  { %v2445_v38 = vpop.f32.mrf.mxu2  ;;  %3142 = vmatpush.bf16.msrb.mxu1 %v5079_v8 }
 0x245   :  { %v2478_v59 = vadd.f32 %v2470_v24, %v2404_v1  ;;  %v2446_v53 = vadd.f32 %v2445_v38, %v2432_v46  ;;  %v2552_v24 = vld [vmem:[%s5521_s9] sm:$0x3] }
 0x246   :  { %2982 = vmatpush.bf16.msra.mxu3 %v4599_v19  ;;  %v2555_v40 = vperm.slane %v2552_v24, 1 }
 0x248   :  { %3143 = vmatpush.bf16.msrb.mxu1 %v5078_v11 }
 0x24a   :  { %v2405_v31 = vpop.f32.mrf.mxu3  ;;  %2983 = vmatpush.bf16.msra.mxu3 %v4591_v45 }
 0x24b   :  { %v2406_v32 = vadd.f32 %v2405_v31, %v2392_v28  ;;  %v2554_v28 = vperm.slane %v2552_v24, 0 }
 0x24c   :  { %v2447_v55 = vpop.f32.mrf.mxu2  ;;  %3144 = vmatpush.bf16.msrb.mxu1 %v5077_v14  ;;  %v5096_v14 = vld [vmem:[#allocation3] ss:$0 sm:$0xff] }
 0x24d   :  { %v2482_v35 = vadd.f32 %v2474_v29, %v2406_v32  ;;  %v2448_v57 = vadd.f32 %v2447_v55, %v2434_v56 }
 0x24f   :  { %v2486_v39 = vpack.c.bf16 %v2482_v35, %v2478_v59 }
 0x250   :  { %3145 = vmatpush.bf16.msrb.mxu1 %v5076_v15 }
 0x251   :  { %2914 = vmatmul.bf16.vlgmr.msrb.gmra.mxu2 %v2486_v39  ;;  %2956 = vmatmul.bf16.vlgmr.msra.gmra.mxu1 %v2485_v63  ;;  %v5071_v63 = vld [vmem:[%s5522_s10 + $0x38] sm:$0xff] }
 0x252   :  { %3128 = vmatpush.bf16.msrb.mxu0 %v5071_v63 }
 0x254   :  { %3146 = vmatpush.bf16.msrb.mxu1 %v5075_v16 }
 0x256   :  { %3129 = vmatpush.bf16.msrb.mxu0 %v5070_v48 }
 0x258   :  { %3147 = vmatpush.bf16.msrb.mxu1 %v5074_v18 }
 0x25a   :  { %3130 = vmatpush.bf16.msrb.mxu0 %v5069_v50 }
 0x25c   :  { %3148 = vmatpush.bf16.msrb.mxu1 %v5073_v22 }
 0x25e   :  { %3131 = vmatpush.bf16.msrb.mxu0 %v5068_v6 }
 0x260   :  { %3149 = vmatpush.bf16.msrb.mxu1 %v5072_v26 }
 0x261   :  { %2970 = vmatmul.bf16.vlgmr.msra.gmra.mxu2 %v2486_v39 }
 0x262   :  { %v2459_v51 = vpop.f32.mrf.mxu3  ;;  %3132 = vmatpush.bf16.msrb.mxu0 %v5067_v7 }
 0x263   :  { %v2460_v60 = vadd.f32 %v2459_v51, %v2446_v53 }
 0x265   :  { %v2479_v4 = vadd.f32 %v2471_v61, %v2460_v60 }
 0x266   :  { %3133 = vmatpush.bf16.msrb.mxu0 %v5066_v10 }
 0x26a   :  { %v2461_v2 = vpop.f32.mrf.mxu3  ;;  %3134 = vmatpush.bf16.msrb.mxu0 %v5065_v12 }
 0x26b   :  { %v2462_v3 = vadd.f32 %v2461_v2, %v2448_v57 }
 0x26d   :  { %v2483_v5 = vadd.f32 %v2475_v0, %v2462_v3  ;;  %v5094_v0 = vld [vmem:[%s5523_s11] ss:$0 sm:$0xff]  ;;  %s5235_s11 = smov [#allocation12]  }
 0x26e   :  { %3135 = vmatpush.bf16.msrb.mxu0 %v5064_v62 }
 0x26f   :  { %v2487_v9 = vpack.c.bf16 %v2483_v5, %v2479_v4  ;;  %v5095_v5 = vld [vmem:[%s5524_s12] ss:$0 sm:$0xff]  ;;  %s3216_s12 = sshll.u32 %s5235_s11, 4  ;;  %s3217_s12 = int_to_ptr.vmem [resolvable:$true] %s3216_s12 }
 0x271   :  { %2928 = vmatmul.bf16.vlgmr.msrb.gmra.mxu3 %v2487_v9 }
 0x281   :  { %2984 = vmatmul.bf16.vlgmr.msra.gmra.mxu3 %v2487_v9 }
 0x2ae   :  { %v2887_v17 = vpop.f32.mrf.mxu0 }
 0x2af   :  { %v2888_v31 = vadd.f32 %v2887_v17, %v2554_v28 }
 0x2b6   :  { %v2889_v27 = vpop.f32.mrf.mxu0 }
 0x2b7   :  { %v2890_v32 = vadd.f32 %v2889_v27, %v2554_v28 }
 0x2be   :  { %v2901_v20 = vpop.f32.mrf.mxu1  ;;  %v2943_v35 = vpop.f32.mrf.mxu0 }
 0x2bf   :  { %v2902_v33 = vadd.f32 %v2901_v20, %v2888_v31  ;;  %v2944_v45 = vadd.f32 %v2943_v35, %v2555_v40 }
 0x2c6   :  { %v2903_v1 = vpop.f32.mrf.mxu1  ;;  %v2945_v44 = vpop.f32.mrf.mxu0 }
 0x2c7   :  { %v2904_v34 = vadd.f32 %v2903_v1, %v2890_v32  ;;  %v2946_v23 = vadd.f32 %v2945_v44, %v2555_v40 }
 0x2ce   :  { %v2957_v37 = vpop.f32.mrf.mxu1 }
 0x2cf   :  { %v2958_v49 = vadd.f32 %v2957_v37, %v2944_v45 }
 0x2d4   :  { %v2915_v21 = vpop.f32.mrf.mxu2 }
 0x2d5   :  { %v2916_v59 = vadd.f32 %v2915_v21, %v2902_v33 }
 0x2d6   :  { %v2959_v38 = vpop.f32.mrf.mxu1 }
 0x2d7   :  { %v2960_v52 = vadd.f32 %v2959_v38, %v2946_v23 }
 0x2dc   :  { %v2917_v29 = vpop.f32.mrf.mxu2 }
 0x2dd   :  { %v2918_v58 = vadd.f32 %v2917_v29, %v2904_v34 }
 0x2e4   :  { %v2971_v41 = vpop.f32.mrf.mxu2 }
 0x2e5   :  { %v2972_v47 = vadd.f32 %v2971_v41, %v2958_v49 }
 0x2ec   :  { %v2973_v51 = vpop.f32.mrf.mxu2 }
 0x2ed   :  { %v2974_v54 = vadd.f32 %v2973_v51, %v2960_v52 }
 0x2f4   :  { %v2929_v30 = vpop.f32.mrf.mxu3 }
 0x2f5   :  { %v2930_v36 = vadd.f32 %v2929_v30, %v2916_v59 }
 0x2f7   :  { %v2990_v42 = vmax.f32 %v2930_v36, 0.0 }
 0x2fc   :  { %v2931_v39 = vpop.f32.mrf.mxu3 }
 0x2fd   :  { %v2932_v13 = vadd.f32 %v2931_v39, %v2918_v58 }
 0x2ff   :  { %v2992_v19 = vmax.f32 %v2932_v13, 0.0 }
 0x301   :  { %v2994_v43 = vpack.c.bf16 %v2992_v19, %v2990_v42 }
 0x303   :  { %3136 = vmatmul.bf16.vlgmr.msrb.gmra.mxu0 %v2994_v43 }
 0x304   :  { %v2985_v25 = vpop.f32.mrf.mxu3 }
 0x305   :  { %v2986_v46 = vadd.f32 %v2985_v25, %v2972_v47 }
 0x307   :  { %v2991_v53 = vmax.f32 %v2986_v46, 0.0 }
 0x30c   :  { %v2987_v55 = vpop.f32.mrf.mxu3 }
 0x30d   :  { %v2988_v56 = vadd.f32 %v2987_v55, %v2974_v54 }
 0x30f   :  { %v2993_v57 = vmax.f32 %v2988_v56, 0.0 }
 0x311   :  { %v2995_v60 = vpack.c.bf16 %v2993_v57, %v2991_v53 }
 0x313   :  { %3150 = vmatmul.bf16.vlgmr.msrb.gmra.mxu1 %v2995_v60 }
 0x380   :  { %v3137_v61 = vpop.f32.mrf.mxu0 }
 0x381   :  { %v3138_v2 = vadd.f32 %v5094_v0, %v3137_v61 }
 0x388   :  { %v3139_v63 = vpop.f32.mrf.mxu0 }
 0x389   :  { %v3140_v50 = vadd.f32 %v5094_v0, %v3139_v63 }
 0x390   :  { %v3151_v3 = vpop.f32.mrf.mxu1 }
 0x391   :  { %v3152_v4 = vadd.f32 %v3151_v3, %v3138_v2 }
 0x393   :  { %v3156_v9 = vmax.f32 %v3152_v4, 0.0 }
 0x395   :  { %v3162_v48 = vmul.f32 %v5095_v5, %v3156_v9 }
 0x397   :  { %v3165_v6 = vsel %vm3164_vm3, %v3162_v48, 0.0 }
 0x398   :  { %v3153_v7 = vpop.f32.mrf.mxu1  ;;  %3166 = vadd.xlane.f32.xlu1 %v3165_v6 }
 0x399   :  { %v3154_v8 = vadd.f32 %v3153_v7, %v3140_v50 }
 0x39b   :  { %v3157_v10 = vmax.f32 %v3154_v8, 0.0 }
 0x39d   :  { %v3163_v11 = vmul.f32 %v5095_v5, %v3157_v10 }
 0x39f   :  { %v3168_v12 = vsel %vm3164_vm3, %v3163_v11, 0.0 }
 0x3a0   :  { %3169 = vadd.xlane.f32.xlu1 %v3168_v12 }
 0x40b   :  { %v3167_v62 = vpop.xlane.xlu1 %3166 }
 0x40c   :  { %v3175_v15 = vadd.f32 %v5096_v14, %v3167_v62 }
 0x40e   :  { %3177 = vxpose.xlu2.b32.start [1/2] (short) (narrow) %v3175_v15, 8 }
 0x413   :  { %v3170_v16 = vpop.xlane.xlu1 %3169 }
 0x414   :  { %v3176_v17 = vadd.f32 %v5096_v14, %v3170_v16 }
 0x416   :  { %3178 = vxpose.xlu2.b32.end [2/2] (short) (narrow) %v3176_v17, 8 }
 0x4a7   :  { %v3193_v18 = vpop.trf.xlu2 }
 0x4a8   :  { %3210 = vst.msk [vmem:[#allocation12] sm:$0x1] %vm3209_vm4, %v3193_v18 }
 0x4a9   :  { %3221 = dma.vmem_to_hbm [thread:$0]  %s3217_s12, 16, %s3219_s22, [#allocation6]  }
 0x4aa   :  { %5223 = dma.done.wait [#allocation6], 16  }
 0x4ab   :  { %5224 = vsyncadd [#allocation6], 4294967280 }
 0x4ac   :  { %3226 = vsyncpa [#allocation5], 1 }
 0x4ad   :  { %3227 = vsyncpa [#allocation8], 1 }
 0x4ae   :  { %3228 = vsyncpa [#allocation11], 1 }
 0x4af   :  { %3229 = vsyncpa [#allocation6], 1 }

</bundles_post_ra>
